<compile_context>
chip_gen: v5e
topology: v5e:2x2
jax: 0.10.0
libtpu: 0.0.40
codegen_flags: <defaults>
</compile_context>

<pallas_src>
import functools

import jax
import jax.numpy as jnp
from jax import lax
from jax.experimental import pallas as pl
from jax.experimental.pallas import tpu as pltpu

LANES = 128   # channel axis padded to a multiple of this (lane width)
SUBL = 8      # image-row pitch padded to a multiple of this (sublane width)
MARGIN = 8    # zero sublane margin around staged slabs (covers the +/-1 lane-tap wrap)


def _round_up(x, m):
    return ((x + m - 1) // m) * m


# --------------------------------- the kernel --------------------------------------

def _residual_block_kernel(x_ref, w1_ref, w2_ref, s1_ref, b1_ref, s2_ref, b2_ref,
                           o_ref, xs_ref, hs_ref, bcat_ref, *, W, Wp, TH):
    """One (batch, H-tile) step of the fused ResidualBlock.

    x_ref   : (H*Wp, Cp)  bf16   full image, spatially flattened, channel/row padded
    w*_ref  : (3, 3*Cp, Cp) bf16 weights packed as [dy][dx*Cp + ci, co]
    s*,b*   : (1, Cp) f32        folded BN scale / bias (zero in padded channels)
    o_ref   : (TH*Wp, Cp) bf16   ReLU(conv2*bn2 + x) for this tile's rows
    xs_ref  : (MARGIN + (TH+4)*Wp + MARGIN, Cp) bf16 scratch (x slab, 2-row halo)
    hs_ref  : (MARGIN + (TH+2)*Wp + MARGIN, Cp) bf16 scratch (h slab, 1-row halo)
    bcat_ref: ((TH+4)*Wp, 3*Cp) bf16 scratch (lane-packed [left|mid|right] conv operand)
    """
    cp = x_ref.shape[-1]
    M8 = MARGIN
    N1 = (TH + 2) * Wp     # h rows computed by conv1 (tile rows + 1-row halo each side)
    N2 = TH * Wp           # block-output rows for this tile
    NS = (TH + 4) * Wp     # staged x rows (tile rows + 2-row halo each side)

    h_idx = pl.program_id(1)
    nt = pl.num_programs(1)
    row0 = h_idx * TH      # first output image row of this tile

    zero_m8 = jnp.zeros((M8, cp), jnp.bfloat16)

    # ---- 1. stage the x slab: image rows [row0-2, row0+TH+2), out-of-image rows = 0 ----
    xs_ref[pl.ds(0, M8), :] = zero_m8            # sublane margins: make the +/-1 lane-tap
    xs_ref[pl.ds(M8 + NS, M8), :] = zero_m8      # wraps at the slab ends read zeros
    hs_ref[pl.ds(0, M8), :] = zero_m8
    hs_ref[pl.ds(M8 + N1, M8), :] = zero_m8

    src0 = pl.multiple_of(row0 * Wp, 8)

    @pl.when(h_idx > 0)                                           # top 2-row halo
    def _():
        src = pl.multiple_of((row0 - 2) * Wp, 8)
        xs_ref[pl.ds(M8, 2 * Wp), :] = x_ref[pl.ds(src, 2 * Wp), :]

    @pl.when(h_idx == 0)
    def _():
        xs_ref[pl.ds(M8, 2 * Wp), :] = jnp.zeros((2 * Wp, cp), jnp.bfloat16)

    xs_ref[pl.ds(M8 + 2 * Wp, TH * Wp), :] = x_ref[pl.ds(src0, TH * Wp), :]   # core rows

    @pl.when(h_idx < nt - 1)                                      # bottom 2-row halo
    def _():
        src = pl.multiple_of((row0 + TH) * Wp, 8)
        xs_ref[pl.ds(M8 + (TH + 2) * Wp, 2 * Wp), :] = x_ref[pl.ds(src, 2 * Wp), :]

    @pl.when(h_idx == nt - 1)
    def _():
        xs_ref[pl.ds(M8 + (TH + 2) * Wp, 2 * Wp), :] = jnp.zeros((2 * Wp, cp), jnp.bfloat16)

    # ---- 2. 3x3 'same' conv: slab (with 1-row halo + zero margins) -> n_out rows ----
    def conv3x3(slab_ref, n_out, w_ref):
        nb = n_out + 2 * Wp
        left = slab_ref[pl.ds(M8 - 1, nb), :]    # dx = 0 tap (input col x-1)
        mid = slab_ref[pl.ds(M8, nb), :]         # dx = 1 tap (aligned view)
        right = slab_ref[pl.ds(M8 + 1, nb), :]   # dx = 2 tap (input col x+1)
        if W == Wp:
            # No padded columns: mask the row-wrap of the +/-1 lane taps.
            col = lax.broadcasted_iota(jnp.int32, (nb, 1), 0) % Wp
            left = left * (col != 0).astype(jnp.bfloat16)
            right = right * (col != Wp - 1).astype(jnp.bfloat16)
        # With Wp > W the wrapped-in elements are padded (zero) columns: no masks needed.
        bcat_ref[pl.ds(0, nb), 0:cp] = left
        bcat_ref[pl.ds(0, nb), cp:2 * cp] = mid
        bcat_ref[pl.ds(0, nb), 2 * cp:3 * cp] = right
        acc = jnp.zeros((n_out, cp), jnp.float32)
        for dy in range(3):                      # three aligned sublane windows -> MXU
            acc = acc + jnp.dot(bcat_ref[pl.ds(dy * Wp, n_out), :], w_ref[dy],
                                preferred_element_type=jnp.float32)
        return acc

    def mask_pad_cols(v, n):
        if W == Wp:
            return v
        col = lax.broadcasted_iota(jnp.int32, (n, 1), 0) % Wp
        return v * (col < W).astype(v.dtype)     # keep padded columns exactly zero

    # ---- 3. conv1 -> BN1 -> ReLU (h stays in VMEM) ----
    h1 = jnp.maximum(conv3x3(xs_ref, N1, w1_ref) * s1_ref[...] + b1_ref[...], 0.0)
    h1 = mask_pad_cols(h1, N1)
    hs_ref[pl.ds(M8, N1), :] = h1.astype(jnp.bfloat16)

    # conv2 must see zero padding (not extrapolated conv1 values) above/below the image.
    @pl.when(h_idx == 0)
    def _():
        hs_ref[pl.ds(M8, Wp), :] = jnp.zeros((Wp, cp), jnp.bfloat16)

    @pl.when(h_idx == nt - 1)
    def _():
        hs_ref[pl.ds(M8 + (TH + 1) * Wp, Wp), :] = jnp.zeros((Wp, cp), jnp.bfloat16)

    # ---- 4. conv2 -> BN2 -> + residual -> ReLU -> bf16 store ----
    out = conv3x3(hs_ref, N2, w2_ref) * s2_ref[...] + b2_ref[...]
    out = out + x_ref[pl.ds(src0, N2), :].astype(jnp.float32)
    out = mask_pad_cols(jnp.maximum(out, 0.0), N2)
    o_ref[...] = out.astype(o_ref.dtype)


# ------------------------------ once-per-network prep -------------------------------

def _fold_bn(gamma, beta, mean, var, eps=1e-5):
    scale = gamma / jnp.sqrt(var + eps)
    bias = beta - mean * scale
    return scale.astype(jnp.float32), bias.astype(jnp.float32)


def _fold_bn_lane(gamma, beta, mean, var, cp, eps=1e-5):
    scale, bias = _fold_bn(gamma, beta, mean, var, eps)
    c = scale.shape[0]
    scale = jnp.pad(scale, (0, cp - c)).reshape(1, cp)   # padded channels: scale = 0
    bias = jnp.pad(bias, (0, cp - c)).reshape(1, cp)     # padded channels: bias  = 0
    return scale, bias


def _pack_weight(w_oihw, cp):
    # (Cout, Cin, 3, 3) -> (3, 3*cp, cp) bf16 with layout [dy][dx*cp + ci, co]
    co, ci, kh, kw = w_oihw.shape
    assert ci <= cp and co <= cp, "cp must cover the channel count"
    w = jnp.transpose(w_oihw, (2, 3, 1, 0))                       # (3, 3, ci, co)
    w = jnp.pad(w, ((0, 0), (0, 0), (0, cp - ci), (0, cp - co)))  # zero-pad channels
    return w.reshape(kh, kw * cp, cp).astype(jnp.bfloat16)


def prepare_block_params(params, cp, eps=1e-5):
    """Hoisted out of the forward path: call ONCE per network, reuse every step."""
    w1 = _pack_weight(params["w1"], cp)
    w2 = _pack_weight(params["w2"], cp)
    s1, b1 = _fold_bn_lane(params["g1"], params["be1"], params["m1"], params["v1"], cp, eps)
    s2, b2 = _fold_bn_lane(params["g2"], params["be2"], params["m2"], params["v2"], cp, eps)
    return (w1, w2, s1, b1, s2, b2)


def pack_activations(x_nhwc, cp):
    """NHWC -> packed (B, H*Wp, cp) bf16 (once at network entry)."""
    B, H, W, C = x_nhwc.shape
    assert C <= cp
    Wp = _round_up(W, SUBL)
    x = jnp.pad(x_nhwc, ((0, 0), (0, 0), (0, Wp - W), (0, cp - C)))
    return x.reshape(B, H * Wp, cp).astype(jnp.bfloat16)


def unpack_activations(y_packed, H, W, C):
    """packed (B, H*Wp, cp) -> NHWC f32 (once at network exit)."""
    B, HWp, cp = y_packed.shape
    Wp = HWp // H
    return y_packed.reshape(B, H, Wp, cp)[:, :, :W, :C].astype(jnp.float32)


def _pick_tile_rows(H, Wp, cp, budget_bytes=12 * 1024 * 1024):
    """Largest H-divisor tile whose per-tile working set fits a conservative VMEM budget."""
    divisors = [d for d in range(H, 1, -1) if H % d == 0] or [H]
    for th in divisors:
        if (th + 4) * Wp * cp * 18 <= budget_bytes:   # xs + hs + bcat + f32 temps (approx.)
            return th
    return divisors[-1]


# --------------------------------- hot-path entry ------------------------------------

@functools.partial(jax.jit, static_argnames=("H", "W", "tile_rows"))
def residual_block_packed(x_packed, w1, w2, s1, b1, s2, b2, *, H, W, tile_rows=None):
    """Fused ResidualBlock on the packed (B, H*Wp, Cp) bf16 layout (chain these directly)."""
    B, HWp, cp = x_packed.shape
    Wp = _round_up(W, SUBL)
    assert HWp == H * Wp and cp % LANES == 0

    TH = tile_rows if tile_rows is not None else _pick_tile_rows(H, Wp, cp)
    assert H % TH == 0 and (TH >= 2 or TH == H), "tile_rows must divide H (and be >= 2)"
    NT = H // TH

    kernel = functools.partial(_residual_block_kernel, W=W, Wp=Wp, TH=TH)

    flops = 2 * 2 * 9 * B * H * Wp * cp * cp                         # two 3x3 convs on MXU
    bytes_accessed = 2 * B * HWp * cp * 2 + 2 * 3 * 3 * cp * cp * 2  # bf16 in/out + weights
    cost = pl.CostEstimate(flops=flops, transcendentals=0, bytes_accessed=bytes_accessed)

    return pl.pallas_call(
        kernel,
        out_shape=jax.ShapeDtypeStruct((B, HWp, cp), jnp.bfloat16),   # bf16 writeback
        grid=(B, NT),
        in_specs=[
            pl.BlockSpec((None, HWp, cp), lambda b, h: (b, 0, 0)),      # full image (revisited)
            pl.BlockSpec((3, 3 * cp, cp), lambda b, h: (0, 0, 0)),      # weights stay resident
            pl.BlockSpec((3, 3 * cp, cp), lambda b, h: (0, 0, 0)),
            pl.BlockSpec((1, cp), lambda b, h: (0, 0)),
            pl.BlockSpec((1, cp), lambda b, h: (0, 0)),
            pl.BlockSpec((1, cp), lambda b, h: (0, 0)),
            pl.BlockSpec((1, cp), lambda b, h: (0, 0)),
        ],
        out_specs=pl.BlockSpec((None, TH * Wp, cp), lambda b, h: (b, h, 0)),
        scratch_shapes=[
            pltpu.VMEM((MARGIN + (TH + 4) * Wp + MARGIN, cp), jnp.bfloat16),  # x slab
            pltpu.VMEM((MARGIN + (TH + 2) * Wp + MARGIN, cp), jnp.bfloat16),  # h slab
            pltpu.VMEM(((TH + 4) * Wp, 3 * cp), jnp.bfloat16),                # bcat
        ],
        compiler_params=pltpu.CompilerParams(
            dimension_semantics=("parallel", "parallel"),
            # Above v5e's 16 MiB default scoped limit, below v7x's 64 MiB physical VMEM.
            vmem_limit_bytes=48 * 1024 * 1024),
        cost_estimate=cost,
    )(x_packed, w1, w2, s1, b1, s2, b2)


def residual_block_forward(x_nchw, params, tile_rows=None):
    """PyTorch-parity adapter (NCHW in / NCHW out).  Only for testing: a full network should
    call prepare_block_params once, pack_activations once, and chain residual_block_packed."""
    B, C, H, W = x_nchw.shape
    cp = max(LANES, _round_up(C, LANES))
    prep = prepare_block_params(params, cp)
    x = pack_activations(jnp.transpose(x_nchw, (0, 2, 3, 1)), cp)
    y = residual_block_packed(x, *prep, H=H, W=W, tile_rows=tile_rows)
    y = unpack_activations(y, H, W, C)
    return jnp.transpose(y, (0, 3, 1, 2))


# ----------------------------- references (plain JAX) ------------------------------

def _reference_forward_f32(x_nchw, params, eps=1e-5):
    """Exact PyTorch-module semantics in f32 (eval-mode BN)."""
    def conv(x, w):
        return lax.conv_general_dilated(x, w, (1, 1), ((1, 1), (1, 1)),
                                        dimension_numbers=("NCHW", "OIHW", "NCHW"))

    def bn(x, g, be, m, v):
        g = g.reshape(1, -1, 1, 1); be = be.reshape(1, -1, 1, 1)
        m = m.reshape(1, -1, 1, 1); v = v.reshape(1, -1, 1, 1)
        return g * (x - m) / jnp.sqrt(v + eps) + be

    h = jax.nn.relu(bn(conv(x_nchw, params["w1"]),
                       params["g1"], params["be1"], params["m1"], params["v1"]))
    h = bn(conv(h, params["w2"]),
           params["g2"], params["be2"], params["m2"], params["v2"])
    return jax.nn.relu(h + x_nchw)


def _reference_forward_matched(x_nchw, params, eps=1e-5):
    """Same arithmetic as the kernel: bf16 conv inputs, f32 accumulation, folded BN."""
    xb = x_nchw.astype(jnp.bfloat16)

    def conv(x_bf, w):
        return lax.conv_general_dilated(
            x_bf.astype(jnp.bfloat16), w.astype(jnp.bfloat16), (1, 1), ((1, 1), (1, 1)),
            dimension_numbers=("NCHW", "OIHW", "NCHW"),
            preferred_element_type=jnp.float32)

    def bn(x, g, be, m, v):
        s, b = _fold_bn(g, be, m, v, eps)
        return x * s.reshape(1, -1, 1, 1) + b.reshape(1, -1, 1, 1)

    h = jax.nn.relu(bn(conv(xb, params["w1"]),
                       params["g1"], params["be1"], params["m1"], params["v1"]))
    h = bn(conv(h.astype(jnp.bfloat16), params["w2"]),
           params["g2"], params["be2"], params["m2"], params["v2"])
    return jax.nn.relu(h + xb.astype(jnp.float32))


# ----------------------------------- tests ------------------------------------------

def _make_params(key, C):
    ks = jax.random.split(key, 10)
    return {
        "w1": 0.1 * jax.random.normal(ks[0], (C, C, 3, 3), jnp.float32),
        "w2": 0.1 * jax.random.normal(ks[1], (C, C, 3, 3), jnp.float32),
        "g1": 1.0 + 0.1 * jax.random.normal(ks[2], (C,), jnp.float32),
        "be1": 0.1 * jax.random.normal(ks[3], (C,), jnp.float32),
        "m1": 0.1 * jax.random.normal(ks[4], (C,), jnp.float32),
        "v1": 1.0 + 0.1 * jax.random.uniform(ks[5], (C,), jnp.float32),
        "g2": 1.0 + 0.1 * jax.random.normal(ks[6], (C,), jnp.float32),
        "be2": 0.1 * jax.random.normal(ks[7], (C,), jnp.float32),
        "m2": 0.1 * jax.random.normal(ks[8], (C,), jnp.float32),
        "v2": 1.0 + 0.1 * jax.random.uniform(ks[9], (C,), jnp.float32),
    }


if __name__ == "__main__":
    key = jax.random.PRNGKey(0)

    # Config 1: W multiple of 8, multi-tile H (exercises the H-tile halo path).
    # Config 2: W NOT a multiple of 8 (exercises the padded-column path), single tile.
    configs = [(2, 4, 16, 16, 8), (2, 4, 12, 12, None)]

    for (B, C, H, W, tile_rows) in configs:
        key, kp, kx = jax.random.split(key, 3)
        params = _make_params(kp, C)
        x = jax.random.normal(kx, (B, C, H, W), jnp.float32)

        out = jax.block_until_ready(residual_block_forward(x, params, tile_rows=tile_rows))
        assert out.shape == (B, C, H, W)

        # Tight check vs a reference with identical (bf16-in / f32-acc) matmul precision
        # (kernel additionally rounds the final output to bf16).
        ref_matched = _reference_forward_matched(x, params)
        assert jnp.allclose(out, ref_matched, atol=2e-2, rtol=2e-2), \
            f"mismatch vs precision-matched reference at {(B, C, H, W)}"

        # Looser sanity check vs the exact f32 PyTorch-module semantics.
        ref_f32 = _reference_forward_f32(x, params)
        assert jnp.allclose(out, ref_f32, atol=6e-2, rtol=6e-2), \
            f"mismatch vs f32 reference at {(B, C, H, W)}"

        # Chained blocks in the packed layout (as used inside a network): validates that the
        # padded columns / channels stay zero so the layout can be carried across blocks.
        cp = max(LANES, _round_up(C, LANES))
        prep = prepare_block_params(params, cp)
        xp = pack_activations(jnp.transpose(x, (0, 2, 3, 1)), cp)
        y1 = residual_block_packed(xp, *prep, H=H, W=W, tile_rows=tile_rows)
        y2 = residual_block_packed(y1, *prep, H=H, W=W, tile_rows=tile_rows)
        out2 = jnp.transpose(unpack_activations(y2, H, W, C), (0, 3, 1, 2))
        ref2 = _reference_forward_matched(_reference_forward_matched(x, params), params)
        out2 = jax.block_until_ready(out2)
        assert jnp.allclose(out2, ref2, atol=5e-2, rtol=5e-2), \
            f"mismatch on chained packed blocks at {(B, C, H, W)}"

    print("KERNEL_OK")
</pallas_src>

<mosaic_0001>
module attributes {stable_mosaic.version = 11 : i64} {
  func.func @_residual_block_kernel(%arg0: i32, %arg1: i32, %arg2: memref<1x256x128xbf16, #tpu.memory_space<vmem>>, %arg3: memref<3x384x128xbf16, #tpu.memory_space<vmem>>, %arg4: memref<3x384x128xbf16, #tpu.memory_space<vmem>>, %arg5: memref<1x128xf32, #tpu.memory_space<vmem>>, %arg6: memref<1x128xf32, #tpu.memory_space<vmem>>, %arg7: memref<1x128xf32, #tpu.memory_space<vmem>>, %arg8: memref<1x128xf32, #tpu.memory_space<vmem>>, %arg9: memref<1x128x128xbf16, #tpu.memory_space<vmem>>, %arg10: memref<208x128xbf16, #tpu.memory_space<vmem>>, %arg11: memref<176x128xbf16, #tpu.memory_space<vmem>>, %arg12: memref<192x384xbf16, #tpu.memory_space<vmem>>) attributes {dimension_semantics = [#tpu.dimension_semantics<parallel>, #tpu.dimension_semantics<parallel>], iteration_bounds = array<i64: 2, 2>, scalar_prefetch = 0 : i64, scratch_operands = 3 : i64, tpu.core_type = #tpu.core_type<tc>, window_params = [{transform_indices = @transform_0, window_bounds = array<i64: 1, 256, 128>}, {pipeline_mode = #tpu.pipeline_mode<synchronous>, transform_indices = @transform_1, window_bounds = array<i64: 3, 384, 128>}, {pipeline_mode = #tpu.pipeline_mode<synchronous>, transform_indices = @transform_2, window_bounds = array<i64: 3, 384, 128>}, {pipeline_mode = #tpu.pipeline_mode<synchronous>, transform_indices = @transform_3, window_bounds = array<i64: 1, 128>}, {pipeline_mode = #tpu.pipeline_mode<synchronous>, transform_indices = @transform_4, window_bounds = array<i64: 1, 128>}, {pipeline_mode = #tpu.pipeline_mode<synchronous>, transform_indices = @transform_5, window_bounds = array<i64: 1, 128>}, {pipeline_mode = #tpu.pipeline_mode<synchronous>, transform_indices = @transform_6, window_bounds = array<i64: 1, 128>}, {transform_indices = @transform_7, window_bounds = array<i64: 1, 128, 128>}]} {
    %c8_i32 = arith.constant 8 : i32
    %0 = arith.muli %arg1, %c8_i32 : i32
    %cst = arith.constant 0.000000e+00 : bf16
    %1 = vector.broadcast %cst : bf16 to vector<8x128xbf16>
    %c0 = arith.constant 0 : index
    %c0_0 = arith.constant 0 : index
    %2 = vector.load %arg10[%c0, %c0_0] : memref<208x128xbf16, #tpu.memory_space<vmem>>, vector<8x128xbf16>
    tpu.vector_store %arg10[%c0, %c0_0], %1 {strides = array<i32>} : memref<208x128xbf16, #tpu.memory_space<vmem>>, vector<8x128xbf16>,
    %c200 = arith.constant 200 : index
    %c0_1 = arith.constant 0 : index
    %3 = vector.load %arg10[%c200, %c0_1] : memref<208x128xbf16, #tpu.memory_space<vmem>>, vector<8x128xbf16>
    tpu.vector_store %arg10[%c200, %c0_1], %1 {strides = array<i32>} : memref<208x128xbf16, #tpu.memory_space<vmem>>, vector<8x128xbf16>,
    %c0_2 = arith.constant 0 : index
    %c0_3 = arith.constant 0 : index
    %4 = vector.load %arg11[%c0_2, %c0_3] : memref<176x128xbf16, #tpu.memory_space<vmem>>, vector<8x128xbf16>
    tpu.vector_store %arg11[%c0_2, %c0_3], %1 {strides = array<i32>} : memref<176x128xbf16, #tpu.memory_space<vmem>>, vector<8x128xbf16>,
    %c168 = arith.constant 168 : index
    %c0_4 = arith.constant 0 : index
    %5 = vector.load %arg11[%c168, %c0_4] : memref<176x128xbf16, #tpu.memory_space<vmem>>, vector<8x128xbf16>
    tpu.vector_store %arg11[%c168, %c0_4], %1 {strides = array<i32>} : memref<176x128xbf16, #tpu.memory_space<vmem>>, vector<8x128xbf16>,
    %c16_i32 = arith.constant 16 : i32
    %6 = arith.muli %0, %c16_i32 : i32
    %7 = tpu.assume_multiple %6, 8 : i32
    %c0_i32 = arith.constant 0 : i32
    %8 = arith.cmpi sgt, %arg1, %c0_i32 : i32
    %9 = arith.extui %8 : i1 to i32
    %c0_i32_5 = arith.constant 0 : i32
    %10 = arith.cmpi ne, %9, %c0_i32_5 : i32
    scf.if %10 {
      %c2_i32 = arith.constant 2 : i32
      %163 = arith.subi %0, %c2_i32 : i32
      %c16_i32_103 = arith.constant 16 : i32
      %164 = arith.muli %163, %c16_i32_103 : i32
      %165 = tpu.assume_multiple %164, 8 : i32
      %c0_104 = arith.constant 0 : index
      %166 = arith.index_cast %165 : i32 to index
      %c0_105 = arith.constant 0 : index
      %167 = vector.load %arg2[%c0_104, %166, %c0_105] : memref<1x256x128xbf16, #tpu.memory_space<vmem>>, vector<1x32x128xbf16>
      %168 = vector.shape_cast %167 : vector<1x32x128xbf16> to vector<32x128xbf16>
      %c8_106 = arith.constant 8 : index
      %c0_107 = arith.constant 0 : index
      %169 = vector.load %arg10[%c8_106, %c0_107] : memref<208x128xbf16, #tpu.memory_space<vmem>>, vector<32x128xbf16>
      tpu.vector_store %arg10[%c8_106, %c0_107], %168 {strides = array<i32>} : memref<208x128xbf16, #tpu.memory_space<vmem>>, vector<32x128xbf16>,
    } else {
    }
    %c0_i32_6 = arith.constant 0 : i32
    %11 = arith.cmpi eq, %arg1, %c0_i32_6 : i32
    %12 = arith.extui %11 : i1 to i32
    %c0_i32_7 = arith.constant 0 : i32
    %13 = arith.cmpi ne, %12, %c0_i32_7 : i32
    scf.if %13 {
      %cst_103 = arith.constant 0.000000e+00 : bf16
      %163 = vector.broadcast %cst_103 : bf16 to vector<32x128xbf16>
      %c8_104 = arith.constant 8 : index
      %c0_105 = arith.constant 0 : index
      %164 = vector.load %arg10[%c8_104, %c0_105] : memref<208x128xbf16, #tpu.memory_space<vmem>>, vector<32x128xbf16>
      tpu.vector_store %arg10[%c8_104, %c0_105], %163 {strides = array<i32>} : memref<208x128xbf16, #tpu.memory_space<vmem>>, vector<32x128xbf16>,
    } else {
    }
    %c0_8 = arith.constant 0 : index
    %14 = arith.index_cast %7 : i32 to index
    %c0_9 = arith.constant 0 : index
    %15 = vector.load %arg2[%c0_8, %14, %c0_9] : memref<1x256x128xbf16, #tpu.memory_space<vmem>>, vector<1x128x128xbf16>
    %16 = vector.shape_cast %15 : vector<1x128x128xbf16> to vector<128x128xbf16>
    %c40 = arith.constant 40 : index
    %c0_10 = arith.constant 0 : index
    %17 = vector.load %arg10[%c40, %c0_10] : memref<208x128xbf16, #tpu.memory_space<vmem>>, vector<128x128xbf16>
    tpu.vector_store %arg10[%c40, %c0_10], %16 {strides = array<i32>} : memref<208x128xbf16, #tpu.memory_space<vmem>>, vector<128x128xbf16>,
    %c1_i32 = arith.constant 1 : i32
    %18 = arith.cmpi slt, %arg1, %c1_i32 : i32
    %19 = arith.extui %18 : i1 to i32
    %c0_i32_11 = arith.constant 0 : i32
    %20 = arith.cmpi ne, %19, %c0_i32_11 : i32
    scf.if %20 {
      %c8_i32_103 = arith.constant 8 : i32
      %163 = arith.addi %0, %c8_i32_103 : i32
      %c16_i32_104 = arith.constant 16 : i32
      %164 = arith.muli %163, %c16_i32_104 : i32
      %165 = tpu.assume_multiple %164, 8 : i32
      %c0_105 = arith.constant 0 : index
      %166 = arith.index_cast %165 : i32 to index
      %c0_106 = arith.constant 0 : index
      %167 = vector.load %arg2[%c0_105, %166, %c0_106] : memref<1x256x128xbf16, #tpu.memory_space<vmem>>, vector<1x32x128xbf16>
      %168 = vector.shape_cast %167 : vector<1x32x128xbf16> to vector<32x128xbf16>
      %c168_107 = arith.constant 168 : index
      %c0_108 = arith.constant 0 : index
      %169 = vector.load %arg10[%c168_107, %c0_108] : memref<208x128xbf16, #tpu.memory_space<vmem>>, vector<32x128xbf16>
      tpu.vector_store %arg10[%c168_107, %c0_108], %168 {strides = array<i32>} : memref<208x128xbf16, #tpu.memory_space<vmem>>, vector<32x128xbf16>,
    } else {
    }
    %c1_i32_12 = arith.constant 1 : i32
    %21 = arith.cmpi eq, %arg1, %c1_i32_12 : i32
    %22 = arith.extui %21 : i1 to i32
    %c0_i32_13 = arith.constant 0 : i32
    %23 = arith.cmpi ne, %22, %c0_i32_13 : i32
    scf.if %23 {
      %cst_103 = arith.constant 0.000000e+00 : bf16
      %163 = vector.broadcast %cst_103 : bf16 to vector<32x128xbf16>
      %c168_104 = arith.constant 168 : index
      %c0_105 = arith.constant 0 : index
      %164 = vector.load %arg10[%c168_104, %c0_105] : memref<208x128xbf16, #tpu.memory_space<vmem>>, vector<32x128xbf16>
      tpu.vector_store %arg10[%c168_104, %c0_105], %163 {strides = array<i32>} : memref<208x128xbf16, #tpu.memory_space<vmem>>, vector<32x128xbf16>,
    } else {
    }
    %c7 = arith.constant 7 : index
    %c0_14 = arith.constant 0 : index
    %24 = vector.load %arg10[%c7, %c0_14] : memref<208x128xbf16, #tpu.memory_space<vmem>>, vector<192x128xbf16>
    %c8 = arith.constant 8 : index
    %c0_15 = arith.constant 0 : index
    %25 = vector.load %arg10[%c8, %c0_15] : memref<208x128xbf16, #tpu.memory_space<vmem>>, vector<192x128xbf16>
    %c9 = arith.constant 9 : index
    %c0_16 = arith.constant 0 : index
    %26 = vector.load %arg10[%c9, %c0_16] : memref<208x128xbf16, #tpu.memory_space<vmem>>, vector<192x128xbf16>
    %27 = tpu.iota {dimensions = array<i32: 0>} : vector<192x1xi32>
    %c16_i32_17 = arith.constant 16 : i32
    %c0_i32_18 = arith.constant 0 : i32
    %28 = arith.cmpi eq, %c16_i32_17, %c0_i32_18 : i32
    %c1_i32_19 = arith.constant 1 : i32
    %29 = arith.select %28, %c1_i32_19, %c16_i32_17 : i32
    %30 = vector.broadcast %29 : i32 to vector<192x1xi32>
    %31 = arith.remsi %27, %30 : vector<192x1xi32>
    %c0_i32_20 = arith.constant 0 : i32
    %32 = vector.broadcast %c0_i32_20 : i32 to vector<192x1xi32>
    %33 = arith.cmpi ne, %31, %32 : vector<192x1xi32>
    %c0_i32_21 = arith.constant 0 : i32
    %34 = vector.broadcast %c0_i32_21 : i32 to vector<192x1xi32>
    %35 = arith.cmpi slt, %31, %34 : vector<192x1xi32>
    %c0_i32_22 = arith.constant 0 : i32
    %36 = arith.cmpi slt, %29, %c0_i32_22 : i32
    %37 = vector.broadcast %36 : i1 to vector<192x1xi1>
    %38 = vector.broadcast %37 : vector<192x1xi1> to vector<192x1xi1>
    %39 = arith.xori %35, %38 : vector<192x1xi1>
    %40 = arith.andi %39, %33 : vector<192x1xi1>
    %41 = vector.broadcast %29 : i32 to vector<192x1xi32>
    %42 = arith.addi %31, %41 : vector<192x1xi32>
    %43 = arith.select %40, %42, %31 : vector<192x1xi1>, vector<192x1xi32>
    %c0_i32_23 = arith.constant 0 : i32
    %44 = vector.broadcast %c0_i32_23 : i32 to vector<192x1xi32>
    %45 = arith.cmpi ne, %43, %44 : vector<192x1xi32>
    %46 = arith.extui %45 : vector<192x1xi1> to vector<192x1xi32>
    %47 = arith.sitofp %46 : vector<192x1xi32> to vector<192x1xf32>
    %48 = arith.truncf %47 : vector<192x1xf32> to vector<192x1xbf16>
    %49 = vector.broadcast %48 : vector<192x1xbf16> to vector<192x128xbf16>
    %50 = arith.mulf %24, %49 : vector<192x128xbf16>
    %c15_i32 = arith.constant 15 : i32
    %51 = vector.broadcast %c15_i32 : i32 to vector<192x1xi32>
    %52 = arith.cmpi ne, %43, %51 : vector<192x1xi32>
    %53 = arith.extui %52 : vector<192x1xi1> to vector<192x1xi32>
    %54 = arith.sitofp %53 : vector<192x1xi32> to vector<192x1xf32>
    %55 = arith.truncf %54 : vector<192x1xf32> to vector<192x1xbf16>
    %56 = vector.broadcast %55 : vector<192x1xbf16> to vector<192x128xbf16>
    %57 = arith.mulf %26, %56 : vector<192x128xbf16>
    %c0_24 = arith.constant 0 : index
    %c0_25 = arith.constant 0 : index
    %58 = vector.load %arg12[%c0_24, %c0_25] : memref<192x384xbf16, #tpu.memory_space<vmem>>, vector<192x128xbf16>
    tpu.vector_store %arg12[%c0_24, %c0_25], %50 {strides = array<i32>} : memref<192x384xbf16, #tpu.memory_space<vmem>>, vector<192x128xbf16>,
    %c0_26 = arith.constant 0 : index
    %c128 = arith.constant 128 : index
    %59 = vector.load %arg12[%c0_26, %c128] : memref<192x384xbf16, #tpu.memory_space<vmem>>, vector<192x128xbf16>
    tpu.vector_store %arg12[%c0_26, %c128], %25 {strides = array<i32>} : memref<192x384xbf16, #tpu.memory_space<vmem>>, vector<192x128xbf16>,
    %c0_27 = arith.constant 0 : index
    %c256 = arith.constant 256 : index
    %60 = vector.load %arg12[%c0_27, %c256] : memref<192x384xbf16, #tpu.memory_space<vmem>>, vector<192x128xbf16>
    tpu.vector_store %arg12[%c0_27, %c256], %57 {strides = array<i32>} : memref<192x384xbf16, #tpu.memory_space<vmem>>, vector<192x128xbf16>,
    %cst_28 = arith.constant 0.000000e+00 : f32
    %61 = vector.broadcast %cst_28 : f32 to vector<160x128xf32>
    %c0_29 = arith.constant 0 : index
    %c0_30 = arith.constant 0 : index
    %62 = vector.load %arg12[%c0_29, %c0_30] : memref<192x384xbf16, #tpu.memory_space<vmem>>, vector<160x384xbf16>
    %c0_31 = arith.constant 0 : index
    %c0_32 = arith.constant 0 : index
    %c0_33 = arith.constant 0 : index
    %63 = vector.load %arg3[%c0_31, %c0_32, %c0_33] : memref<3x384x128xbf16, #tpu.memory_space<vmem>>, vector<1x384x128xbf16>
    %64 = vector.shape_cast %63 : vector<1x384x128xbf16> to vector<384x128xbf16>
    %cst_34 = arith.constant dense<0.000000e+00> : vector<160x128xf32>
    %65 = tpu.matmul %62, %64, %cst_34 {dimension_numbers = #tpu.dot_dimension_numbers<[1], [0], [0], [1], [0, 0, 1, 1], [], []>} : vector<160x384xbf16>, vector<384x128xbf16>, vector<160x128xf32> -> vector<160x128xf32>
    %66 = arith.addf %61, %65 : vector<160x128xf32>
    %c16 = arith.constant 16 : index
    %c0_35 = arith.constant 0 : index
    %67 = vector.load %arg12[%c16, %c0_35] : memref<192x384xbf16, #tpu.memory_space<vmem>>, vector<160x384xbf16>
    %c1 = arith.constant 1 : index
    %c0_36 = arith.constant 0 : index
    %c0_37 = arith.constant 0 : index
    %68 = vector.load %arg3[%c1, %c0_36, %c0_37] : memref<3x384x128xbf16, #tpu.memory_space<vmem>>, vector<1x384x128xbf16>
    %69 = vector.shape_cast %68 : vector<1x384x128xbf16> to vector<384x128xbf16>
    %cst_38 = arith.constant dense<0.000000e+00> : vector<160x128xf32>
    %70 = tpu.matmul %67, %69, %cst_38 {dimension_numbers = #tpu.dot_dimension_numbers<[1], [0], [0], [1], [0, 0, 1, 1], [], []>} : vector<160x384xbf16>, vector<384x128xbf16>, vector<160x128xf32> -> vector<160x128xf32>
    %71 = arith.addf %66, %70 : vector<160x128xf32>
    %c32 = arith.constant 32 : index
    %c0_39 = arith.constant 0 : index
    %72 = vector.load %arg12[%c32, %c0_39] : memref<192x384xbf16, #tpu.memory_space<vmem>>, vector<160x384xbf16>
    %c2 = arith.constant 2 : index
    %c0_40 = arith.constant 0 : index
    %c0_41 = arith.constant 0 : index
    %73 = vector.load %arg3[%c2, %c0_40, %c0_41] : memref<3x384x128xbf16, #tpu.memory_space<vmem>>, vector<1x384x128xbf16>
    %74 = vector.shape_cast %73 : vector<1x384x128xbf16> to vector<384x128xbf16>
    %cst_42 = arith.constant dense<0.000000e+00> : vector<160x128xf32>
    %75 = tpu.matmul %72, %74, %cst_42 {dimension_numbers = #tpu.dot_dimension_numbers<[1], [0], [0], [1], [0, 0, 1, 1], [], []>} : vector<160x384xbf16>, vector<384x128xbf16>, vector<160x128xf32> -> vector<160x128xf32>
    %76 = arith.addf %71, %75 : vector<160x128xf32>
    %c0_43 = arith.constant 0 : index
    %c0_44 = arith.constant 0 : index
    %77 = vector.load %arg5[%c0_43, %c0_44] : memref<1x128xf32, #tpu.memory_space<vmem>>, vector<1x128xf32>
    %78 = vector.broadcast %77 : vector<1x128xf32> to vector<160x128xf32>
    %79 = arith.mulf %76, %78 : vector<160x128xf32>
    %c0_45 = arith.constant 0 : index
    %c0_46 = arith.constant 0 : index
    %80 = vector.load %arg6[%c0_45, %c0_46] : memref<1x128xf32, #tpu.memory_space<vmem>>, vector<1x128xf32>
    %81 = vector.broadcast %80 : vector<1x128xf32> to vector<160x128xf32>
    %82 = arith.addf %79, %81 : vector<160x128xf32>
    %cst_47 = arith.constant 0.000000e+00 : f32
    %83 = vector.broadcast %cst_47 : f32 to vector<160x128xf32>
    %84 = arith.maximumf %82, %83 : vector<160x128xf32>
    %85 = arith.truncf %84 : vector<160x128xf32> to vector<160x128xbf16>
    %c8_48 = arith.constant 8 : index
    %c0_49 = arith.constant 0 : index
    %86 = vector.load %arg11[%c8_48, %c0_49] : memref<176x128xbf16, #tpu.memory_space<vmem>>, vector<160x128xbf16>
    tpu.vector_store %arg11[%c8_48, %c0_49], %85 {strides = array<i32>} : memref<176x128xbf16, #tpu.memory_space<vmem>>, vector<160x128xbf16>,
    %c0_i32_50 = arith.constant 0 : i32
    %87 = arith.cmpi eq, %arg1, %c0_i32_50 : i32
    %88 = arith.extui %87 : i1 to i32
    %c0_i32_51 = arith.constant 0 : i32
    %89 = arith.cmpi ne, %88, %c0_i32_51 : i32
    scf.if %89 {
      %cst_103 = arith.constant 0.000000e+00 : bf16
      %163 = vector.broadcast %cst_103 : bf16 to vector<16x128xbf16>
      %c8_104 = arith.constant 8 : index
      %c0_105 = arith.constant 0 : index
      %164 = vector.load %arg11[%c8_104, %c0_105] : memref<176x128xbf16, #tpu.memory_space<vmem>>, vector<16x128xbf16>
      tpu.vector_store %arg11[%c8_104, %c0_105], %163 {strides = array<i32>} : memref<176x128xbf16, #tpu.memory_space<vmem>>, vector<16x128xbf16>,
    } else {
    }
    %c1_i32_52 = arith.constant 1 : i32
    %90 = arith.cmpi eq, %arg1, %c1_i32_52 : i32
    %91 = arith.extui %90 : i1 to i32
    %c0_i32_53 = arith.constant 0 : i32
    %92 = arith.cmpi ne, %91, %c0_i32_53 : i32
    scf.if %92 {
      %cst_103 = arith.constant 0.000000e+00 : bf16
      %163 = vector.broadcast %cst_103 : bf16 to vector<16x128xbf16>
      %c152 = arith.constant 152 : index
      %c0_104 = arith.constant 0 : index
      %164 = vector.load %arg11[%c152, %c0_104] : memref<176x128xbf16, #tpu.memory_space<vmem>>, vector<16x128xbf16>
      tpu.vector_store %arg11[%c152, %c0_104], %163 {strides = array<i32>} : memref<176x128xbf16, #tpu.memory_space<vmem>>, vector<16x128xbf16>,
    } else {
    }
    %c7_54 = arith.constant 7 : index
    %c0_55 = arith.constant 0 : index
    %93 = vector.load %arg11[%c7_54, %c0_55] : memref<176x128xbf16, #tpu.memory_space<vmem>>, vector<160x128xbf16>
    %c8_56 = arith.constant 8 : index
    %c0_57 = arith.constant 0 : index
    %94 = vector.load %arg11[%c8_56, %c0_57] : memref<176x128xbf16, #tpu.memory_space<vmem>>, vector<160x128xbf16>
    %c9_58 = arith.constant 9 : index
    %c0_59 = arith.constant 0 : index
    %95 = vector.load %arg11[%c9_58, %c0_59] : memref<176x128xbf16, #tpu.memory_space<vmem>>, vector<160x128xbf16>
    %96 = tpu.iota {dimensions = array<i32: 0>} : vector<160x1xi32>
    %c16_i32_60 = arith.constant 16 : i32
    %c0_i32_61 = arith.constant 0 : i32
    %97 = arith.cmpi eq, %c16_i32_60, %c0_i32_61 : i32
    %c1_i32_62 = arith.constant 1 : i32
    %98 = arith.select %97, %c1_i32_62, %c16_i32_60 : i32
    %99 = vector.broadcast %98 : i32 to vector<160x1xi32>
    %100 = arith.remsi %96, %99 : vector<160x1xi32>
    %c0_i32_63 = arith.constant 0 : i32
    %101 = vector.broadcast %c0_i32_63 : i32 to vector<160x1xi32>
    %102 = arith.cmpi ne, %100, %101 : vector<160x1xi32>
    %c0_i32_64 = arith.constant 0 : i32
    %103 = vector.broadcast %c0_i32_64 : i32 to vector<160x1xi32>
    %104 = arith.cmpi slt, %100, %103 : vector<160x1xi32>
    %c0_i32_65 = arith.constant 0 : i32
    %105 = arith.cmpi slt, %98, %c0_i32_65 : i32
    %106 = vector.broadcast %105 : i1 to vector<160x1xi1>
    %107 = vector.broadcast %106 : vector<160x1xi1> to vector<160x1xi1>
    %108 = arith.xori %104, %107 : vector<160x1xi1>
    %109 = arith.andi %108, %102 : vector<160x1xi1>
    %110 = vector.broadcast %98 : i32 to vector<160x1xi32>
    %111 = arith.addi %100, %110 : vector<160x1xi32>
    %112 = arith.select %109, %111, %100 : vector<160x1xi1>, vector<160x1xi32>
    %c0_i32_66 = arith.constant 0 : i32
    %113 = vector.broadcast %c0_i32_66 : i32 to vector<160x1xi32>
    %114 = arith.cmpi ne, %112, %113 : vector<160x1xi32>
    %115 = arith.extui %114 : vector<160x1xi1> to vector<160x1xi32>
    %116 = arith.sitofp %115 : vector<160x1xi32> to vector<160x1xf32>
    %117 = arith.truncf %116 : vector<160x1xf32> to vector<160x1xbf16>
    %118 = vector.broadcast %117 : vector<160x1xbf16> to vector<160x128xbf16>
    %119 = arith.mulf %93, %118 : vector<160x128xbf16>
    %c15_i32_67 = arith.constant 15 : i32
    %120 = vector.broadcast %c15_i32_67 : i32 to vector<160x1xi32>
    %121 = arith.cmpi ne, %112, %120 : vector<160x1xi32>
    %122 = arith.extui %121 : vector<160x1xi1> to vector<160x1xi32>
    %123 = arith.sitofp %122 : vector<160x1xi32> to vector<160x1xf32>
    %124 = arith.truncf %123 : vector<160x1xf32> to vector<160x1xbf16>
    %125 = vector.broadcast %124 : vector<160x1xbf16> to vector<160x128xbf16>
    %126 = arith.mulf %95, %125 : vector<160x128xbf16>
    %c0_68 = arith.constant 0 : index
    %c0_69 = arith.constant 0 : index
    %127 = vector.load %arg12[%c0_68, %c0_69] : memref<192x384xbf16, #tpu.memory_space<vmem>>, vector<160x128xbf16>
    tpu.vector_store %arg12[%c0_68, %c0_69], %119 {strides = array<i32>} : memref<192x384xbf16, #tpu.memory_space<vmem>>, vector<160x128xbf16>,
    %c0_70 = arith.constant 0 : index
    %c128_71 = arith.constant 128 : index
    %128 = vector.load %arg12[%c0_70, %c128_71] : memref<192x384xbf16, #tpu.memory_space<vmem>>, vector<160x128xbf16>
    tpu.vector_store %arg12[%c0_70, %c128_71], %94 {strides = array<i32>} : memref<192x384xbf16, #tpu.memory_space<vmem>>, vector<160x128xbf16>,
    %c0_72 = arith.constant 0 : index
    %c256_73 = arith.constant 256 : index
    %129 = vector.load %arg12[%c0_72, %c256_73] : memref<192x384xbf16, #tpu.memory_space<vmem>>, vector<160x128xbf16>
    tpu.vector_store %arg12[%c0_72, %c256_73], %126 {strides = array<i32>} : memref<192x384xbf16, #tpu.memory_space<vmem>>, vector<160x128xbf16>,
    %cst_74 = arith.constant 0.000000e+00 : f32
    %130 = vector.broadcast %cst_74 : f32 to vector<128x128xf32>
    %c0_75 = arith.constant 0 : index
    %c0_76 = arith.constant 0 : index
    %131 = vector.load %arg12[%c0_75, %c0_76] : memref<192x384xbf16, #tpu.memory_space<vmem>>, vector<128x384xbf16>
    %c0_77 = arith.constant 0 : index
    %c0_78 = arith.constant 0 : index
    %c0_79 = arith.constant 0 : index
    %132 = vector.load %arg4[%c0_77, %c0_78, %c0_79] : memref<3x384x128xbf16, #tpu.memory_space<vmem>>, vector<1x384x128xbf16>
    %133 = vector.shape_cast %132 : vector<1x384x128xbf16> to vector<384x128xbf16>
    %cst_80 = arith.constant dense<0.000000e+00> : vector<128x128xf32>
    %134 = tpu.matmul %131, %133, %cst_80 {dimension_numbers = #tpu.dot_dimension_numbers<[1], [0], [0], [1], [0, 0, 1, 1], [], []>} : vector<128x384xbf16>, vector<384x128xbf16>, vector<128x128xf32> -> vector<128x128xf32>
    %135 = arith.addf %130, %134 : vector<128x128xf32>
    %c16_81 = arith.constant 16 : index
    %c0_82 = arith.constant 0 : index
    %136 = vector.load %arg12[%c16_81, %c0_82] : memref<192x384xbf16, #tpu.memory_space<vmem>>, vector<128x384xbf16>
    %c1_83 = arith.constant 1 : index
    %c0_84 = arith.constant 0 : index
    %c0_85 = arith.constant 0 : index
    %137 = vector.load %arg4[%c1_83, %c0_84, %c0_85] : memref<3x384x128xbf16, #tpu.memory_space<vmem>>, vector<1x384x128xbf16>
    %138 = vector.shape_cast %137 : vector<1x384x128xbf16> to vector<384x128xbf16>
    %cst_86 = arith.constant dense<0.000000e+00> : vector<128x128xf32>
    %139 = tpu.matmul %136, %138, %cst_86 {dimension_numbers = #tpu.dot_dimension_numbers<[1], [0], [0], [1], [0, 0, 1, 1], [], []>} : vector<128x384xbf16>, vector<384x128xbf16>, vector<128x128xf32> -> vector<128x128xf32>
    %140 = arith.addf %135, %139 : vector<128x128xf32>
    %c32_87 = arith.constant 32 : index
    %c0_88 = arith.constant 0 : index
    %141 = vector.load %arg12[%c32_87, %c0_88] : memref<192x384xbf16, #tpu.memory_space<vmem>>, vector<128x384xbf16>
    %c2_89 = arith.constant 2 : index
    %c0_90 = arith.constant 0 : index
    %c0_91 = arith.constant 0 : index
    %142 = vector.load %arg4[%c2_89, %c0_90, %c0_91] : memref<3x384x128xbf16, #tpu.memory_space<vmem>>, vector<1x384x128xbf16>
    %143 = vector.shape_cast %142 : vector<1x384x128xbf16> to vector<384x128xbf16>
    %cst_92 = arith.constant dense<0.000000e+00> : vector<128x128xf32>
    %144 = tpu.matmul %141, %143, %cst_92 {dimension_numbers = #tpu.dot_dimension_numbers<[1], [0], [0], [1], [0, 0, 1, 1], [], []>} : vector<128x384xbf16>, vector<384x128xbf16>, vector<128x128xf32> -> vector<128x128xf32>
    %145 = arith.addf %140, %144 : vector<128x128xf32>
    %c0_93 = arith.constant 0 : index
    %c0_94 = arith.constant 0 : index
    %146 = vector.load %arg7[%c0_93, %c0_94] : memref<1x128xf32, #tpu.memory_space<vmem>>, vector<1x128xf32>
    %147 = vector.broadcast %146 : vector<1x128xf32> to vector<128x128xf32>
    %148 = arith.mulf %145, %147 : vector<128x128xf32>
    %c0_95 = arith.constant 0 : index
    %c0_96 = arith.constant 0 : index
    %149 = vector.load %arg8[%c0_95, %c0_96] : memref<1x128xf32, #tpu.memory_space<vmem>>, vector<1x128xf32>
    %150 = vector.broadcast %149 : vector<1x128xf32> to vector<128x128xf32>
    %151 = arith.addf %148, %150 : vector<128x128xf32>
    %c0_97 = arith.constant 0 : index
    %152 = arith.index_cast %7 : i32 to index
    %c0_98 = arith.constant 0 : index
    %153 = vector.load %arg2[%c0_97, %152, %c0_98] : memref<1x256x128xbf16, #tpu.memory_space<vmem>>, vector<1x128x128xbf16>
    %154 = vector.shape_cast %153 : vector<1x128x128xbf16> to vector<128x128xbf16>
    %155 = arith.extf %154 : vector<128x128xbf16> to vector<128x128xf32>
    %156 = arith.addf %151, %155 : vector<128x128xf32>
    %cst_99 = arith.constant 0.000000e+00 : f32
    %157 = vector.broadcast %cst_99 : f32 to vector<128x128xf32>
    %158 = arith.maximumf %156, %157 : vector<128x128xf32>
    %159 = arith.truncf %158 : vector<128x128xf32> to vector<128x128xbf16>
    %c0_100 = arith.constant 0 : index
    %c0_101 = arith.constant 0 : index
    %c0_102 = arith.constant 0 : index
    %160 = vector.load %arg9[%c0_100, %c0_101, %c0_102] : memref<1x128x128xbf16, #tpu.memory_space<vmem>>, vector<1x128x128xbf16>
    %161 = vector.shape_cast %160 : vector<1x128x128xbf16> to vector<128x128xbf16>
    %162 = vector.shape_cast %159 : vector<128x128xbf16> to vector<1x128x128xbf16>
    tpu.vector_store %arg9[%c0_100, %c0_101, %c0_102], %162 {strides = array<i32>} : memref<1x128x128xbf16, #tpu.memory_space<vmem>>, vector<1x128x128xbf16>,
    return
  }
  func.func @transform_0(%arg0: i32, %arg1: i32) -> (i32, i32, i32) {
    %c0_i32 = arith.constant 0 : i32
    %c0_i32_0 = arith.constant 0 : i32
    %c0_i32_1 = arith.constant 0 : i32
    return %arg0, %c0_i32, %c0_i32_0 : i32, i32, i32
  }
  func.func @transform_1(%arg0: i32, %arg1: i32) -> (i32, i32, i32) {
    %c0_i32 = arith.constant 0 : i32
    %c0_i32_0 = arith.constant 0 : i32
    %c0_i32_1 = arith.constant 0 : i32
    %c0_i32_2 = arith.constant 0 : i32
    return %c0_i32, %c0_i32_0, %c0_i32_1 : i32, i32, i32
  }
  func.func @transform_2(%arg0: i32, %arg1: i32) -> (i32, i32, i32) {
    %c0_i32 = arith.constant 0 : i32
    %c0_i32_0 = arith.constant 0 : i32
    %c0_i32_1 = arith.constant 0 : i32
    %c0_i32_2 = arith.constant 0 : i32
    return %c0_i32, %c0_i32_0, %c0_i32_1 : i32, i32, i32
  }
  func.func @transform_3(%arg0: i32, %arg1: i32) -> (i32, i32) {
    %c0_i32 = arith.constant 0 : i32
    %c0_i32_0 = arith.constant 0 : i32
    %c0_i32_1 = arith.constant 0 : i32
    return %c0_i32, %c0_i32_0 : i32, i32
  }
  func.func @transform_4(%arg0: i32, %arg1: i32) -> (i32, i32) {
    %c0_i32 = arith.constant 0 : i32
    %c0_i32_0 = arith.constant 0 : i32
    %c0_i32_1 = arith.constant 0 : i32
    return %c0_i32, %c0_i32_0 : i32, i32
  }
  func.func @transform_5(%arg0: i32, %arg1: i32) -> (i32, i32) {
    %c0_i32 = arith.constant 0 : i32
    %c0_i32_0 = arith.constant 0 : i32
    %c0_i32_1 = arith.constant 0 : i32
    return %c0_i32, %c0_i32_0 : i32, i32
  }
  func.func @transform_6(%arg0: i32, %arg1: i32) -> (i32, i32) {
    %c0_i32 = arith.constant 0 : i32
    %c0_i32_0 = arith.constant 0 : i32
    %c0_i32_1 = arith.constant 0 : i32
    return %c0_i32, %c0_i32_0 : i32, i32
  }
  func.func @transform_7(%arg0: i32, %arg1: i32) -> (i32, i32, i32) {
    %c0_i32 = arith.constant 0 : i32
    %c0_i32_0 = arith.constant 0 : i32
    return %arg0, %arg1, %c0_i32 : i32, i32, i32
  }
}

</mosaic_0001>

<bundles_post_ra>
// kernel: residual_block_packed.1
= control target key start
LH: loop header
LB: loop body
LE: loop exit
PB: predicated region body
PF: predicated region fallthrough
CT: control target
= control target key end

     0   :  { %s9781_s0 = inlined_call_operand.hbm [shape: bf16[2,256,128], index: 0, kind: input, shape index: {}]   ;;  %s9782_s1 = inlined_call_operand.hbm [shape: bf16[3,384,128], index: 1, kind: input, shape index: {}]   ;;  %s9783_s2 = inlined_call_operand.hbm [shape: bf16[3,384,128], index: 2, kind: input, shape index: {}]   ;;  %s9784_s3 = inlined_call_operand.vmem [shape: f32[1,128], index: 3, kind: input, shape index: {}]   ;;  %s9785_s4 = inlined_call_operand.vmem [shape: f32[1,128], index: 4, kind: input, shape index: {}]   ;;  %s9786_s5 = inlined_call_operand.vmem [shape: f32[1,128], index: 5, kind: input, shape index: {}]   ;;  %s9787_s6 = inlined_call_operand.vmem [shape: f32[1,128], index: 6, kind: input, shape index: {}]   ;;  %s9788_s7 = inlined_call_operand.hbm [shape: bf16[2,256,128], index: 7, kind: output, shape index: {}]  }
   0x1   :  { %9858 = sst [smem:[#allocation71_spill]] %s9782_s1 }
   0x2   :  { %9859 = sst [smem:[#allocation72_spill]] %s9783_s2 }
   0x3   :  { %9860 = sst [smem:[#allocation73_spill]] %s9786_s5 }
   0x4   :  { %9861 = sst [smem:[#allocation74_spill]] %s9787_s6 }
   0x5   :  { %9862 = sst [smem:[#allocation75_spill]] %s9788_s7 }
   0x6   :  { %12 = vsyncpa [#allocation6], 0 }
   0x7   :  { %14 = vsyncpa [#allocation6 + $0x1], 0 }
   0x8   :  { %15 = vsyncpa [#allocation9], 0 }
   0x9   :  { %16 = vsyncpa [#allocation7], 0 }
   0xa   :  { %18 = vsyncpa [#allocation7 + $0x1], 0  ;;  %s7966_s24 = smov 0   ;;  %s7968_s25 = smov 0  }
   0xb   :  { %s7970_s26 = smov 0   ;;  %s7972_s27 = smov 0  }
   0xc   :  { %s7974_s28 = smov 0   ;;  %s7976_s29 = smov 0  }
   0xd   :  { %s7978_s30 = smov 0   ;;  %s7980_s8 = smov 0  }
   0xe   :  { %s7982_s9 = smov 0   ;;  %s7984_s10 = smov 0  }
   0xf   :  { %s7986_s11 = smov 0  }
  0x10 LB: > { %9863 = sst [smem:[#allocation15_spill]] %s7871_s24  ;;  %s5945_s12 = sadd.s32 4294967295, %s7911_s11   ;;  %s7911_s11 = sphi %s7986_s11, %s24_s11   ;;  %s7907_s10 = sphi %s7984_s10, %s10034_s10   ;;  %s7903_s9 = sphi %s7982_s9, %s10025_s9   ;;  %s7899_s8 = sphi %s7980_s8, %s10033_s8   ;;  %s7895_s30 = sphi %s7978_s30, %s10024_s30   ;;  %s7891_s29 = sphi %s7976_s29, %s10032_s29   ;;  %s7887_s28 = sphi %s7974_s28, %s10031_s28   ;;  %s7883_s27 = sphi %s7972_s27, %s10030_s27   ;;  %s7879_s26 = sphi %s7970_s26, %s10029_s26   ;;  %s7875_s25 = sphi %s7968_s25, %s10028_s25   ;;  %s7871_s24 = sphi %s7966_s24, %s10027_s24  }
  0x11   : > { %9864 = sst [smem:[#allocation16_spill]] %s7899_s8  ;;  %s5946_s13 = sadd.s32 4294967294, %s7911_s11  }
  0x12   : > { %9865 = sst [smem:[#allocation17_spill]] %s7903_s9  ;;  %p56_p0 = scmp.ne.s32.totalorder %s7887_s28, %s7883_s27 }
  0x13   : > { %p8022_p1 = scmp.eq.s32.totalorder %s5945_s12, 0  ;;  %p207_p2 = scmp.ne.s32.totalorder %s7879_s26, %s7875_s25 }
  0x14   : > { %p208_p3 = scmp.eq.s32.totalorder %s5945_s12, 3  ;;  %p213_p5 = scmp.ne.s32.totalorder %s7875_s25, %s7871_s24 }
  0x15   : > { %p8030_p4 = por %p8022_p1, %p56_p0  ;;  %p214_p7 = scmp.eq.s32.totalorder %s5946_s13, 3 }
  0x16   : > { %p8036_p6 = por %p208_p3, %p207_p2  ;;  %p5947_p8 = scmp.ge.s32.totalorder %s7911_s11, 1 }
  0x17   : > { %p221_p9 = scmp.lt.s32.totalorder %s7911_s11, 5  ;;  %p8042_p10 = por %p214_p7, %p213_p5 }
  0x18   : > { %s9868_s16 = scalar_select %p8036_p6, 1, 0 }
  0x19   : > { %s9870_s17 = scalar_select %p8042_p10, 1, 0 }
  0x1a   : > { %9869 = sst [smem:[#allocation18_spill]] %s9868_s16  ;;  %p8046_p11 = pnand %p5947_p8, %p221_p9 }
  0x1b   : > { %9871 = sst [smem:[#allocation19_spill]] %s9870_s17  ;;  %s7913_s22 = smov [#allocation8]  }
  0x1c   : > { %s9873_s1 = sld [smem:[#allocation71_spill]]  ;;  %p7567_p12 = pneg %p8046_p11 }
  0x1d   : > { %s234_s23 = sshll.u32 %s7913_s22, 4  ;;  %s9874_s2 = sld [smem:[#allocation72_spill]]  ;;  %s235_s23 = int_to_ptr.vmem [resolvable:$true] %s234_s23 }
  0x1e   : > { %p7568_p13 = pnand %p7567_p12, %p8022_p1  ;;  %s9789_s19 = smov 64  }
  0x1f   : > { %s9790_s20 = smov 4   ;;  %s7916_s22 = smov [#allocation10]  }
  0x20   : > { %s33_s27 = sadd.s32 1, %s7903_s9  ;;  %s36_s12 = sadd.s32 1, %s7907_s10 }
  0x21   : > { %p34_p0 = scmp.ge.s32.totalorder %s33_s27, 2  ;;  %p50_p2 = scmp.ne.s32.totalorder %s7891_s29, %s7887_s28 }
  0x22   : > { %s232_s21 = sshll.u32 %s9873_s1, 4  ;;  %s248_s1 = sshll.u32 %s7916_s22, 4  ;;  %s233_s21 = int_to_ptr.hbm [resolvable:$true] %s232_s21  ;;  %s249_s1 = int_to_ptr.vmem [resolvable:$true] %s248_s1 }
  0x23   : > { %s246_s13 = sshll.u32 %s9874_s2, 4  ;;  %s10036_s27 = smov (%p34_p0, %s33_s27), 0  ;;  %s247_s13 = int_to_ptr.hbm [resolvable:$true] %s246_s13 }
  0x24   : > { %7570 = dma.hbm_to_vmem [thread:$0]  (!%p7568_p13), %s233_s21, 9216, %s235_s23, [#allocation9], %s9789_s19, %s9789_s19, %s9790_s20  }
  0x25   : > { %7573 = dma.hbm_to_vmem [thread:$0]  (!%p7568_p13), %s247_s13, 9216, %s249_s1, [#allocation9], %s9789_s19, %s9789_s19, %s9790_s20  }
  0x26   : > { %9875 = sst [smem:[#allocation20_spill]] %s10036_s27  ;;  %s10038_s12 = smov (!%p34_p0, %s36_s12), %s7907_s10 }
  0x27   : > { %s43_s21 = sadd.s32 1, %s7891_s29  ;;  %p51_p3 = scmp.eq.s32.totalorder %s7911_s11, 0 }
  0x28   : > { %p38_p5 = scmp.ge.s32.totalorder %s10038_s12, 2  ;;  %s193_s23 = ssub.s32 %s7903_s9, %s10036_s27 }
  0x29   : > { %p8077_p7 = por %p51_p3, %p50_p2  ;;  %s197_s1 = sadd.s32 1, %s7879_s26 }
  0x2a   : > { %s10040_s12 = smov (%p38_p5, %s10038_s12), 0  ;;  %p7584_p8 = scmp.lt.s32.totalorder %s7911_s11, 4 }
  0x2b   : > { %9877 = sst [smem:[#allocation21_spill]] %s10040_s12  ;;  %s274_s13 = sand.u32 1, %s7891_s29  }
  0x2c   : > { %s40_s19 = ssub.s32 %s7907_s10, %s10040_s12  ;;  %s7037_s20 = sshll.u32 %s7907_s10, 7 }
  0x2d   : > { %p41_p9 = scmp.eq.s32.totalorder %s40_s19, 0  ;;  %s194_s2 = sor.u32 %s193_s23, %s40_s19 }
  0x2e   : > { %p195_p12 = scmp.eq.s32.totalorder %s194_s2, 0  ;;  %s5951_s17 = sshll.u32 %s274_s13, 7 }
  0x2f   : > { %s8090_s24 = scalar_select %p41_p9, %s7891_s29, %s43_s21  }
  0x30   : > { %s8093_s27 = scalar_select %p195_p12, %s7879_s26, %s197_s1  }
  0x31   : > { %s283_s7 = scalar_lea.hbm %s9781_s0, %s7037_s20  ;;  %s278_s6 = scalar_lea.vmem [#allocation5], %s5951_s17 }
  0x32   : > { %s284_s8 = sshll.u32 %s283_s7, 4  ;;  %s286_s5 = sshll.u32 %s278_s6, 4  ;;  %s285_s8 = int_to_ptr.hbm [resolvable:$true] %s284_s8  ;;  %s287_s5 = int_to_ptr.vmem [resolvable:$true] %s286_s5 }
  0x33   : > { %p7575_p13 = pnand %p7584_p8, %p8077_p7  ;;  %s275_s12 = scalar_lea.sflag [#allocation6], %s274_s13 }
  0x34   : > { %s9878_s19 = smov 4   ;;  %s9879_s2 = smov 64  }
  0x35   : > { %7577 = dma.hbm_to_vmem [thread:$0]  (!%p7575_p13), %s285_s8, 2048, %s287_s5, %s275_s12, %s9879_s2, %s9879_s2, %s9878_s19  }
  0x36   : > { %298 = sbr.rel (%p8046_p11) target bundleno = 1381 (0x565), region = 48 }
  0x3b   : > { %s300_s9 = sand.u32 1, %s7887_s28  }
  0x3c   : > { %s5955_s16 = sshll.u32 %s300_s9, 7  ;;  %s301_s7 = scalar_lea.sflag [#allocation6], %s300_s9 }
  0x3d   : > { %s8108_s17 = scalar_lea.vmem [#allocation5], %s5955_s16 }
  0x3e   : > { %7858 = dma.done.wait (%p8030_p4), %s301_s7, 2048  }
  0x3f   : > { %7860 = vsyncadd (%p8030_p4), %s301_s7, 4294965248 }
  0x40   : > { %7862 = dma.done.wait (%p8022_p1), [#allocation9], 18432  }
  0x41   : > { %7864 = vsyncadd (%p8022_p1), [#allocation9], 4294948864  ;;  %s343_s5 = sand.u32 1, %s7875_s25   ;;  %s5959_s6 = sshll.u32 %s7895_s30, 3  ;;  %v7917_v0 = vmov 0  }
  0x42   : > { %s5958_s8 = sshll.u32 %s343_s5, 6  ;;  %349 = vst [vmem:[#allocation2] sm:$0xf] %v7917_v0  ;;  %s5960_s18 = sshll.u32 %s7895_s30, 7 }
  0x43   : > { %350 = vst [vmem:[#allocation2 + $0x64] sm:$0xf] %v7917_v0  ;;  %s8123_s15 = scalar_lea.vmem [#allocation11], %s5958_s8  ;;  %p5961_p4 = scmp.le.s32.totalorder %s7895_s30, 0 }
  0x44   : > { %351 = vst [vmem:[#allocation3] sm:$0xf] %v7917_v0  ;;  %s5962_s14 = sadd.s32 (!%p5961_p4), 4294967294, %s5959_s6 }
  0x45   : > { %352 = vst [vmem:[#allocation3 + $0x54] sm:$0xf] %v7917_v0  ;;  %357 = sbr.rel (%p5961_p4) target bundleno = 77 (0x4d), region = 64  ;;  %s5963_s20 = sshll.u32 (!%p5961_p4), %s5962_s14, 4 }
  0x46   : > { %s360_s12 = sshra.s32 (!%p5961_p4), %s5963_s20, 3 }
  0x47   : > { %s5964_s21 = sshll.u32 (!%p5961_p4), %s360_s12, 2 }
  0x48   : > { %s363_s23 = scalar_lea.vmem (!%p5961_p4), %s8108_s17, %s5964_s21 [#allocation5] }
  0x4a   : > { %v364_v1 = vld [vmem:[%s363_s23] sm:$0xff]   ;;  %v366_v2 = vld [vmem:[%s363_s23 + $0x8] sm:$0xff]  }
  0x4b   : > { %368 = vst [vmem:[#allocation2 + $0x4] sm:$0xff] %v364_v1  }
  0x4c   : > { %370 = vst [vmem:[#allocation2 + $0xc] sm:$0xff] %v366_v2  }
  0x4d PF: > { %p5965_p1 = scmp.ne.s32.totalorder %s7895_s30, 0 }
  0x4f   : > { %375 = sbr.rel (%p5965_p1) target bundleno = 89 (0x59), region = 68 }
  0x54   : > { %v7918_v3 = vmov 0  }
  0x55   : > { %376 = vst [vmem:[#allocation2 + $0x4] sm:$0xf] %v7918_v3 }
  0x56   : > { %377 = vst [vmem:[#allocation2 + $0x8] sm:$0xf] %v7918_v3 }
  0x57   : > { %378 = vst [vmem:[#allocation2 + $0xc] sm:$0xf] %v7918_v3 }
  0x58   : > { %379 = vst [vmem:[#allocation2 + $0x10] sm:$0xf] %v7918_v3 }
  0x59 PF: > { %s380_s22 = sshra.s32 %s5960_s18, 3  ;;  %p5967_p11 = scmp.ge.s32.totalorder %s7895_s30, 1 }
  0x5a   : > { %s5966_s1 = sshll.u32 %s380_s22, 2  ;;  %s7039_s19 = sadd.s32 (!%p5967_p11), 128, %s5960_s18 }
  0x5b   : > { %s8133_s13 = scalar_lea.vmem %s8108_s17, %s5966_s1 [#allocation5]  ;;  %s422_s2 = sshra.s32 (!%p5967_p11), %s7039_s19, 3 }
  0x5c   : > { %v384_v4 = vld [vmem:[%s8133_s13] sm:$0xff]   ;;  %v386_v5 = vld [vmem:[%s8133_s13 + $0x8] sm:$0xff]   ;;  %v388_v6 = vld [vmem:[%s8133_s13 + $0x10] sm:$0xff]   ;;  %s5969_s9 = sshll.u32 (!%p5967_p11), %s422_s2, 2 }
  0x5d   : > { %400 = vst [vmem:[#allocation2 + $0x14] sm:$0xff] %v384_v4   ;;  %v390_v7 = vld [vmem:[%s8133_s13 + $0x18] sm:$0xff]   ;;  %v392_v8 = vld [vmem:[%s8133_s13 + $0x20] sm:$0xff]   ;;  %v394_v9 = vld [vmem:[%s8133_s13 + $0x28] sm:$0xff]   ;;  %s425_s16 = scalar_lea.vmem (!%p5967_p11), %s8108_s17, %s5969_s9 [#allocation5] }
  0x5e   : > { %402 = vst [vmem:[#allocation2 + $0x1c] sm:$0xff] %v386_v5   ;;  %v396_v10 = vld [vmem:[%s8133_s13 + $0x30] sm:$0xff]   ;;  %v398_v11 = vld [vmem:[%s8133_s13 + $0x38] sm:$0xff]  }
  0x5f   : > { %404 = vst [vmem:[#allocation2 + $0x24] sm:$0xff] %v388_v6  }
  0x60   : > { %406 = vst [vmem:[#allocation2 + $0x2c] sm:$0xff] %v390_v7   ;;  %419 = sbr.rel (%p5967_p11) target bundleno = 104 (0x68), region = 72 }
  0x61   : > { %408 = vst [vmem:[#allocation2 + $0x34] sm:$0xff] %v392_v8  }
  0x62   : > { %410 = vst [vmem:[#allocation2 + $0x3c] sm:$0xff] %v394_v9  }
  0x63   : > { %412 = vst [vmem:[#allocation2 + $0x44] sm:$0xff] %v396_v10  }
  0x64   : > { %414 = vst [vmem:[#allocation2 + $0x4c] sm:$0xff] %v398_v11  }
  0x65   : > { %v426_v12 = vld [vmem:[%s425_s16] sm:$0xff]   ;;  %v428_v13 = vld [vmem:[%s425_s16 + $0x8] sm:$0xff]  }
  0x66   : > { %430 = vst [vmem:[#allocation2 + $0x54] sm:$0xff] %v426_v12  }
  0x67   : > { %432 = vst [vmem:[#allocation2 + $0x5c] sm:$0xff] %v428_v13  }
  0x68 PF: > { %p5970_p0 = scmp.ne.s32.totalorder %s7895_s30, 1 }
  0x6a   : > { %437 = sbr.rel (%p5970_p0) target bundleno = 116 (0x74), region = 76 }
  0x6f   : > { %v7919_v14 = vmov 0  }
  0x70   : > { %438 = vst [vmem:[#allocation2 + $0x54] sm:$0xf] %v7919_v14 }
  0x71   : > { %439 = vst [vmem:[#allocation2 + $0x58] sm:$0xf] %v7919_v14 }
  0x72   : > { %440 = vst [vmem:[#allocation2 + $0x5c] sm:$0xf] %v7919_v14 }
  0x73   : > { %441 = vst [vmem:[#allocation2 + $0x60] sm:$0xf] %v7919_v14 }
  0x74 PF: > { %v7104_v15 = vld [vmem:[#allocation8 + $0xf8] sm:$0xff]  ;;  %v492_v17 = vlaneseq  ;;  %v7920_v18 = vmov 1.0|1.0   ;;  %v7103_v20 = vld [vmem:[#allocation8 + $0xf0] sm:$0xff]  ;;  %v7102_v23 = vld [vmem:[#allocation8 + $0xe8] sm:$0xff]  ;;  %vm974_vm0 = vcmask 1046528  }
  0x75   : > { %v7112_v16 = vld [vmem:[#allocation8 + $0x138] sm:$0xff]  ;;  %v8150_v19 = vunpack.c.l.bf16 %v7920_v18  ;;  %2424 = vmatpush.bf16.msra.mxu0 %v7104_v15  ;;  %v7111_v21 = vld [vmem:[#allocation8 + $0x130] sm:$0xff]  ;;  %v7110_v24 = vld [vmem:[#allocation8 + $0x128] sm:$0xff]  ;;  %v9804_v42 = vmov 0.0   ;;  %vm1389_vm5 = vsmask.f32 256 }
  0x76   : > { %2483 = vmatpush.bf16.msra.mxu1 %v7112_v16  ;;  %v8152_v22 = vshrl.u32 %v492_v17, 7  ;;  %7539 = vmatpush.bf16.msra.mxu3 %v7112_v16  ;;  %v444_v28 = vld [vmem:[#allocation2 + $0x8] sm:$0xf]  ;;  %v445_v29 = vld [vmem:[#allocation2 + $0xc] sm:$0xf]  ;;  %v7101_v38 = vld [vmem:[#allocation8 + $0xe0] sm:$0xff] }
  0x77   : > { %v8158_v30 = vrot.slane %v8150_v19, 1  ;;  %v446_v32 = vld [vmem:[#allocation2 + $0x10] sm:$0xf]  ;;  %1661 = vst [vmem:[#allocation4 + $0x10] sm:$0xf] %v444_v28  ;;  %v903_v35 = vunpack.c.l.bf16 %v444_v28  ;;  %v7109_v41 = vld [vmem:[#allocation8 + $0x120] sm:$0xff]  ;;  %v904_v45 = vunpack.c.l.bf16 %v445_v29 }
  0x78   : > { %9880 = vst [vmem:[#allocation22_spill] sm:$0xff] %v8152_v22  ;;  %v495_v25 = vadd.s32 16, %v8152_v22  ;;  %v497_v26 = vadd.s32 32, %v8152_v22  ;;  %v509_v27 = vadd.s32 128, %v8152_v22  ;;  %v511_v31 = vadd.s32 144, %v8152_v22  ;;  %v8170_v47 = vld [vmem:[#allocation8 + $0x178] sm:$0xff] }
  0x79   : > { %2425 = vmatpush.bf16.msra.mxu0 %v7103_v20  ;;  %1662 = vst [vmem:[#allocation4 + $0x1c] sm:$0xf] %v445_v29  ;;  %v8161_v36 = vld [vmem:[#allocation2 + $0x44] sm:$0xf]  ;;  %v8163_v37 = vld [vmem:[#allocation2 + $0x48] sm:$0xf]  ;;  %v905_v46 = vunpack.c.l.bf16 %v446_v32  ;;  %7547 = vmatpush.bf16.msra.mxu2 %v8170_v47 }
  0x7a   : > { %2484 = vmatpush.bf16.msra.mxu1 %v7111_v21  ;;  %v535_v33 = vand.u32 15, %v495_v25  ;;  %v549_v34 = vand.u32 15, %v497_v26  ;;  %7540 = vmatpush.bf16.msra.mxu3 %v7111_v21  ;;  %1663 = vst [vmem:[#allocation4 + $0x28] sm:$0xf] %v446_v32  ;;  %v633_v39 = vand.u32 15, %v509_v27  ;;  %v647_v40 = vand.u32 15, %v511_v31 }
  0x7b   : > { %1676 = vst [vmem:[#allocation4 + $0xc4] sm:$0xf] %v8161_v36  ;;  %v8182_v52 = vld [vmem:[#allocation2 + $0x14] sm:$0xf]  ;;  %v8198_v56 = vld [vmem:[#allocation2 + $0x18] sm:$0xf]  ;;  %v918_v6 = vunpack.c.l.bf16 %v8161_v36  ;;  %v919_v28 = vunpack.c.l.bf16 %v8163_v37 }
  0x7c   : > { %vm807_vm1 = vcmp.ne.s32.totalorder %v535_v33, 0  ;;  %vm809_vm2 = vcmp.ne.s32.totalorder %v549_v34, 0  ;;  %vm821_vm3 = vcmp.ne.s32.totalorder %v633_v39, 0  ;;  %vm8173_vm4 = vcmp.ne.s32.totalorder %v647_v40, 0  ;;  %1677 = vst [vmem:[#allocation4 + $0xd0] sm:$0xf] %v8163_v37 }
  0x7d   : > { %v5972_v43 = vsel %vm807_vm1, 1.0, %v9804_v42  ;;  %v8167_v44 = vsel %vm809_vm2, 1.0, %v9804_v42  ;;  %2426 = vmatpush.bf16.msra.mxu0 %v7102_v23  ;;  %v8179_v51 = vsel %vm821_vm3, 1.0, %v9804_v42  ;;  %1664 = vst [vmem:[#allocation4 + $0x34] sm:$0xf] %v8182_v52  ;;  %v8209_v61 = vsel %vm8173_vm4, 1.0, %v9804_v42 }
  0x7e   : > { %2485 = vmatpush.bf16.msra.mxu1 %v7110_v24  ;;  %v978_v48 = vrot.slane %v5972_v43, 1  ;;  %v982_v49 = vrot.slane %v8167_v44, 1  ;;  %7541 = vmatpush.bf16.msra.mxu3 %v7110_v24  ;;  %v8201_v57 = vld [vmem:[#allocation2 + $0x4c] sm:$0xf]  ;;  %1665 = vst [vmem:[#allocation4 + $0x40] sm:$0xf] %v8198_v56  ;;  %v906_v18 = vunpack.c.l.bf16 %v8182_v52 }
  0x7f   : > { %v8212_v62 = vld [vmem:[#allocation2 + $0x50] sm:$0xf]  ;;  %v7100_v63 = vld [vmem:[#allocation8 + $0xd8] sm:$0xff]  ;;  %v9800_v1 = vrot.slane %v8179_v51, 1  ;;  %v499_v2 = vadd.s32 48, %v8152_v22  ;;  %v1010_v8 = vrot.slane %v8209_v61, 1 }
  0x80   : > { %v8186_v53 = vsel %vm974_vm0, %v8158_v30, %v978_v48  ;;  %v8190_v54 = vsel %vm974_vm0, %v978_v48, %v8158_v30  ;;  %v8196_v55 = vsel %vm974_vm0, %v8158_v30, %v982_v49  ;;  %v7108_v0 = vld [vmem:[#allocation8 + $0x118] sm:$0xff]  ;;  %1678 = vst [vmem:[#allocation4 + $0xdc] sm:$0xf] %v8201_v57  ;;  %vm1390_vm6 = vsmask.f32 4368  ;;  %v7099_v10 = vld [vmem:[#allocation8 + $0xd0] sm:$0xff] }
  0x81   : > { %9883 = vst [vmem:[#allocation23_spill] sm:$0xff] %v8186_v53  ;;  %v1049_v58 = vmul.f32 %v8186_v53, %v903_v35  ;;  %v1050_v59 = vmul.f32 %v8190_v54, %v904_v45  ;;  %v1051_v60 = vmul.f32 %v8196_v55, %v905_v46  ;;  %2427 = vmatpush.bf16.msra.mxu0 %v7101_v38  ;;  %v563_v9 = vand.u32 15, %v499_v2  ;;  %v7107_v11 = vld [vmem:[#allocation8 + $0x110] sm:$0xff]  ;;  %v7043_v17 = vld [vmem:[#allocation4 + $0x1c] sm:$0xf]  ;;  %vm8242_vm8 = vmor %vm1389_vm5, %vm1390_vm6 }
  0x82   : > { %9884 = vst [vmem:[#allocation24_spill] sm:$0xff] %v8190_v54  ;;  %2486 = vmatpush.bf16.msra.mxu1 %v7109_v41  ;;  %7542 = vmatpush.bf16.msra.mxu3 %v7109_v41  ;;  %v8224_v7 = vsel %vm974_vm0, %v9800_v1, %v8158_v30  ;;  %v8230_v20 = vld [vmem:[#allocation8 + $0x170] sm:$0xff]  ;;  %v6000_v25 = vld [vmem:[#allocation4 + $0x24] sm:$0xf0]  ;;  %v9889_v27 = vmov 0  ;;  %v8251_v29 = vsel %vm974_vm0, %v8158_v30, %v1010_v8  ;;  %v907_v45 = vunpack.c.l.bf16 %v8198_v56 }
  0x83   : > { %9885 = vst [vmem:[#allocation25_spill] sm:$0xff] %v8196_v55  ;;  %v8217_v3 = vpack.c.bf16 %v1049_v58, %v1049_v58  ;;  %v1075_v4 = vpack.c.bf16 %v1050_v59, %v1050_v59  ;;  %v1076_v5 = vpack.c.bf16 %v1051_v60, %v1051_v60  ;;  %vm8236_vm7 = vcmp.ne.s32.totalorder %v563_v9, 0  ;;  %v7064_v32 = vld [vmem:[#allocation4 + $0xc4] sm:$0xf]  ;;  %7548 = vmatpush.bf16.msra.mxu2 %v8230_v20  ;;  %v6084_v38 = vld [vmem:[#allocation4 + $0xcc] sm:$0xf0] }
  0x84   : > { %9886 = vst [vmem:[#allocation26_spill] sm:$0xff] %v8224_v7  ;;  %v9890_v27 = vsel %vm8242_vm8, 4294967295, %v9889_v27  ;;  %v1064_v31 = vmul.f32 %v8224_v7, %v918_v6  ;;  %v8257_v39 = vld [vmem:[#allocation8 + $0x168] sm:$0xff]  ;;  %v8259_v41 = vor.u32 %v7043_v17, %v6000_v25  ;;  %v5974_v43 = vsel %vm8236_vm7, 1.0, %v9804_v42  ;;  %v449_v48 = vld [vmem:[#allocation2 + $0x1c] sm:$0xf] }
  0x85   : > { %1679 = vst [vmem:[#allocation4 + $0xe8] sm:$0xf] %v8212_v62  ;;  %v1407_v12 = vshrl.u32 %v8217_v3, 16  ;;  %v1416_v13 = vshrl.u32 %v1075_v4, 16  ;;  %v1419_v14 = vshll.u32 %v1075_v4, 16  ;;  %v1425_v15 = vshrl.u32 %v1076_v5, 16  ;;  %2428 = vmatpush.bf16.msra.mxu0 %v7100_v63 }
  0x86   : > { %2487 = vmatpush.bf16.msra.mxu1 %v7108_v0  ;;  %v1428_v16 = vshll.u32 %v1076_v5, 16  ;;  %7543 = vmatpush.bf16.msra.mxu3 %v7108_v0  ;;  %9891 = vst [vmem:[#allocation27_spill] sm:$0xff] %v9890_v27  ;;  %v7098_v37 = vld [vmem:[#allocation8 + $0xc8] sm:$0xff]  ;;  %v8269_v46 = vsel %vm974_vm0, %v982_v49, %v8158_v30  ;;  %v986_v58 = vrot.slane %v5974_v43, 1  ;;  %v8276_v60 = vld [vmem:[#allocation2 + $0x20] sm:$0xf]  ;;  %v8279_v44 = vmul.f32 %v8251_v29, %v919_v28 }
  0x87   : > { %v8232_v21 = vrot.slane %v1407_v12, 7  ;;  %v1418_v23 = vrot.slane %v1416_v13, 7  ;;  %v8234_v24 = vrot.slane %v1425_v15, 7  ;;  %9892 = vst [vmem:[#allocation28_spill] sm:$0xff] %v8251_v29  ;;  %v7106_v40 = vld [vmem:[#allocation8 + $0x108] sm:$0xff]  ;;  %v1052_v59 = vmul.f32 %v8269_v46, %v906_v18  ;;  %7549 = vmatpush.bf16.msra.mxu2 %v8257_v39  ;;  %v8287_v0 = vld [vmem:[#allocation8 + $0x160] sm:$0xff] }
  0x88   : > { %9893 = vst [vmem:[#allocation29_spill] sm:$0xff] %v8269_v46  ;;  %v8281_v49 = vpack.c.bf16 %v1064_v31, %v1064_v31  ;;  %v8283_v56 = vor.u32 %v7064_v32, %v6084_v38  ;;  %v513_v63 = vadd.s32 160, %v8152_v22  ;;  %v8289_v2 = vld [vmem:[#allocation2 + $0x54] sm:$0xf]  ;;  %v8293_v4 = vsel %vm974_vm0, %v8158_v30, %v986_v58  ;;  %v7105_v12 = vld [vmem:[#allocation8 + $0x100] sm:$0xff]  ;;  %v8311_v28 = vld [vmem:[#allocation8 + $0x158] sm:$0xff] }
  0x89   : > { %v1414_v33 = vrot.slane %v8232_v21, 4  ;;  %v1421_v34 = vor.u32 %v1419_v14, %v1418_v23  ;;  %v1423_v35 = vrot.slane %v1418_v23, 4  ;;  %v1430_v36 = vor.u32 %v1428_v16, %v8234_v24  ;;  %2429 = vmatpush.bf16.msra.mxu0 %v7099_v10  ;;  %1666 = vst [vmem:[#allocation4 + $0x4c] sm:$0xf] %v449_v48  ;;  %v8297_v10 = vld [vmem:[#allocation2 + $0x58] sm:$0xf] }
  0x8a   : > { %2488 = vmatpush.bf16.msra.mxu1 %v7107_v11  ;;  %7544 = vmatpush.bf16.msra.mxu3 %v7107_v11  ;;  %9894 = vst [vmem:[#allocation30_spill] sm:$0xff] %v8293_v4  ;;  %v1077_v5 = vpack.c.bf16 %v1052_v59, %v1052_v59  ;;  %v1432_v6 = vrot.slane %v8234_v24, 4  ;;  %v501_v9 = vadd.s32 64, %v8152_v22  ;;  %v7097_v11 = vld [vmem:[#allocation8 + $0xc0] sm:$0xff]  ;;  %v1053_v13 = vmul.f32 %v8293_v4, %v907_v45  ;;  %v7076_v45 = vld [vmem:[#allocation8 + $0x30] sm:$0xff]  ;;  %v7071_v1 = vld [vmem:[#allocation8 + $0x8] sm:$0xff] }
  0x8b   : > { %v1422_v50 = vsel %vm8242_vm8, %v1414_v33, %v1421_v34  ;;  %v1431_v52 = vsel %vm8242_vm8, %v1423_v35, %v1430_v36  ;;  %v661_v14 = vand.u32 15, %v513_v63  ;;  %v920_v15 = vunpack.c.l.bf16 %v8201_v57  ;;  %1667 = vst [vmem:[#allocation4 + $0x58] sm:$0xf] %v8276_v60  ;;  %v7077_v57 = vld [vmem:[#allocation8 + $0x38] sm:$0xff]  ;;  %7550 = vmatpush.bf16.msra.mxu2 %v8287_v0  ;;  %v8326_v33 = vld [vmem:[#allocation2 + $0x24] sm:$0xf] }
  0x8c   : > { %1638 = vst [vmem:[#allocation4 + $0x18] sm:$0xf] %v1422_v50  ;;  %v908_v16 = vunpack.c.l.bf16 %v449_v48  ;;  %v1434_v17 = vshrl.u32 %v1077_v5, 16  ;;  %v1437_v18 = vshll.u32 %v1077_v5, 16  ;;  %v8306_v23 = vsel %vm974_vm0, %v1010_v8, %v8158_v30  ;;  %v8344_v5 = vld [vmem:[#allocation2 + $0x28] sm:$0xf] }
  0x8d   : > { %1639 = vst [vmem:[#allocation4 + $0x24] sm:$0xf] %v1431_v52  ;;  %2430 = vmatpush.bf16.msra.mxu0 %v7098_v37  ;;  %v577_v24 = vand.u32 15, %v501_v9  ;;  %v1078_v25 = vpack.c.bf16 %v1053_v13, %v1053_v13  ;;  %vm825_vm9 = vcmp.ne.s32.totalorder %v661_v14, 0  ;;  %v921_v26 = vunpack.c.l.bf16 %v8212_v62  ;;  %v7067_v32 = vld [vmem:[#allocation4 + $0xdc] sm:$0xf] }
  0x8e   : > { %2489 = vmatpush.bf16.msra.mxu1 %v7106_v40  ;;  %7545 = vmatpush.bf16.msra.mxu3 %v7106_v40  ;;  %9895 = vst [vmem:[#allocation31_spill] sm:$0xff] %v8306_v23  ;;  %v8315_v31 = vsel %vm974_vm0, %v986_v58, %v8158_v30  ;;  %v1436_v61 = vrot.slane %v1434_v17, 7  ;;  %v8319_v8 = vsel %vm825_vm9, 1.0, %v9804_v42  ;;  %v1066_v38 = vmul.f32 %v8306_v23, %v920_v15  ;;  %v6012_v17 = vld [vmem:[#allocation4 + $0x3c] sm:$0xf0] }
  0x8f   : > { %1680 = vst [vmem:[#allocation4 + $0xf4] sm:$0xf] %v8289_v2  ;;  %vm8321_vm10 = vcmp.ne.s32.totalorder %v577_v24, 0  ;;  %v1054_v62 = vmul.f32 %v8315_v31, %v908_v16  ;;  %v1443_v34 = vshrl.u32 %v1078_v25, 16  ;;  %v1446_v35 = vshll.u32 %v1078_v25, 16  ;;  %7551 = vmatpush.bf16.msra.mxu2 %v8311_v28 }
  0x90   : > { %9896 = vst [vmem:[#allocation32_spill] sm:$0xff] %v8315_v31  ;;  %v1014_v36 = vrot.slane %v8319_v8, 1  ;;  %v1439_v40 = vor.u32 %v1437_v18, %v1436_v61  ;;  %v1441_v43 = vrot.slane %v1436_v61, 4  ;;  %v8335_v48 = vsel %vm8321_vm10, 1.0, %v9804_v42  ;;  %v7046_v16 = vld [vmem:[#allocation4 + $0x34] sm:$0xf] }
  0x91   : > { %1681 = vst [vmem:[#allocation4 + $0x100] sm:$0xf] %v8297_v10  ;;  %2431 = vmatpush.bf16.msra.mxu0 %v7097_v11  ;;  %v909_v50 = vunpack.c.l.bf16 %v8276_v60  ;;  %v1445_v58 = vrot.slane %v1443_v34, 7  ;;  %v1079_v63 = vpack.c.bf16 %v1054_v62, %v1054_v62  ;;  %v8351_v60 = vpack.c.bf16 %v8279_v44, %v8279_v44  ;;  %v6096_v62 = vld [vmem:[#allocation4 + $0xe4] sm:$0xf0] }
  0x92   : > { %2490 = vmatpush.bf16.msra.mxu1 %v7105_v12  ;;  %1668 = vst [vmem:[#allocation4 + $0x64] sm:$0xf] %v8326_v33  ;;  %7546 = vmatpush.bf16.msra.mxu3 %v7105_v12  ;;  %v1015_v59 = vsel %vm974_vm0, %v8158_v30, %v1014_v36  ;;  %v1440_v12 = vsel %vm8242_vm8, %v1432_v6, %v1439_v40  ;;  %v7075_v34 = vld [vmem:[#allocation8 + $0x28] sm:$0xff]  ;;  %vm1266_vm12 = vcmask 1040384   ;;  %vm1684_vm15 = vsmask.f32 3328 }
  0x93   : > { %v5998_v37 = vld [vmem:[#allocation4 + $0x18] sm:$0xf]  ;;  %1669 = vst [vmem:[#allocation4 + $0x70] sm:$0xf] %v8344_v5  ;;  %v1448_v14 = vor.u32 %v1446_v35, %v1445_v58  ;;  %v1452_v44 = vshrl.u32 %v1079_v63, 16  ;;  %v1067_v6 = vmul.f32 %v1015_v59, %v921_v26  ;;  %v8366_v18 = vpack.c.bf16 %v1066_v38, %v1066_v38  ;;  %v7074_v38 = vld [vmem:[#allocation8 + $0x20] sm:$0xff] }
  0x94   : > { %v7044_v52 = vld [vmem:[#allocation4 + $0x20] sm:$0xf0]  ;;  %1640 = vst [vmem:[#allocation4 + $0x30] sm:$0xf] %v1440_v12  ;;  %v1455_v25 = vshll.u32 %v1079_v63, 16  ;;  %v1450_v35 = vrot.slane %v1445_v58, 4 }
  0x95   : > { %2542 = vmatpush.bf16.msrb.mxu0 %v8170_v47  ;;  %v990_v47 = vrot.slane %v8335_v48, 1  ;;  %v8346_v9 = vor.u32 %v7044_v52, %v5998_v37  ;;  %2491 = vmatmul.bf16.vlgmr.msra.gmra.mxu1 %v8259_v41  ;;  %v1449_v61 = vsel %vm8242_vm8, %v1441_v43, %v1448_v14  ;;  %v1454_v37 = vrot.slane %v1452_v44, 7  ;;  %v8379_v52 = vld [vmem:[#allocation2 + $0x4] sm:$0xf]  ;;  %v7049_v59 = vld [vmem:[#allocation4 + $0x4c] sm:$0xf] }
  0x96   : > { %2761 = vmatpush.bf16.msrb.mxu3 %v7077_v57  ;;  %v8369_v57 = vld [vmem:[#allocation8 + $0x150] sm:$0xff]  ;;  %v515_v26 = vadd.s32 176, %v8152_v22  ;;  %1641 = vst [vmem:[#allocation4 + $0x3c] sm:$0xf] %v1449_v61  ;;  %v6024_v63 = vld [vmem:[#allocation4 + $0x54] sm:$0xf0] }
  0x97   : > { %2526 = vmatmul.bf16.vlgmr.msra.gmra.mxu3 %v8283_v56  ;;  %v8363_v15 = vsel %vm974_vm0, %v8158_v30, %v990_v47  ;;  %2432 = vmatmul.bf16.vlgmr.msra.gmra.mxu0 %v8346_v9  ;;  %v1457_v43 = vor.u32 %v1455_v25, %v1454_v37  ;;  %1660 = vst [vmem:[#allocation4 + $0x4] sm:$0xf] %v8379_v52  ;;  %v8384_v14 = vld [vmem:[#allocation2 + $0x20] sm:$0xff]   ;;  %v7500_v61 = vld [vmem:[#allocation2 + $0x28] sm:$0xff]   ;;  %vm1685_vm1 = vsmask.f32 7440 }
  0x98   : > { %9899 = vst [vmem:[#allocation33_spill] sm:$0xff] %v8363_v15  ;;  %v1055_v24 = vmul.f32 %v8363_v15, %v909_v50  ;;  %7552 = vmatpush.bf16.msra.mxu2 %v8369_v57  ;;  %v8377_v50 = vld [vmem:[#allocation8 + $0x148] sm:$0xff]  ;;  %v675_v12 = vand.u32 15, %v515_v26  ;;  %v1459_v26 = vrot.slane %v1454_v37, 4  ;;  %v7317_v8 = vunpack.c.h.bf16 %v7500_v61  ;;  %vm8514_vm4 = vmor %vm1684_vm15, %vm1685_vm1 }
  0x99   : > { %2543 = vmatpush.bf16.msrb.mxu0 %v8230_v20  ;;  %v8382_v20 = vpack.c.bf16 %v1067_v6, %v1067_v6  ;;  %v1458_v25 = vsel %vm8242_vm8, %v1450_v35, %v1457_v43  ;;  %v500_v35 = vadd.s32 56, %v8152_v22  ;;  %v8425_v43 = vld [vmem:[#allocation4 + $0xfc] sm:$0xf0] }
  0x9a   : > { %2762 = vmatpush.bf16.msrb.mxu3 %v7076_v45  ;;  %v1080_v40 = vpack.c.bf16 %v1055_v24, %v1055_v24  ;;  %v8387_v24 = vor.u32 %v7046_v16, %v6012_v17  ;;  %1642 = vst [vmem:[#allocation4 + $0x48] sm:$0xf] %v1458_v25  ;;  %v8399_v16 = vld [vmem:[#allocation8 + $0x140] sm:$0xff]  ;;  %v8401_v17 = vor.u32 %v7049_v59, %v6024_v63  ;;  %vm8408_vm11 = vcmp.ne.s32.totalorder %v675_v12, 0  ;;  %v8419_v25 = vld [vmem:[#allocation4 + $0xf4] sm:$0xf] }
  0x9b   : > { %v6010_v59 = vld [vmem:[#allocation4 + $0x30] sm:$0xf]  ;;  %v570_v6 = vand.u32 15, %v500_v35  ;;  %v910_v12 = vunpack.c.l.bf16 %v8326_v33  ;;  %v8431_v35 = vrot.slane %v8150_v19, 7  ;;  %v8454_v48 = vsel %vm8408_vm11, 1.0, %v9804_v42 }
  0x9c   : > { %v1461_v45 = vshrl.u32 %v1080_v40, 16  ;;  %v1464_v58 = vshll.u32 %v1080_v40, 16  ;;  %v8394_v40 = vor.u32 %v7067_v32, %v6096_v62  ;;  %7553 = vmatpush.bf16.msra.mxu2 %v8377_v50  ;;  %v7072_v19 = vld [vmem:[#allocation8 + $0x10] sm:$0xff] }
  0x9d   : > { %2544 = vmatpush.bf16.msrb.mxu0 %v8257_v39  ;;  %v502_v39 = vadd.s32 72, %v8152_v22  ;;  %v7047_v63 = vld [vmem:[#allocation4 + $0x38] sm:$0xf0]  ;;  %vm1104_vm13 = vcmp.ne.s32.totalorder %v570_v6, 15  ;;  %9902 = vst [vmem:[#allocation34_spill] sm:$0xff] %v8431_v35 }
  0x9e   : > { %2763 = vmatpush.bf16.msrb.mxu3 %v7075_v34  ;;  %v8396_v13 = vrot.slane %v1461_v45, 7  ;;  %v7313_v34 = vunpack.c.h.bf16 %v8384_v14  ;;  %v7073_v45 = vld [vmem:[#allocation8 + $0x18] sm:$0xff]  ;;  %v8417_v14 = vsel %vm974_vm0, %v1014_v36, %v8158_v30  ;;  %v8428_v36 = vld [vmem:[#allocation2 + $0x2c] sm:$0xf]  ;;  %v8434_v33 = vor.u32 %v7047_v63, %v6010_v59  ;;  %v7052_v63 = vld [vmem:[#allocation4 + $0x64] sm:$0xf] }
  0x9f   : > { %1670 = vst [vmem:[#allocation4 + $0x7c] sm:$0xf] %v8428_v36 }
  0xa0   : > { %v1466_v62 = vor.u32 %v1464_v58, %v8396_v13  ;;  %v584_v58 = vand.u32 15, %v502_v39  ;;  %7554 = vmatpush.bf16.msra.mxu2 %v8399_v16 }
  0xa1   : > { %2545 = vmatpush.bf16.msrb.mxu0 %v8287_v0  ;;  %v503_v0 = vadd.s32 80, %v8152_v22  ;;  %v6022_v7 = vld [vmem:[#allocation4 + $0x48] sm:$0xf] }
  0xa2   : > { %2764 = vmatpush.bf16.msrb.mxu3 %v7074_v38  ;;  %v1467_v32 = vsel %vm8242_vm8, %v1459_v26, %v1466_v62  ;;  %v7316_v38 = vunpack.c.l.bf16 %v7500_v61  ;;  %vm1106_vm14 = vcmp.ne.s32.totalorder %v584_v58, 15  ;;  %v8437_v26 = vsel %vm1104_vm13, 1.0, %v9804_v42 }
  0xa3   : > { %1643 = vst [vmem:[#allocation4 + $0x54] sm:$0xf] %v1467_v32  ;;  %v5987_v39 = vsel %vm1106_vm14, 1.0, %v9804_v42  ;;  %v8444_v61 = vsel %vm974_vm0, %v990_v47, %v8158_v30  ;;  %v9799_v6 = vrot.slane %v8437_v26, 7  ;;  %v591_v62 = vand.u32 15, %v503_v0 }
  0xa4   : > { %9903 = vst [vmem:[#allocation35_spill] sm:$0xff] %v8444_v61  ;;  %v1284_v32 = vrot.slane %v5987_v39, 7  ;;  %v1056_v59 = vmul.f32 %v8444_v61, %v910_v12  ;;  %v521_v58 = vand.u32 15, %v8152_v22  ;;  %v8460_v12 = vld [vmem:[#allocation2 + $0x30] sm:$0xf] }
  0xa5   : > { %2546 = vmatpush.bf16.msrb.mxu0 %v8311_v28  ;;  %2496 = vmatmul.bf16.gmra.mxu1 %v8387_v24  ;;  %v8467_v28 = vsel %vm1266_vm12, %v9799_v6, %v8431_v35  ;;  %vm815_vm2 = vcmp.ne.s32.totalorder %v591_v62, 0  ;;  %v6036_v0 = vld [vmem:[#allocation4 + $0x6c] sm:$0xf0]  ;;  %1671 = vst [vmem:[#allocation4 + $0x88] sm:$0xf] %v8460_v12  ;;  %v1468_v62 = vrot.slane %v8396_v13, 4 }
  0xa6   : > { %2765 = vmatpush.bf16.msrb.mxu3 %v7073_v45  ;;  %v911_v45 = vunpack.c.l.bf16 %v8344_v5  ;;  %9904 = vst [vmem:[#allocation36_spill] sm:$0xff] %v8467_v28  ;;  %v8471_v37 = vsel %vm1266_vm12, %v8431_v35, %v1284_v32  ;;  %v8475_v5 = vsel %vm1266_vm12, %v1284_v32, %v8431_v35  ;;  %v1347_v39 = vmul.f32 %v7313_v34, %v8467_v28 }
  0xa7   : > { %2531 = vmatmul.bf16.gmra.mxu3 %v8394_v40  ;;  %9905 = vst [vmem:[#allocation37_spill] sm:$0xff] %v8471_v37  ;;  %2437 = vmatmul.bf16.gmra.mxu0 %v8434_v33  ;;  %v1348_v44 = vmul.f32 %v7316_v38, %v8471_v37  ;;  %v1349_v6 = vmul.f32 %v7317_v8, %v8475_v5  ;;  %v8483_v11 = vsel %vm815_vm2, 1.0, %v9804_v42  ;;  %vm805_vm3 = vcmp.ne.s32.totalorder %v521_v58, 0  ;;  %v442_v8 = vld [vmem:[#allocation2] sm:$0x8] }
  0xa8   : > { %9906 = vst [vmem:[#allocation38_spill] sm:$0xff] %v8475_v5  ;;  %v9810_v32 = vrot.slane %v8483_v11, 1  ;;  %v1081_v47 = vpack.c.bf16 %v1056_v59, %v1056_v59  ;;  %v1372_v23 = vpack.c.bf16 %v1347_v39, %v1347_v39  ;;  %v8490_v38 = vor.u32 %v7052_v63, %v6036_v0  ;;  %v7070_v0 = vld [vmem:[#allocation8] sm:$0xff] }
  0xa9   : > { %2547 = vmatpush.bf16.msrb.mxu0 %v8369_v57  ;;  %v1373_v29 = vpack.c.bf16 %v1348_v44, %v1348_v44  ;;  %v8488_v34 = vpack.c.bf16 %v1349_v6, %v1349_v6  ;;  %v9908_v13 = vmov 0.0   ;;  %v901_v28 = vunpack.c.l.bf16 %v442_v8  ;;  %v8521_v8 = vld [vmem:[#allocation2 + $0x30] sm:$0xff]  }
  0xaa   : > { %2766 = vmatpush.bf16.msrb.mxu3 %v7072_v19  ;;  %v8496_v19 = vsel %vm974_vm0, %v8158_v30, %v9810_v32  ;;  %v1470_v59 = vshrl.u32 %v1081_v47, 16  ;;  %v1473_v42 = vshll.u32 %v1081_v47, 16  ;;  %v5971_v58 = vsel %vm805_vm3, 1.0, %v9908_v13  ;;  %v7050_v5 = vld [vmem:[#allocation4 + $0x50] sm:$0xf0] }
  0xab   : > { %9907 = vst [vmem:[#allocation39_spill] sm:$0xff] %v8496_v19  ;;  %v1767_v57 = vshll.u32 %v1372_v23, 16  ;;  %v1771_v39 = vshrl.u32 %v1372_v23, 16  ;;  %v1777_v44 = vshll.u32 %v1373_v29, 16  ;;  %v1781_v6 = vshrl.u32 %v1373_v29, 16 }
  0xac   : > { %v1787_v63 = vshll.u32 %v8488_v34, 16  ;;  %v1057_v37 = vmul.f32 %v8496_v19, %v911_v45  ;;  %v1472_v61 = vrot.slane %v1470_v59, 7  ;;  %v8504_v4 = vor.u32 %v7050_v5, %v6022_v7  ;;  %v7084_v19 = vld [vmem:[#allocation8 + $0x70] sm:$0xff] }
  0xad   : > { %2548 = vmatpush.bf16.msrb.mxu0 %v8377_v50  ;;  %v8502_v32 = vrot.slane %v1767_v57, 5  ;;  %v1773_v47 = vrot.slane %v1771_v39, 4  ;;  %v1779_v15 = vrot.slane %v1777_v44, 5  ;;  %v1783_v31 = vrot.slane %v1781_v6, 4  ;;  %v8530_v39 = vld [vmem:[#allocation2 + $0x34] sm:$0xf] }
  0xae   : > { %2767 = vmatpush.bf16.msrb.mxu3 %v7071_v1  ;;  %v8506_v23 = vrot.slane %v1787_v63, 5  ;;  %v1082_v29 = vpack.c.bf16 %v1057_v37, %v1057_v37  ;;  %v1475_v1 = vor.u32 %v1473_v42, %v1472_v61  ;;  %v902_v45 = vunpack.c.l.bf16 %v8379_v52  ;;  %1672 = vst [vmem:[#allocation4 + $0x94] sm:$0xf] %v8530_v39 }
  0xaf   : > { %v1774_v46 = vor.u32 %v1773_v47, %v8502_v32  ;;  %v1784_v55 = vor.u32 %v1783_v31, %v1779_v15  ;;  %v8510_v59 = vrot.slane %v5971_v58, 1  ;;  %v9910_v50 = vmov 0 }
  0xb0   : > { %v9911_v50 = vsel %vm8514_vm4, 4294967295, %v9910_v50  ;;  %v1476_v7 = vsel %vm8242_vm8, %v1468_v62, %v1475_v1  ;;  %v1479_v5 = vshrl.u32 %v1082_v29, 16  ;;  %v1482_v37 = vshll.u32 %v1082_v29, 16 }
  0xb1   : > { %9909 = vst [vmem:[#allocation40_spill] sm:$0xff] %v8510_v59  ;;  %v1410_v42 = vshll.u32 %v8217_v3, 16  ;;  %2549 = vmatpush.bf16.msrb.mxu0 %v8399_v16  ;;  %v1775_v31 = vrot.slane %v1774_v46, 4  ;;  %v1785_v52 = vrot.slane %v1784_v55, 4  ;;  %v8527_v58 = vsel %vm974_vm0, %v8510_v59, %v8158_v30  ;;  %v8536_v16 = vld [vmem:[#allocation2 + $0x38] sm:$0xf] }
  0xb2   : > { %9912 = vst [vmem:[#allocation41_spill] sm:$0xff] %v9911_v50  ;;  %2768 = vmatpush.bf16.msrb.mxu3 %v7070_v0  ;;  %v1047_v57 = vmul.f32 %v8510_v59, %v901_v28  ;;  %v1477_v62 = vrot.slane %v1472_v61, 4  ;;  %v8532_v44 = vrot.slane %v1479_v5, 7  ;;  %v1048_v3 = vmul.f32 %v8527_v58, %v902_v45 }
  0xb3   : > { %1644 = vst [vmem:[#allocation4 + $0x60] sm:$0xf] %v1476_v7  ;;  %v1412_v6 = vor.u32 %v1410_v42, %v8232_v21  ;;  %v1780_v55 = vsel %vm8514_vm4, %v1775_v31, %v1779_v15  ;;  %v1790_v46 = vsel %vm8514_vm4, %v1785_v52, %v8506_v23  ;;  %v7320_v61 = vunpack.c.l.bf16 %v8521_v8 }
  0xb4   : > { %9913 = vst [vmem:[#allocation42_spill] sm:$0xff] %v8527_v58  ;;  %v1072_v28 = vpack.c.bf16 %v1047_v57, %v1047_v57  ;;  %v1484_v63 = vor.u32 %v1482_v37, %v8532_v44  ;;  %v1073_v21 = vpack.c.bf16 %v1048_v3, %v1048_v3  ;;  %v504_v0 = vadd.s32 88, %v8152_v22  ;;  %v8567_v3 = vld [vmem:[#allocation2 + $0x38] sm:$0xff]  }
  0xb5   : > { %1673 = vst [vmem:[#allocation4 + $0xa0] sm:$0xf] %v8536_v16  ;;  %v1791_v47 = vshrl.u32 %v8488_v34, 16  ;;  %2501 = vmatmul.bf16.gmra.mxu1 %v8401_v17  ;;  %v7321_v29 = vunpack.c.h.bf16 %v8521_v8  ;;  %v505_v1 = vadd.s32 96, %v8152_v22  ;;  %v912_v45 = vunpack.c.l.bf16 %v8428_v36 }
  0xb6   : > { %1963 = vst [vmem:[#allocation4 + $0x68] sm:$0xf] %v1780_v55  ;;  %v1393_v15 = vshrl.u32 %v1072_v28, 16  ;;  %v9914_v7 = vor.u32 %v8419_v25, %v8425_v43  ;;  %v1485_v5 = vsel %vm8242_vm8, %v1477_v62, %v1484_v63  ;;  %v1398_v37 = vshrl.u32 %v1073_v21, 16 }
  0xb7   : > { %1964 = vst [vmem:[#allocation4 + $0x74] sm:$0xf] %v1790_v46  ;;  %v1401_v42 = vshll.u32 %v1073_v21, 16  ;;  %v598_v34 = vand.u32 15, %v504_v0  ;;  %2442 = vmatmul.bf16.gmra.mxu0 %v8504_v4  ;;  %v1793_v31 = vrot.slane %v1791_v47, 4  ;;  %v605_v52 = vand.u32 15, %v505_v1 }
  0xb8   : > { %2536 = vmatmul.bf16.gmra.mxu3 %v9914_v7  ;;  %1645 = vst [vmem:[#allocation4 + $0x6c] sm:$0xf] %v1485_v5  ;;  %v913_v8 = vunpack.c.l.bf16 %v8460_v12  ;;  %v9915_v36 = vrot.slane %v8483_v11, 1  ;;  %v5995_v43 = vrot.slane %v1393_v15, 11  ;;  %v1400_v25 = vrot.slane %v1398_v37, 7 }
  0xb9   : > { %vm1108_vm5 = vcmp.ne.s32.totalorder %v598_v34, 15  ;;  %v1794_v46 = vor.u32 %v1793_v31, %v8506_v23  ;;  %vm817_vm6 = vcmp.ne.s32.totalorder %v605_v52, 0  ;;  %v1486_v12 = vrot.slane %v8532_v44, 4  ;;  %v7055_v0 = vld [vmem:[#allocation4 + $0x7c] sm:$0xf] }
  0xba   : > { %v8564_v57 = vsel %vm974_vm0, %v9915_v36, %v8158_v30  ;;  %v5988_v55 = vsel %vm1108_vm5, 1.0, %v9908_v13  ;;  %v1403_v28 = vor.u32 %v1401_v42, %v1400_v25  ;;  %v1405_v63 = vrot.slane %v1400_v25, 4  ;;  %v6048_v7 = vld [vmem:[#allocation4 + $0x84] sm:$0xf0]  ;;  %v6034_v52 = vld [vmem:[#allocation4 + $0x60] sm:$0xf] }
  0xbb   : > { %9916 = vst [vmem:[#allocation43_spill] sm:$0xff] %v8564_v57  ;;  %v1058_v62 = vmul.f32 %v8564_v57, %v912_v45  ;;  %v1288_v11 = vrot.slane %v5988_v55, 7  ;;  %v8573_v21 = vsel %vm817_vm6, 1.0, %v9908_v13  ;;  %v1795_v15 = vrot.slane %v1794_v46, 4 }
  0xbc   : > { %v9816_v1 = vrot.slane %v8573_v21, 1  ;;  %v1404_v23 = vsel %vm8242_vm8, %v5995_v43, %v1403_v28  ;;  %v1413_v44 = vsel %vm8242_vm8, %v1405_v63, %v1412_v6  ;;  %v8600_v28 = vor.u32 %v7055_v0, %v6048_v7 }
  0xbd   : > { %v6042_v47 = vld [vmem:[#allocation4 + $0x68] sm:$0xf]  ;;  %v1083_v45 = vpack.c.bf16 %v1058_v62, %v1058_v62  ;;  %v8583_v42 = vsel %vm1266_vm12, %v8431_v35, %v1288_v11  ;;  %v8587_v34 = vsel %vm1266_vm12, %v1288_v11, %v8431_v35  ;;  %1636 = vst [vmem:[#allocation4] sm:$0xf] %v1404_v23  ;;  %v506_v11 = vadd.s32 104, %v8152_v22 }
  0xbe   : > { %v7054_v37 = vld [vmem:[#allocation4 + $0x70] sm:$0xf0]  ;;  %9917 = vst [vmem:[#allocation44_spill] sm:$0xff] %v8583_v42  ;;  %v1350_v36 = vmul.f32 %v7320_v61, %v8583_v42  ;;  %v1351_v25 = vmul.f32 %v7321_v29, %v8587_v34  ;;  %v8597_v6 = vsel %vm974_vm0, %v8158_v30, %v9816_v1  ;;  %v7325_v29 = vunpack.c.h.bf16 %v8567_v3 }
  0xbf   : > { %9918 = vst [vmem:[#allocation45_spill] sm:$0xff] %v8587_v34  ;;  %v8589_v31 = vor.u32 %v7054_v37, %v6042_v47  ;;  %v7053_v43 = vld [vmem:[#allocation4 + $0x68] sm:$0xf0]  ;;  %v1059_v62 = vmul.f32 %v8597_v6, %v913_v8  ;;  %v1488_v55 = vshrl.u32 %v1083_v45, 16  ;;  %v1491_v46 = vshll.u32 %v1083_v45, 16 }
  0xc0   : > { %9919 = vst [vmem:[#allocation46_spill] sm:$0xff] %v8597_v6  ;;  %v1375_v63 = vpack.c.bf16 %v1350_v36, %v1350_v36  ;;  %v1376_v61 = vpack.c.bf16 %v1351_v25, %v1351_v25  ;;  %v8605_v47 = vor.u32 %v7053_v43, %v6034_v52  ;;  %v612_v45 = vand.u32 15, %v506_v11  ;;  %v8608_v36 = vld [vmem:[#allocation2 + $0x3c] sm:$0xf] }
  0xc1   : > { %1637 = vst [vmem:[#allocation4 + $0xc] sm:$0xf] %v1413_v44  ;;  %2565 = vmatmul.bf16.vlgmr.msra.gmra.mxu2 %v8589_v31  ;;  %v1084_v37 = vpack.c.bf16 %v1059_v62, %v1059_v62  ;;  %v1490_v23 = vrot.slane %v1488_v55, 7  ;;  %v507_v44 = vadd.s32 112, %v8152_v22 }
  0xc2   : > { %v1797_v1 = vshll.u32 %v1375_v63, 16  ;;  %v1801_v8 = vshrl.u32 %v1375_v63, 16  ;;  %v1807_v5 = vshll.u32 %v1376_v61, 16  ;;  %vm1110_vm7 = vcmp.ne.s32.totalorder %v612_v45, 15  ;;  %1674 = vst [vmem:[#allocation4 + $0xac] sm:$0xf] %v8608_v36 }
  0xc3   : > { %v1493_v0 = vor.u32 %v1491_v46, %v1490_v23  ;;  %v1495_v7 = vrot.slane %v1490_v23, 4  ;;  %v1497_v59 = vshrl.u32 %v1084_v37, 16  ;;  %v1500_v58 = vshll.u32 %v1084_v37, 16  ;;  %v8621_v45 = vld [vmem:[#allocation2 + $0x40] sm:$0xf] }
  0xc4   : > { %v1799_v25 = vrot.slane %v1797_v1, 5  ;;  %v1803_v34 = vrot.slane %v1801_v8, 4  ;;  %v1809_v42 = vrot.slane %v1807_v5, 5  ;;  %v6214_v52 = vld [vmem:[#allocation4] sm:$0xf]  ;;  %v5989_v55 = vsel %vm1110_vm7, 1.0, %v9908_v13 }
  0xc5   : > { %v1494_v43 = vsel %vm8242_vm8, %v1486_v12, %v1493_v0  ;;  %v8613_v62 = vrot.slane %v1497_v59, 7  ;;  %v1811_v46 = vshrl.u32 %v1376_v61, 16  ;;  %2506 = vmatmul.bf16.gmra.mxu1 %v8490_v38  ;;  %v1292_v5 = vrot.slane %v5989_v55, 7  ;;  %1675 = vst [vmem:[#allocation4 + $0xb8] sm:$0xf] %v8621_v45 }
  0xc6   : > { %v1800_v1 = vsel %vm8514_vm4, %v1795_v15, %v1799_v25  ;;  %v1804_v11 = vor.u32 %v1803_v34, %v1799_v25  ;;  %1646 = vst [vmem:[#allocation4 + $0x78] sm:$0xf] %v1494_v43  ;;  %v619_v37 = vand.u32 15, %v507_v44  ;;  %v914_v59 = vunpack.c.l.bf16 %v8530_v39 }
  0xc7   : > { %1965 = vst [vmem:[#allocation4 + $0x80] sm:$0xf] %v1800_v1  ;;  %v1502_v8 = vor.u32 %v1500_v58, %v8613_v62  ;;  %v1813_v12 = vrot.slane %v1811_v46, 4  ;;  %2447 = vmatmul.bf16.gmra.mxu0 %v8605_v47  ;;  %v8626_v0 = vsel %vm1266_vm12, %v8431_v35, %v1292_v5  ;;  %v8630_v15 = vsel %vm1266_vm12, %v1292_v5, %v8431_v35 }
  0xc8   : > { %v7041_v63 = vld [vmem:[#allocation4 + $0x8] sm:$0xf0]  ;;  %v1805_v61 = vrot.slane %v1804_v11, 4  ;;  %9920 = vst [vmem:[#allocation47_spill] sm:$0xff] %v8626_v0  ;;  %vm819_vm9 = vcmp.ne.s32.totalorder %v619_v37, 0  ;;  %v9922_v39 = vunpack.c.l.bf16 %v8567_v3  ;;  %v1353_v44 = vmul.f32 %v7325_v29, %v8630_v15 }
  0xc9   : > { %v6215_v23 = vor.u32 %v7041_v63, %v6214_v52  ;;  %9921 = vst [vmem:[#allocation48_spill] sm:$0xff] %v8630_v15  ;;  %v1503_v58 = vsel %vm8242_vm8, %v1495_v7, %v1502_v8  ;;  %v1814_v25 = vor.u32 %v1813_v12, %v1809_v42  ;;  %v8639_v52 = vld [vmem:[#allocation2 + $0x40] sm:$0xff]   ;;  %v5978_v55 = vsel %vm819_vm9, 1.0, %v9908_v13 }
  0xca   : > { %v1352_v34 = vmul.f32 %v9922_v39, %v8626_v0  ;;  %v1810_v43 = vsel %vm8514_vm4, %v1805_v61, %v1809_v42  ;;  %1647 = vst [vmem:[#allocation4 + $0x84] sm:$0xf] %v1503_v58  ;;  %v915_v46 = vunpack.c.l.bf16 %v8536_v16  ;;  %v9923_v7 = vrot.slane %v8573_v21, 1 }
  0xcb   : > { %2769 = vmatmul.bf16.vlgmr.msrb.gmra.mxu3 %v6215_v23  ;;  %1966 = vst [vmem:[#allocation4 + $0x8c] sm:$0xf] %v1810_v43  ;;  %v1378_v29 = vpack.c.bf16 %v1353_v44, %v1353_v44  ;;  %v1002_v1 = vrot.slane %v5978_v55, 1  ;;  %v1504_v11 = vrot.slane %v8613_v62, 4  ;;  %v1815_v5 = vrot.slane %v1814_v25, 4 }
  0xcc   : > { %v8649_v63 = vsel %vm974_vm0, %v9923_v7, %v8158_v30  ;;  %v1377_v3 = vpack.c.bf16 %v1352_v34, %v1352_v34  ;;  %v7328_v37 = vunpack.c.l.bf16 %v8639_v52  ;;  %v7329_v23 = vunpack.c.h.bf16 %v8639_v52 }
  0xcd   : > { %9924 = vst [vmem:[#allocation49_spill] sm:$0xff] %v8649_v63  ;;  %v1060_v42 = vmul.f32 %v8649_v63, %v914_v59  ;;  %v1827_v12 = vshll.u32 %v1378_v29, 16  ;;  %v8657_v21 = vsel %vm974_vm0, %v8158_v30, %v1002_v1  ;;  %v508_v39 = vadd.s32 120, %v8152_v22  ;;  %v6046_v34 = vld [vmem:[#allocation4 + $0x78] sm:$0xf] }
  0xce   : > { %v1817_v16 = vshll.u32 %v1377_v3, 16  ;;  %v1821_v8 = vshrl.u32 %v1377_v3, 16  ;;  %9925 = vst [vmem:[#allocation50_spill] sm:$0xff] %v8657_v21  ;;  %v1061_v61 = vmul.f32 %v8657_v21, %v915_v46  ;;  %v1831_v62 = vshrl.u32 %v1378_v29, 16  ;;  %v6054_v52 = vld [vmem:[#allocation4 + $0x80] sm:$0xf] }
  0xcf   : > { %v1085_v58 = vpack.c.bf16 %v1060_v42, %v1060_v42  ;;  %v1829_v25 = vrot.slane %v1827_v12, 5  ;;  %v916_v43 = vunpack.c.l.bf16 %v8608_v36  ;;  %v626_v15 = vand.u32 15, %v508_v39 }
  0xd0   : > { %v1819_v44 = vrot.slane %v1817_v16, 5  ;;  %v1823_v59 = vrot.slane %v1821_v8, 4  ;;  %v1086_v55 = vpack.c.bf16 %v1061_v61, %v1061_v61  ;;  %v1833_v42 = vrot.slane %v1831_v62, 4 }
  0xd1   : > { %v1506_v7 = vshrl.u32 %v1085_v58, 16  ;;  %v1509_v3 = vshll.u32 %v1085_v58, 16  ;;  %v7056_v0 = vld [vmem:[#allocation4 + $0x80] sm:$0xf0]  ;;  %v917_v21 = vunpack.c.l.bf16 %v8621_v45  ;;  %v8669_v36 = vsel %vm974_vm0, %v1002_v1, %v8158_v30 }
  0xd2   : > { %v1820_v63 = vsel %vm8514_vm4, %v1815_v5, %v1819_v44  ;;  %v1824_v46 = vor.u32 %v1823_v59, %v1819_v44  ;;  %v7057_v29 = vld [vmem:[#allocation4 + $0x88] sm:$0xf0]  ;;  %v8665_v6 = vor.u32 %v7056_v0, %v6046_v34  ;;  %v1515_v8 = vshrl.u32 %v1086_v55, 16  ;;  %9926 = vst [vmem:[#allocation51_spill] sm:$0xff] %v8669_v36 }
  0xd3   : > { %1967 = vst [vmem:[#allocation4 + $0x98] sm:$0xf] %v1820_v63  ;;  %v1508_v16 = vrot.slane %v1506_v7, 7  ;;  %v8671_v12 = vor.u32 %v7057_v29, %v6054_v52  ;;  %v1518_v58 = vshll.u32 %v1086_v55, 16  ;;  %vm1112_vm10 = vcmp.ne.s32.totalorder %v626_v15, 15  ;;  %v8691_v7 = vld [vmem:[#allocation2 + $0x48] sm:$0xff]  }
  0xd4   : > { %v1825_v61 = vrot.slane %v1824_v46, 4  ;;  %v8673_v62 = vrot.slane %v1515_v8, 7  ;;  %v5990_v45 = vsel %vm1112_vm10, 1.0, %v9908_v13  ;;  %v1834_v34 = vor.u32 %v1833_v42, %v1829_v25 }
  0xd5   : > { %v1511_v5 = vor.u32 %v1509_v3, %v1508_v16  ;;  %v1513_v39 = vrot.slane %v1508_v16, 4  ;;  %2570 = vmatmul.bf16.gmra.mxu2 %v8671_v12  ;;  %v1296_v63 = vrot.slane %v5990_v45, 7  ;;  %v9927_v1 = vrot.slane %v8179_v51, 1  ;;  %2511 = vmatmul.bf16.gmra.mxu1 %v8600_v28 }
  0xd6   : > { %v1830_v0 = vsel %vm8514_vm4, %v1825_v61, %v1829_v25  ;;  %v1520_v52 = vor.u32 %v1518_v58, %v8673_v62  ;;  %v1062_v55 = vmul.f32 %v8669_v36, %v916_v43  ;;  %v1835_v16 = vrot.slane %v1834_v34, 4 }
  0xd7   : > { %v8683_v44 = vsel %vm974_vm0, %v8158_v30, %v9927_v1  ;;  %1968 = vst [vmem:[#allocation4 + $0xa4] sm:$0xf] %v1830_v0  ;;  %v1512_v59 = vsel %vm8242_vm8, %v1504_v11, %v1511_v5  ;;  %v8696_v25 = vsel %vm1266_vm12, %v8431_v35, %v1296_v63  ;;  %v8700_v3 = vsel %vm1266_vm12, %v1296_v63, %v8431_v35 }
  0xd8   : > { %9928 = vst [vmem:[#allocation52_spill] sm:$0xff] %v8683_v44  ;;  %v1063_v46 = vmul.f32 %v8683_v44, %v917_v21  ;;  %2452 = vmatmul.bf16.gmra.mxu0 %v8665_v6  ;;  %v1521_v11 = vsel %vm8242_vm8, %v1513_v39, %v1520_v52  ;;  %v1354_v43 = vmul.f32 %v7328_v37, %v8696_v25  ;;  %v1522_v61 = vrot.slane %v8673_v62, 4 }
  0xd9   : > { %1648 = vst [vmem:[#allocation4 + $0x90] sm:$0xf] %v1512_v59  ;;  %v1355_v42 = vmul.f32 %v7329_v23, %v8700_v3  ;;  %v1087_v29 = vpack.c.bf16 %v1062_v55, %v1062_v55  ;;  %v7332_v58 = vunpack.c.l.bf16 %v8691_v7  ;;  %v510_v37 = vadd.s32 136, %v8152_v22 }
  0xda   : > { %9929 = vst [vmem:[#allocation53_spill] sm:$0xff] %v8696_v25  ;;  %v1088_v8 = vpack.c.bf16 %v1063_v46, %v1063_v46  ;;  %v1379_v21 = vpack.c.bf16 %v1354_v43, %v1354_v43  ;;  %v9931_v23 = vshrl.u32 %v8281_v49, 16  ;;  %v6066_v55 = vld [vmem:[#allocation4 + $0x98] sm:$0xf]  ;;  %v7333_v46 = vunpack.c.h.bf16 %v8691_v7  ;;  %v6060_v25 = vld [vmem:[#allocation4 + $0x9c] sm:$0xf0] }
  0xdb   : > { %9930 = vst [vmem:[#allocation54_spill] sm:$0xff] %v8700_v3  ;;  %2774 = vmatmul.bf16.gmra.mxu3 %v8346_v9  ;;  %v1380_v5 = vpack.c.bf16 %v1355_v42, %v1355_v42  ;;  %v1524_v45 = vshrl.u32 %v1087_v29, 16  ;;  %v1527_v0 = vshll.u32 %v1087_v29, 16  ;;  %v9932_v51 = vshll.u32 %v8281_v49, 16 }
  0xdc   : > { %1649 = vst [vmem:[#allocation4 + $0x9c] sm:$0xf] %v1521_v11  ;;  %v1533_v63 = vshrl.u32 %v1088_v8, 16  ;;  %v1536_v39 = vshll.u32 %v1088_v8, 16  ;;  %v8714_v1 = vrot.slane %v9931_v23, 7  ;;  %v1837_v9 = vshll.u32 %v1379_v21, 16 }
  0xdd   : > { %v1841_v59 = vshrl.u32 %v1379_v21, 16  ;;  %v1847_v34 = vshll.u32 %v1380_v5, 16  ;;  %v1526_v52 = vrot.slane %v1524_v45, 7  ;;  %v640_v11 = vand.u32 15, %v510_v37  ;;  %v7058_v23 = vld [vmem:[#allocation4 + $0x94] sm:$0xf] }
  0xde   : > { %v1535_v62 = vrot.slane %v1533_v63, 7  ;;  %v1851_v43 = vshrl.u32 %v1380_v5, 16  ;;  %v7060_v42 = vld [vmem:[#allocation4 + $0xa0] sm:$0xf0]  ;;  %v1839_v29 = vrot.slane %v1837_v9, 5  ;;  %v1547_v3 = vor.u32 %v9932_v51, %v8714_v1 }
  0xdf   : > { %v1843_v15 = vrot.slane %v1841_v59, 4  ;;  %v1849_v8 = vrot.slane %v1847_v34, 5  ;;  %v1529_v44 = vor.u32 %v1527_v0, %v1526_v52  ;;  %v1531_v21 = vrot.slane %v1526_v52, 4 }
  0xe0   : > { %v1538_v36 = vor.u32 %v1536_v39, %v1535_v62  ;;  %vm1114_vm11 = vcmp.ne.s32.totalorder %v640_v11, 15  ;;  %v6058_v45 = vld [vmem:[#allocation4 + $0x90] sm:$0xf]  ;;  %v1840_v7 = vsel %vm8514_vm4, %v1835_v16, %v1839_v29  ;;  %v1853_v37 = vrot.slane %v1851_v43, 4 }
  0xe1   : > { %v1844_v63 = vor.u32 %v1843_v15, %v1839_v29  ;;  %v5991_v5 = vsel %vm1114_vm11, 1.0, %v9908_v13  ;;  %v8723_v9 = vor.u32 %v7060_v42, %v6066_v55  ;;  %1969 = vst [vmem:[#allocation4 + $0xb0] sm:$0xf] %v1840_v7  ;;  %v1530_v49 = vsel %vm8242_vm8, %v1522_v61, %v1529_v44 }
  0xe2   : > { %v1539_v51 = vsel %vm8242_vm8, %v1531_v21, %v1538_v36  ;;  %v1300_v0 = vrot.slane %v5991_v5, 7  ;;  %v8729_v39 = vor.u32 %v7058_v23, %v6060_v25  ;;  %1650 = vst [vmem:[#allocation4 + $0xa8] sm:$0xf] %v1530_v49  ;;  %v1854_v16 = vor.u32 %v1853_v37, %v1849_v8 }
  0xe3   : > { %v7059_v59 = vld [vmem:[#allocation4 + $0x98] sm:$0xf0]  ;;  %v1845_v34 = vrot.slane %v1844_v63, 4  ;;  %v1540_v15 = vrot.slane %v1535_v62, 4  ;;  %1651 = vst [vmem:[#allocation4 + $0xb4] sm:$0xf] %v1539_v51  ;;  %v923_v42 = vunpack.c.l.bf16 %v8297_v10 }
  0xe4   : > { %v8733_v52 = vsel %vm1266_vm12, %v8431_v35, %v1300_v0  ;;  %v8737_v55 = vsel %vm1266_vm12, %v1300_v0, %v8431_v35  ;;  %v1549_v44 = vrot.slane %v8714_v1, 4  ;;  %v9935_v36 = vshrl.u32 %v8351_v60, 16 }
  0xe5   : > { %9933 = vst [vmem:[#allocation55_spill] sm:$0xff] %v8733_v52  ;;  %v8744_v25 = vor.u32 %v7059_v59, %v6058_v45  ;;  %v1850_v62 = vsel %vm8514_vm4, %v1845_v34, %v1849_v8  ;;  %v1356_v11 = vmul.f32 %v7332_v58, %v8733_v52  ;;  %v1357_v43 = vmul.f32 %v7333_v46, %v8737_v55  ;;  %v7505_v45 = vld [vmem:[#allocation2 + $0x50] sm:$0xff]   ;;  %v7061_v59 = vld [vmem:[#allocation4 + $0xac] sm:$0xf] }
  0xe6   : > { %9934 = vst [vmem:[#allocation56_spill] sm:$0xff] %v8737_v55  ;;  %v8742_v61 = vrot.slane %v9935_v36, 7  ;;  %2575 = vmatmul.bf16.gmra.mxu2 %v8723_v9  ;;  %v1548_v1 = vsel %vm8242_vm8, %v1540_v15, %v1547_v3  ;;  %v9936_v29 = vshll.u32 %v8351_v60, 16  ;;  %v512_v21 = vadd.s32 152, %v8152_v22  ;;  %2516 = vmatmul.bf16.gmra.mxu1 %v8729_v39  ;;  %v6072_v36 = vld [vmem:[#allocation4 + $0xb4] sm:$0xf0] }
  0xe7   : > { %1970 = vst [vmem:[#allocation4 + $0xbc] sm:$0xf] %v1850_v62  ;;  %v9937_v8 = vrot.slane %v8454_v48, 1  ;;  %v1381_v10 = vpack.c.bf16 %v1356_v11, %v1356_v11  ;;  %v1382_v46 = vpack.c.bf16 %v1357_v43, %v1357_v43  ;;  %v514_v7 = vadd.s32 168, %v8152_v22 }
  0xe8   : > { %v1556_v23 = vor.u32 %v9936_v29, %v8742_v61  ;;  %1652 = vst [vmem:[#allocation4 + $0xc0] sm:$0xf] %v1548_v1  ;;  %v9938_v3 = vunpack.c.l.bf16 %v8289_v2  ;;  %v1855_v63 = vrot.slane %v1854_v16, 4  ;;  %v654_v37 = vand.u32 15, %v512_v21  ;;  %2457 = vmatmul.bf16.gmra.mxu0 %v8744_v25 }
  0xe9   : > { %v1019_v58 = vsel %vm974_vm0, %v8158_v30, %v9937_v8  ;;  %v1857_v49 = vshll.u32 %v1381_v10, 16  ;;  %v1861_v51 = vshrl.u32 %v1381_v10, 16  ;;  %v1867_v0 = vshll.u32 %v1382_v46, 16 }
  0xea   : > { %v1068_v60 = vmul.f32 %v8417_v14, %v9938_v3  ;;  %v1557_v5 = vsel %vm8242_vm8, %v1549_v44, %v1556_v23  ;;  %v1871_v34 = vshrl.u32 %v1382_v46, 16  ;;  %v1069_v15 = vmul.f32 %v1019_v58, %v923_v42  ;;  %v6078_v42 = vld [vmem:[#allocation4 + $0xb0] sm:$0xf] }
  0xeb   : > { %2779 = vmatmul.bf16.gmra.mxu3 %v8434_v33  ;;  %1653 = vst [vmem:[#allocation4 + $0xcc] sm:$0xf] %v1557_v5  ;;  %v7336_v2 = vunpack.c.l.bf16 %v7505_v45  ;;  %vm1116_vm13 = vcmp.ne.s32.totalorder %v654_v37, 15  ;;  %v668_v14 = vand.u32 15, %v514_v7  ;;  %v1859_v16 = vrot.slane %v1857_v49, 5 }
  0xec   : > { %v1863_v62 = vrot.slane %v1861_v51, 4  ;;  %v7337_v11 = vunpack.c.h.bf16 %v7505_v45  ;;  %v5992_v44 = vsel %vm1116_vm13, 1.0, %v9908_v13  ;;  %v1869_v43 = vrot.slane %v1867_v0, 5  ;;  %v7506_v0 = vld [vmem:[#allocation2 + $0x58] sm:$0xff]  }
  0xed   : > { %v8772_v1 = vrot.slane %v5992_v44, 7  ;;  %v1873_v29 = vrot.slane %v1871_v34, 4  ;;  %v9940_v23 = vshrl.u32 %v8366_v18, 16  ;;  %v8776_v33 = vor.u32 %v7061_v59, %v6072_v36 }
  0xee   : > { %v7063_v8 = vld [vmem:[#allocation4 + $0xb8] sm:$0xf0]  ;;  %v1860_v58 = vsel %vm8514_vm4, %v1855_v63, %v1859_v16  ;;  %v1864_v10 = vor.u32 %v1863_v62, %v1859_v16  ;;  %v9941_v46 = vshrl.u32 %v8382_v20, 16  ;;  %vm8792_vm14 = vcmp.ne.s32.totalorder %v668_v14, 15 }
  0xef   : > { %9939 = vst [vmem:[#allocation57_spill] sm:$0xff] %v8772_v1  ;;  %v1562_v21 = vrot.slane %v9940_v23, 7  ;;  %v8787_v7 = vsel %vm1266_vm12, %v8431_v35, %v8772_v1  ;;  %v1307_v3 = vsel %vm1266_vm12, %v8772_v1, %v8431_v35  ;;  %v1874_v5 = vor.u32 %v1873_v29, %v1869_v43 }
  0xf0   : > { %v8782_v45 = vrot.slane %v9941_v46, 7  ;;  %1971 = vst [vmem:[#allocation4 + $0xc8] sm:$0xf] %v1860_v58  ;;  %v1865_v63 = vrot.slane %v1864_v10, 4  ;;  %v1358_v59 = vmul.f32 %v7336_v2, %v8787_v7  ;;  %v1359_v49 = vmul.f32 %v7337_v11, %v1307_v3  ;;  %v6070_v11 = vld [vmem:[#allocation4 + $0xa8] sm:$0xf] }
  0xf1   : > { %9942 = vst [vmem:[#allocation58_spill] sm:$0xff] %v8787_v7  ;;  %v1558_v51 = vrot.slane %v8742_v61, 4  ;;  %v8798_v34 = vor.u32 %v7063_v8, %v6078_v42  ;;  %v9945_v36 = vshll.u32 %v8366_v18, 16  ;;  %v1567_v62 = vrot.slane %v1562_v21, 4  ;;  %v7062_v10 = vld [vmem:[#allocation4 + $0xb0] sm:$0xf0] }
  0xf2   : > { %v9946_v44 = vshll.u32 %v8382_v20, 16  ;;  %v1870_v29 = vsel %vm8514_vm4, %v1865_v63, %v1869_v43  ;;  %v1383_v23 = vpack.c.bf16 %v1358_v59, %v1358_v59  ;;  %v1384_v58 = vpack.c.bf16 %v1359_v49, %v1359_v49 }
  0xf3   : > { %v1565_v16 = vor.u32 %v9945_v36, %v1562_v21  ;;  %v1875_v2 = vrot.slane %v1874_v5, 4  ;;  %1972 = vst [vmem:[#allocation4 + $0xd4] sm:$0xf] %v1870_v29  ;;  %v7340_v21 = vunpack.c.l.bf16 %v7506_v0  ;;  %v7341_v42 = vunpack.c.h.bf16 %v7506_v0 }
  0xf4   : > { %v1574_v14 = vor.u32 %v9946_v44, %v8782_v45  ;;  %v1877_v8 = vshll.u32 %v1383_v23, 16  ;;  %v1881_v20 = vshrl.u32 %v1383_v23, 16  ;;  %v1887_v46 = vshll.u32 %v1384_v58, 16 }
  0xf5   : > { %v1566_v61 = vsel %vm8242_vm8, %v1558_v51, %v1565_v16  ;;  %v5993_v43 = vsel %vm8792_vm14, 1.0, %v9908_v13  ;;  %v1093_v3 = vpack.c.bf16 %v1068_v60, %v1068_v60  ;;  %v1094_v5 = vpack.c.bf16 %v1069_v15, %v1069_v15 }
  0xf6   : > { %v1575_v18 = vsel %vm8242_vm8, %v1567_v62, %v1574_v14  ;;  %1654 = vst [vmem:[#allocation4 + $0xd8] sm:$0xf] %v1566_v61  ;;  %v1308_v63 = vrot.slane %v5993_v43, 7  ;;  %v1891_v59 = vshrl.u32 %v1384_v58, 16  ;;  %v8814_v49 = vor.u32 %v7062_v10, %v6070_v11  ;;  %2580 = vmatmul.bf16.gmra.mxu2 %v8798_v34  ;;  %2521 = vmatmul.bf16.gmra.mxu1 %v8776_v33 }
  0xf7   : > { %1655 = vst [vmem:[#allocation4 + $0xe4] sm:$0xf] %v1575_v18  ;;  %v1879_v51 = vrot.slane %v1877_v8, 5  ;;  %v1883_v36 = vrot.slane %v1881_v20, 4  ;;  %v1889_v0 = vrot.slane %v1887_v46, 5  ;;  %v1578_v29 = vshrl.u32 %v1093_v3, 16 }
  0xf8   : > { %v1309_v16 = vsel %vm1266_vm12, %v8431_v35, %v1308_v63  ;;  %v1311_v62 = vsel %vm1266_vm12, %v1308_v63, %v8431_v35  ;;  %v1893_v37 = vrot.slane %v1891_v59, 4  ;;  %v1587_v23 = vshrl.u32 %v1094_v5, 16  ;;  %2462 = vmatmul.bf16.gmra.mxu0 %v8814_v49 }
  0xf9   : > { %v1880_v60 = vsel %vm8514_vm4, %v1875_v2, %v1879_v51  ;;  %v1884_v15 = vor.u32 %v1883_v36, %v1879_v51  ;;  %v1360_v44 = vmul.f32 %v7340_v21, %v1309_v16  ;;  %v1361_v14 = vmul.f32 %v7341_v42, %v1311_v62 }
  0xfa   : > { %1973 = vst [vmem:[#allocation4 + $0xe0] sm:$0xf] %v1880_v60  ;;  %v1894_v58 = vor.u32 %v1893_v37, %v1889_v0  ;;  %v1581_v18 = vshll.u32 %v1093_v3, 16  ;;  %v1590_v8 = vshll.u32 %v1094_v5, 16  ;;  %v1580_v43 = vrot.slane %v1578_v29, 7 }
  0xfb   : > { %v1885_v11 = vrot.slane %v1884_v15, 4  ;;  %v1385_v10 = vpack.c.bf16 %v1360_v44, %v1360_v44  ;;  %v1386_v61 = vpack.c.bf16 %v1361_v14, %v1361_v14  ;;  %2784 = vmatmul.bf16.gmra.mxu3 %v8504_v4  ;;  %v8828_v63 = vrot.slane %v1587_v23, 7  ;;  %v6090_v4 = vld [vmem:[#allocation4 + $0xc8] sm:$0xf]  ;;  %v7066_v5 = vld [vmem:[#allocation4 + $0xd0] sm:$0xf0] }
  0xfc   : > { %v1895_v20 = vrot.slane %v1894_v58, 4  ;;  %v494_v59 = vadd.s32 8, %v8152_v22  ;;  %v496_v3 = vadd.s32 24, %v8152_v22  ;;  %v1576_v62 = vrot.slane %v8782_v45, 4  ;;  %v6082_v23 = vld [vmem:[#allocation4 + $0xc0] sm:$0xf] }
  0xfd   : > { %v1890_v2 = vsel %vm8514_vm4, %v1885_v11, %v1889_v0  ;;  %v1897_v46 = vshll.u32 %v1385_v10, 16  ;;  %v1901_v21 = vshrl.u32 %v1385_v10, 16  ;;  %v1907_v42 = vshll.u32 %v1386_v61, 16  ;;  %9947 = vst [vmem:[#allocation59_spill] sm:$0xff] %v8828_v63 }
  0xfe   : > { %1974 = vst [vmem:[#allocation4 + $0xec] sm:$0xf] %v1890_v2  ;;  %v1583_v0 = vor.u32 %v1581_v18, %v1580_v43  ;;  %v1585_v37 = vrot.slane %v1580_v43, 4  ;;  %v1592_v60 = vor.u32 %v1590_v8, %v8828_v63  ;;  %v528_v14 = vand.u32 15, %v494_v59  ;;  %v8844_v18 = vld [vmem:[#allocation2 + $0x8] sm:$0xff]   ;;  %v7497_v8 = vld [vmem:[#allocation2 + $0x10] sm:$0xff]  }
  0xff   : > { %v1899_v51 = vrot.slane %v1897_v46, 5  ;;  %v1903_v36 = vrot.slane %v1901_v21, 4  ;;  %v8831_v16 = vrot.slane %v1907_v42, 5  ;;  %v542_v29 = vand.u32 15, %v496_v3  ;;  %v7068_v7 = vld [vmem:[#allocation4 + $0xe0] sm:$0xf0] }
 0x100   : > { %v1584_v58 = vsel %vm8242_vm8, %v1576_v62, %v1583_v0  ;;  %v1593_v11 = vsel %vm8242_vm8, %v1585_v37, %v1592_v60  ;;  %v8842_v10 = vor.u32 %v7066_v5, %v6090_v4  ;;  %vm1098_vm15 = vcmp.ne.s32.totalorder %v528_v14, 15 }
 0x101   : > { %9948 = vst [vmem:[#allocation60_spill] sm:$0xff] %v8831_v16  ;;  %v1900_v15 = vsel %vm8514_vm4, %v1895_v20, %v1899_v51  ;;  %v1904_v44 = vor.u32 %v1903_v36, %v1899_v51  ;;  %v7065_v20 = vld [vmem:[#allocation4 + $0xc8] sm:$0xf0]  ;;  %v7301_v2 = vunpack.c.h.bf16 %v8844_v18  ;;  %v7304_v46 = vunpack.c.l.bf16 %v7497_v8 }
 0x102   : > { %1975 = vst [vmem:[#allocation4 + $0xf8] sm:$0xf] %v1900_v15  ;;  %vm1100_vm1 = vcmp.ne.s32.totalorder %v542_v29, 15  ;;  %v8848_v21 = vsel %vm1098_vm15, 1.0, %v9908_v13  ;;  %v1911_v43 = vshrl.u32 %v1386_v61, 16  ;;  %v8855_v3 = vor.u32 %v7065_v20, %v6082_v23 }
 0x103   : > { %v1905_v45 = vrot.slane %v1904_v44, 4  ;;  %1656 = vst [vmem:[#allocation4 + $0xf0] sm:$0xf] %v1584_v58  ;;  %v5984_v59 = vsel %vm1100_vm1, 1.0, %v9908_v13  ;;  %v9830_v51 = vrot.slane %v8848_v21, 7  ;;  %v7305_v62 = vunpack.c.h.bf16 %v7497_v8 }
 0x104   : > { %1657 = vst [vmem:[#allocation4 + $0xfc] sm:$0xf] %v1593_v11  ;;  %v1272_v36 = vrot.slane %v5984_v59, 7  ;;  %v8857_v4 = vrot.slane %v1911_v43, 4  ;;  %v498_v20 = vadd.s32 40, %v8152_v22 }
 0x105   : > { %v1910_v42 = vsel %vm8514_vm4, %v1905_v45, %v8831_v16  ;;  %v8863_v5 = vsel %vm1266_vm12, %v9830_v51, %v8431_v35  ;;  %v7498_v51 = vld [vmem:[#allocation2 + $0x18] sm:$0xff]  }
 0x106   : > { %1976 = vst [vmem:[#allocation4 + $0x104] sm:$0xf] %v1910_v42  ;;  %2585 = vmatmul.bf16.gmra.mxu2 %v8842_v10  ;;  %v8868_v61 = vsel %vm1266_vm12, %v8431_v35, %v1272_v36  ;;  %v1341_v0 = vmul.f32 %v7301_v2, %v8863_v5  ;;  %v8875_v60 = vsel %vm1266_vm12, %v1272_v36, %v8431_v35  ;;  %v556_v36 = vand.u32 15, %v498_v20 }
 0x107   : > { %9949 = vst [vmem:[#allocation61_spill] sm:$0xff] %v8857_v4  ;;  %v1342_v15 = vmul.f32 %v7304_v46, %v8868_v61  ;;  %v1343_v44 = vmul.f32 %v7305_v62, %v8875_v60 }
 0x108   : > { %9950 = vst [vmem:[#allocation62_spill] sm:$0xff] %v8863_v5  ;;  %v1366_v14 = vpack.c.bf16 %v1341_v0, %v1341_v0  ;;  %2467 = vmatmul.bf16.gmra.mxu0 %v8855_v3  ;;  %v6102_v0 = vld [vmem:[#allocation4 + $0xe0] sm:$0xf]  ;;  %vm1102_vm2 = vcmp.ne.s32.totalorder %v556_v36, 15 }
 0x109   : > { %9951 = vst [vmem:[#allocation63_spill] sm:$0xff] %v8868_v61  ;;  %v1367_v29 = vpack.c.bf16 %v1342_v15, %v1342_v15  ;;  %v1368_v23 = vpack.c.bf16 %v1343_v44, %v1343_v44  ;;  %v7069_v15 = vld [vmem:[#allocation4 + $0xe8] sm:$0xf0]  ;;  %v6114_v57 = vld [vmem:[#allocation4 + $0xf8] sm:$0xf]  ;;  %v7078_v5 = vld [vmem:[#allocation8 + $0x40] sm:$0xff] }
 0x10a   : > { %9952 = vst [vmem:[#allocation64_spill] sm:$0xff] %v8875_v60  ;;  %v1707_v58 = vshll.u32 %v1366_v14, 16  ;;  %v1711_v11 = vshrl.u32 %v1366_v14, 16  ;;  %v5985_v14 = vsel %vm1102_vm2, 1.0, %v9908_v13  ;;  %v7172_v13 = vld [vmem:[#allocation8 + $0x228] sm:$0xff] }
 0x10b   : > { %2789 = vmatmul.bf16.gmra.mxu3 %v8605_v47  ;;  %v1717_v45 = vshll.u32 %v1367_v29, 16  ;;  %v1721_v8 = vshrl.u32 %v1367_v29, 16  ;;  %v1727_v43 = vshll.u32 %v1368_v23, 16  ;;  %v1276_v1 = vrot.slane %v5985_v14, 7 }
 0x10c   : > { %v8882_v2 = vrot.slane %v1707_v58, 5  ;;  %v1713_v42 = vrot.slane %v1711_v11, 4  ;;  %v8886_v58 = vor.u32 %v7069_v15, %v6102_v0  ;;  %v6094_v11 = vld [vmem:[#allocation4 + $0xd8] sm:$0xf]  ;;  %v1731_v14 = vshrl.u32 %v1368_v23, 16 }
 0x10d   : > { %v1719_v46 = vrot.slane %v1717_v45, 5  ;;  %v1723_v59 = vrot.slane %v1721_v8, 4  ;;  %v1729_v47 = vrot.slane %v1727_v43, 5  ;;  %v7308_v8 = vunpack.c.l.bf16 %v7498_v51 }
 0x10e   : > { %v1714_v62 = vor.u32 %v1713_v42, %v8882_v2  ;;  %v8894_v42 = vsel %vm1266_vm12, %v8431_v35, %v1276_v1  ;;  %v8904_v15 = vsel %vm1266_vm12, %v1276_v1, %v8431_v35 }
 0x10f   : > { %v1724_v37 = vor.u32 %v1723_v59, %v1719_v46  ;;  %9953 = vst [vmem:[#allocation65_spill] sm:$0xff] %v8894_v42  ;;  %v8897_v59 = vor.u32 %v7068_v7, %v6094_v11  ;;  %v7085_v7 = vld [vmem:[#allocation8 + $0x78] sm:$0xff] }
 0x110   : > { %v1715_v44 = vrot.slane %v1714_v62, 4  ;;  %v7309_v62 = vunpack.c.h.bf16 %v7498_v51  ;;  %9954 = vst [vmem:[#allocation66_spill] sm:$0xff] %v8904_v15  ;;  %2820 = vmatpush.bf16.msra.mxu0 %v7085_v7  ;;  %v7691_v7 = vld [vmem:[#allocation2 + $0x20] sm:$0xff]  }
 0x111   : > { %v1725_v29 = vrot.slane %v1724_v37, 4  ;;  %v1344_v37 = vmul.f32 %v7308_v8, %v8894_v42  ;;  %v1733_v8 = vrot.slane %v1731_v14, 4 }
 0x112   : > { %v1720_v45 = vsel %vm8514_vm4, %v1715_v44, %v1719_v46  ;;  %v2492_v43 = vpop.f32.mrf.mxu1  ;;  %v1345_v44 = vmul.f32 %v7309_v62, %v8904_v15  ;;  %v7082_v15 = vld [vmem:[#allocation8 + $0x60] sm:$0xff] }
 0x113   : > { %v1730_v20 = vsel %vm8514_vm4, %v1725_v29, %v1729_v47  ;;  %1957 = vst [vmem:[#allocation4 + $0x20] sm:$0xf] %v1720_v45  ;;  %v1369_v46 = vpack.c.bf16 %v1344_v37, %v1344_v37  ;;  %v1734_v1 = vor.u32 %v1733_v8, %v1729_v47  ;;  %v6106_v47 = vld [vmem:[#allocation4 + $0xf0] sm:$0xf]  ;;  %v7312_v8 = vunpack.c.l.bf16 %v7691_v7 }
 0x114   : > { %1958 = vst [vmem:[#allocation4 + $0x2c] sm:$0xf] %v1730_v20  ;;  %v2433_v36 = vpop.f32.mrf.mxu0  ;;  %v1370_v11 = vpack.c.bf16 %v1345_v44, %v1345_v44  ;;  %2821 = vmatpush.bf16.msra.mxu0 %v7084_v19 }
 0x115   : > { %v8900_v0 = vadd.f32 %v2492_v43, %v2433_v36  ;;  %v1737_v29 = vshll.u32 %v1369_v46, 16  ;;  %v1741_v45 = vshrl.u32 %v1369_v46, 16  ;;  %v1735_v46 = vrot.slane %v1734_v1, 4  ;;  %v7083_v1 = vld [vmem:[#allocation8 + $0x68] sm:$0xff] }
 0x116   : > { %2590 = vmatmul.bf16.gmra.mxu2 %v8886_v58  ;;  %v1747_v62 = vshll.u32 %v1370_v11, 16 }
 0x117   : > { %v1739_v51 = vrot.slane %v1737_v29, 5  ;;  %v1743_v20 = vrot.slane %v1741_v45, 4  ;;  %v7095_v45 = vld [vmem:[#allocation4 + $0xf8] sm:$0xf0] }
 0x118   : > { %2472 = vmatmul.bf16.gmra.mxu0 %v8897_v59  ;;  %v1749_v52 = vrot.slane %v1747_v62, 5  ;;  %v6107_v19 = vor.u32 %v7095_v45, %v6106_v47 }
 0x119   : > { %v1744_v36 = vor.u32 %v1743_v20, %v1739_v51  ;;  %v1740_v44 = vsel %vm8514_vm4, %v1735_v46, %v1739_v51  ;;  %2822 = vmatpush.bf16.msra.mxu0 %v7083_v1 }
 0x11a   : > { %v8909_v43 = vpop.f32.mrf.mxu3  ;;  %v8911_v37 = vpop.f32.mrf.mxu1  ;;  %1959 = vst [vmem:[#allocation4 + $0x38] sm:$0xf] %v1740_v44  ;;  %v1751_v44 = vshrl.u32 %v1370_v11, 16 }
 0x11b   : > { %2794 = vmatmul.bf16.gmra.mxu3 %v8665_v6  ;;  %v1745_v55 = vrot.slane %v1744_v36, 4  ;;  %v7096_v6 = vld [vmem:[#allocation4 + $0x100] sm:$0xf0]  ;;  %v9955_v36 = vrot.slane %v8437_v26, 7 }
 0x11c   : > { %v8913_v23 = vpop.f32.mrf.mxu0  ;;  %v6115_v29 = vor.u32 %v7096_v6, %v6114_v57  ;;  %v1753_v26 = vrot.slane %v1751_v44, 4 }
 0x11d   : > { %v1750_v14 = vsel %vm8514_vm4, %v1745_v55, %v1749_v52  ;;  %v8925_v62 = vsel %vm1266_vm12, %v8431_v35, %v9955_v36  ;;  %2823 = vmatpush.bf16.msra.mxu0 %v7082_v15  ;;  %v467_v15 = vld [vmem:[#allocation2 + $0x4] sm:$0xf] }
 0x11e   : > { %1960 = vst [vmem:[#allocation4 + $0x44] sm:$0xf] %v1750_v14  ;;  %v1346_v55 = vmul.f32 %v7312_v8, %v8925_v62  ;;  %v1754_v47 = vor.u32 %v1753_v26, %v1749_v52  ;;  %v7045_v52 = vld [vmem:[#allocation4 + $0x28] sm:$0xf0]  ;;  %v1193_v26 = vunpack.c.l.bf16 %v467_v15 }
 0x11f   : > { %9956 = vst [vmem:[#allocation67_spill] sm:$0xff] %v8925_v62 }
 0x120   : > { %v1371_v46 = vpack.c.bf16 %v1346_v55, %v1346_v55  ;;  %v1755_v11 = vrot.slane %v1754_v47, 4  ;;  %v7092_v55 = vld [vmem:[#allocation8 + $0xb0] sm:$0xff]  ;;  %v9957_v47 = vrot.slane %v8848_v21, 7 }
 0x121   : > { %v6018_v62 = vld [vmem:[#allocation4 + $0x38] sm:$0xf] }
 0x122   : > { %v8919_v20 = vpop.f32.mrf.mxu3  ;;  %v2497_v51 = vpop.f32.mrf.mxu1  ;;  %v1757_v14 = vshll.u32 %v1371_v46, 16  ;;  %v1761_v7 = vshrl.u32 %v1371_v46, 16  ;;  %v6006_v46 = vld [vmem:[#allocation4 + $0x20] sm:$0xf] }
 0x124   : > { %v2438_v57 = vpop.f32.mrf.mxu0  ;;  %v1759_v36 = vrot.slane %v1757_v14, 5  ;;  %v1763_v42 = vrot.slane %v1761_v7, 4  ;;  %v7091_v14 = vld [vmem:[#allocation8 + $0xa8] sm:$0xff]  ;;  %v7300_v7 = vunpack.c.l.bf16 %v8844_v18 }
 0x125   : > { %v8928_v6 = vadd.f32 %v2497_v51, %v2438_v57  ;;  %v7081_v57 = vld [vmem:[#allocation8 + $0x58] sm:$0xff] }
 0x126   : > { %2595 = vmatmul.bf16.gmra.mxu2 %v6115_v29  ;;  %v7093_v29 = vld [vmem:[#allocation8 + $0xb8] sm:$0xff]  ;;  %v1764_v45 = vor.u32 %v1763_v42, %v1759_v36  ;;  %2824 = vmatpush.bf16.msra.mxu0 %v7081_v57 }
 0x127   : > { %2879 = vmatpush.bf16.msrb.mxu1 %v7093_v29 }
 0x128   : > { %2477 = vmatmul.bf16.gmra.mxu0 %v6107_v19  ;;  %v1765_v51 = vrot.slane %v1764_v45, 4  ;;  %v1339_v45 = vmul.f32 %v8431_v35, %v1193_v26 }
 0x12a   : > { %v8931_v60 = vpop.f32.mrf.mxu3  ;;  %v8933_v8 = vpop.f32.mrf.mxu1  ;;  %v1770_v19 = vsel %vm8514_vm4, %v1765_v51, %v8502_v32  ;;  %v8951_v32 = vsel %vm1266_vm12, %v8431_v35, %v9957_v47  ;;  %v1364_v18 = vpack.c.bf16 %v1339_v45, %v1339_v45  ;;  %v7158_v35 = vld [vmem:[#allocation8 + $0x1b8] sm:$0xff] }
 0x12b   : > { %2799 = vmatmul.bf16.gmra.mxu3 %v8744_v25  ;;  %v1760_v25 = vsel %vm8514_vm4, %v1755_v11, %v1759_v36  ;;  %2880 = vmatpush.bf16.msrb.mxu1 %v7092_v55  ;;  %1962 = vst [vmem:[#allocation4 + $0x5c] sm:$0xf] %v1770_v19  ;;  %v8945_v36 = vor.u32 %v7045_v52, %v6006_v46  ;;  %v7080_v55 = vld [vmem:[#allocation8 + $0x50] sm:$0xff] }
 0x12c   : > { %v8935_v1 = vpop.f32.mrf.mxu0  ;;  %1961 = vst [vmem:[#allocation4 + $0x50] sm:$0xf] %v1760_v25  ;;  %v1340_v11 = vmul.f32 %v7300_v7, %v8951_v32  ;;  %v7090_v25 = vld [vmem:[#allocation8 + $0xa0] sm:$0xff]  ;;  %2825 = vmatpush.bf16.msra.mxu0 %v7080_v55  ;;  %v1688_v21 = vshrl.u32 %v1364_v18, 16  ;;  %v1691_v57 = vshll.u32 %v1364_v18, 16  ;;  %v7088_v55 = vld [vmem:[#allocation8 + $0x90] sm:$0xff]  ;;  %3331 = vmatpush.bf16.msrb.mxu2 %v7158_v35 }
 0x12d   : > { %9958 = vst [vmem:[#allocation68_spill] sm:$0xff] %v8951_v32 }
 0x12e   : > { %v1365_v19 = vpack.c.bf16 %v1340_v11, %v1340_v11  ;;  %v1690_v7 = vrot.slane %v1688_v21, 4  ;;  %v1693_v26 = vrot.slane %v1691_v57, 5 }
 0x12f   : > { %2881 = vmatpush.bf16.msrb.mxu1 %v7091_v14 }
 0x130   : > { %v1697_v46 = vshll.u32 %v1365_v19, 16  ;;  %v1701_v15 = vshrl.u32 %v1365_v19, 16  ;;  %v1694_v32 = vor.u32 %v1693_v26, %v1690_v7  ;;  %v7166_v19 = vld [vmem:[#allocation8 + $0x1f8] sm:$0xff] }
 0x131   : > { %3390 = vmatpush.bf16.msra.mxu3 %v7166_v19 }
 0x132   : > { %v8942_v42 = vpop.f32.mrf.mxu3  ;;  %v2502_v44 = vpop.f32.mrf.mxu1  ;;  %v1699_v47 = vrot.slane %v1697_v46, 5  ;;  %v1703_v45 = vrot.slane %v1701_v15, 4  ;;  %v1695_v18 = vrot.slane %v1694_v32, 4  ;;  %v7087_v32 = vld [vmem:[#allocation8 + $0x88] sm:$0xff] }
 0x133   : > { %2882 = vmatpush.bf16.msrb.mxu1 %v7090_v25  ;;  %v7048_v25 = vld [vmem:[#allocation4 + $0x40] sm:$0xf0]  ;;  %v6030_v19 = vld [vmem:[#allocation4 + $0x50] sm:$0xf] }
 0x134   : > { %v2443_v29 = vpop.f32.mrf.mxu0  ;;  %v1700_v21 = vsel %vm8514_vm4, %v1695_v18, %v1699_v47  ;;  %v6019_v7 = vor.u32 %v7048_v25, %v6018_v62 }
 0x135   : > { %v8955_v51 = vadd.f32 %v2502_v44, %v2443_v29  ;;  %v7089_v44 = vld [vmem:[#allocation8 + $0x98] sm:$0xff]  ;;  %v7079_v29 = vld [vmem:[#allocation8 + $0x48] sm:$0xff]  ;;  %1955 = vst [vmem:[#allocation4 + $0x8] sm:$0xf] %v1700_v21 }
 0x136   : > { %2826 = vmatpush.bf16.msra.mxu0 %v7079_v29  ;;  %v7051_v21 = vld [vmem:[#allocation4 + $0x58] sm:$0xf0] }
 0x137   : > { %2883 = vmatpush.bf16.msrb.mxu1 %v7089_v44 }
 0x138   : > { %2550 = vmatmul.bf16.vlgmr.msrb.gmra.mxu0 %v8945_v36 }
 0x13a   : > { %v8961_v14 = vpop.f32.mrf.mxu1  ;;  %2827 = vmatpush.bf16.msra.mxu0 %v7078_v5 }
 0x13b   : > { %2804 = vmatmul.bf16.gmra.mxu3 %v8814_v49  ;;  %v8959_v52 = vpop.f32.mrf.mxu3  ;;  %v1704_v49 = vor.u32 %v1703_v45, %v1699_v47  ;;  %2884 = vmatpush.bf16.msrb.mxu1 %v7088_v55  ;;  %v7086_v45 = vld [vmem:[#allocation8 + $0x80] sm:$0xff] }
 0x13c   : > { %v8963_v11 = vpop.f32.mrf.mxu0  ;;  %v6222_v55 = vld [vmem:[#allocation4 + $0x8] sm:$0xf] }
 0x13d   : > { %v1705_v61 = vrot.slane %v1704_v49, 4  ;;  %v7174_v49 = vld [vmem:[#allocation8 + $0x238] sm:$0xff] }
 0x13e   : > { %3449 = vmatpush.bf16.msrb.mxu0 %v7174_v49 }
 0x13f   : > { %v1710_v46 = vsel %vm8514_vm4, %v1705_v61, %v8882_v2  ;;  %2885 = vmatpush.bf16.msrb.mxu1 %v7087_v32  ;;  %v7165_v32 = vld [vmem:[#allocation8 + $0x1f0] sm:$0xff] }
 0x140   : > { %1956 = vst [vmem:[#allocation4 + $0x14] sm:$0xf] %v1710_v46  ;;  %3391 = vmatpush.bf16.msra.mxu3 %v7165_v32 }
 0x142   : > { %v2507_v15 = vpop.f32.mrf.mxu1 }
 0x143   : > { %v8967_v57 = vpop.f32.mrf.mxu3  ;;  %2886 = vmatpush.bf16.msrb.mxu1 %v7086_v45 }
 0x144   : > { %9959 = vst [vmem:[#allocation69_spill] sm:$0xff] %v8967_v57  ;;  %v2566_v44 = vpop.f32.mrf.mxu2  ;;  %v2448_v26 = vpop.f32.mrf.mxu0  ;;  %v7164_v57 = vld [vmem:[#allocation8 + $0x1e8] sm:$0xff] }
 0x145   : > { %v2508_v29 = vadd.f32 %v2507_v15, %v2448_v26  ;;  %3392 = vmatpush.bf16.msra.mxu3 %v7164_v57 }
 0x147   : > { %v8972_v47 = vadd.f32 %v2566_v44, %v2508_v29  ;;  %v7042_v61 = vld [vmem:[#allocation4 + $0x10] sm:$0xf0] }
 0x148   : > { %2555 = vmatmul.bf16.gmra.mxu0 %v6019_v7  ;;  %v6223_v5 = vor.u32 %v7042_v61, %v6222_v55 }
 0x14a   : > { %v8975_v2 = vpop.f32.mrf.mxu1  ;;  %2887 = vmatmul.bf16.vlgmr.msrb.gmra.mxu1 %v6223_v5  ;;  %v7173_v5 = vld [vmem:[#allocation8 + $0x230] sm:$0xff] }
 0x14b   : > { %2809 = vmatmul.bf16.gmra.mxu3 %v8855_v3  ;;  %v6031_v3 = vor.u32 %v7051_v21, %v6030_v19  ;;  %3450 = vmatpush.bf16.msrb.mxu0 %v7173_v5  ;;  %v7040_v21 = vld [vmem:[#allocation4 + $0x4] sm:$0xf] }
 0x14c   : > { %v8979_v62 = vpop.f32.mrf.mxu0  ;;  %v8981_v25 = vpop.f32.mrf.mxu2 }
 0x14e   : > { %v8977_v18 = vpop.f32.mrf.mxu3 }
 0x14f   : > { %3451 = vmatpush.bf16.msrb.mxu0 %v7172_v13 }
 0x152   : > { %v2512_v46 = vpop.f32.mrf.mxu1 }
 0x155   : > { %v2453_v44 = vpop.f32.mrf.mxu0 }
 0x156   : > { %v8983_v15 = vpop.f32.mrf.mxu3  ;;  %v2513_v26 = vadd.f32 %v2512_v46, %v2453_v44  ;;  %v6216_v46 = vld [vmem:[#allocation4 + $0xc] sm:$0xf0] }
 0x158   : > { %v2571_v29 = vpop.f32.mrf.mxu2  ;;  %2560 = vmatmul.bf16.gmra.mxu0 %v6031_v3 }
 0x159   : > { %v2572_v45 = vadd.f32 %v2571_v29, %v2513_v26  ;;  %v6219_v26 = vor.u32 %v7040_v21, %v6216_v46 }
 0x15a   : > { %v8986_v49 = vpop.f32.mrf.mxu1  ;;  %2892 = vmatmul.bf16.gmra.mxu1 %v8945_v36 }
 0x15b   : > { %2814 = vmatmul.bf16.gmra.mxu3 %v8897_v59 }
 0x15d   : > { %v8990_v61 = vpop.f32.mrf.mxu0 }
 0x15e   : > { %v8988_v55 = vpop.f32.mrf.mxu3 }
 0x160   : > { %v8993_v19 = vpop.f32.mrf.mxu2 }
 0x163   : > { %v2517_v32 = vpop.f32.mrf.mxu1 }
 0x165   : > { %v2458_v29 = vpop.f32.mrf.mxu0 }
 0x166   : > { %v8995_v44 = vpop.f32.mrf.mxu3  ;;  %v2518_v59 = vadd.f32 %v2517_v32, %v2458_v29  ;;  %v7163_v29 = vld [vmem:[#allocation8 + $0x1e0] sm:$0xff] }
 0x167   : > { %3393 = vmatpush.bf16.msra.mxu3 %v7163_v29 }
 0x168   : > { %2828 = vmatmul.bf16.vlgmr.msra.gmra.mxu0 %v6219_v26 }
 0x169   : > { %v2576_v54 = vpop.f32.mrf.mxu2 }
 0x16a   : > { %v2577_v53 = vadd.f32 %v2576_v54, %v2518_v59  ;;  %2897 = vmatmul.bf16.gmra.mxu1 %v6019_v7  ;;  %v7157_v59 = vld [vmem:[#allocation8 + $0x1b0] sm:$0xff] }
 0x16b   : > { %v2519_v50 = vpop.f32.mrf.mxu1  ;;  %3332 = vmatpush.bf16.msrb.mxu2 %v7157_v59  ;;  %v7162_v59 = vld [vmem:[#allocation8 + $0x1d8] sm:$0xff] }
 0x16c   : > { %3394 = vmatpush.bf16.msra.mxu3 %v7162_v59 }
 0x16d   : > { %v2460_v36 = vpop.f32.mrf.mxu0 }
 0x16e   : > { %v8997_v16 = vpop.f32.mrf.mxu3  ;;  %v8999_v5 = vadd.f32 %v2519_v50, %v2460_v36  ;;  %v7171_v36 = vld [vmem:[#allocation8 + $0x220] sm:$0xff] }
 0x16f   : > { %3452 = vmatpush.bf16.msrb.mxu0 %v7171_v36  ;;  %v7155_v36 = vld [vmem:[#allocation8 + $0x1a0] sm:$0xff] }
 0x171   : > { %v9001_v4 = vpop.f32.mrf.mxu2 }
 0x173   : > { %v2522_v27 = vpop.f32.mrf.mxu1 }
 0x175   : > { %v2463_v46 = vpop.f32.mrf.mxu0 }
 0x176   : > { %v9003_v21 = vpop.f32.mrf.mxu3  ;;  %v2523_v54 = vadd.f32 %v2522_v27, %v2463_v46 }
 0x178   : > { %2833 = vmatmul.bf16.gmra.mxu0 %v8259_v41 }
 0x179   : > { %v2581_v32 = vpop.f32.mrf.mxu2 }
 0x17a   : > { %v2582_v57 = vadd.f32 %v2581_v32, %v2523_v54  ;;  %2902 = vmatmul.bf16.gmra.mxu1 %v6031_v3 }
 0x17d   : > { %v9009_v50 = vpop.f32.mrf.mxu0 }
 0x17e   : > { %v2785_v26 = vpop.f32.mrf.mxu3 }
 0x17f   : > { %v9007_v7 = vadd.f32 %v2785_v26, %v8972_v47  ;;  %v7156_v26 = vld [vmem:[#allocation8 + $0x1a8] sm:$0xff] }
 0x180   : > { %3333 = vmatpush.bf16.msrb.mxu2 %v7156_v26 }
 0x181   : > { %v9011_v35 = vpop.f32.mrf.mxu2 }
 0x184   : > { %3334 = vmatpush.bf16.msrb.mxu2 %v7155_v36 }
 0x185   : > { %v2468_v27 = vpop.f32.mrf.mxu0 }
 0x186   : > { %v9013_v13 = vpop.f32.mrf.mxu3  ;;  %v2528_v41 = vadd.f32 %v8909_v43, %v2468_v27 }
 0x188   : > { %2838 = vmatmul.bf16.gmra.mxu0 %v8387_v24 }
 0x189   : > { %v2586_v46 = vpop.f32.mrf.mxu2 }
 0x18a   : > { %v2587_v47 = vadd.f32 %v2586_v46, %v2528_v41  ;;  %2907 = vmatmul.bf16.gmra.mxu1 %v8589_v31 }
 0x18d   : > { %v9019_v3 = vpop.f32.mrf.mxu0 }
 0x18e   : > { %v2790_v54 = vpop.f32.mrf.mxu3 }
 0x18f   : > { %v9017_v32 = vadd.f32 %v2790_v54, %v2572_v45  ;;  %v7170_v45 = vld [vmem:[#allocation8 + $0x218] sm:$0xff] }
 0x190   : > { %3453 = vmatpush.bf16.msrb.mxu0 %v7170_v45 }
 0x191   : > { %v9022_v29 = vpop.f32.mrf.mxu2 }
 0x192   : > { %9960 = vst [vmem:[#allocation70_spill] sm:$0xff] %v9022_v29 }
 0x195   : > { %v2473_v43 = vpop.f32.mrf.mxu0 }
 0x196   : > { %v9024_v63 = vpop.f32.mrf.mxu3  ;;  %v2533_v27 = vadd.f32 %v8931_v60, %v2473_v43  ;;  %v7161_v43 = vld [vmem:[#allocation8 + $0x1d0] sm:$0xff] }
 0x197   : > { %3395 = vmatpush.bf16.msra.mxu3 %v7161_v43 }
 0x198   : > { %2843 = vmatmul.bf16.gmra.mxu0 %v8401_v17 }
 0x199   : > { %v2591_v24 = vpop.f32.mrf.mxu2 }
 0x19a   : > { %v2592_v41 = vadd.f32 %v2591_v24, %v2533_v27  ;;  %2912 = vmatmul.bf16.gmra.mxu1 %v8671_v12  ;;  %v7154_v24 = vld [vmem:[#allocation8 + $0x198] sm:$0xff] }
 0x19b   : > { %3335 = vmatpush.bf16.msrb.mxu2 %v7154_v24  ;;  %v7152_v24 = vld [vmem:[#allocation8 + $0x188] sm:$0xff] }
 0x19d   : > { %v2475_v54 = vpop.f32.mrf.mxu0 }
 0x19e   : > { %v2795_v31 = vpop.f32.mrf.mxu3  ;;  %v2535_v26 = vadd.f32 %v8942_v42, %v2475_v54  ;;  %v7169_v42 = vld [vmem:[#allocation8 + $0x210] sm:$0xff] }
 0x19f   : > { %v9028_v46 = vadd.f32 %v2795_v31, %v2577_v53  ;;  %3454 = vmatpush.bf16.msrb.mxu0 %v7169_v42 }
 0x1a1   : > { %v2593_v59 = vpop.f32.mrf.mxu2 }
 0x1a2   : > { %v2594_v22 = vadd.f32 %v2593_v59, %v2535_v26  ;;  %v7153_v26 = vld [vmem:[#allocation8 + $0x190] sm:$0xff] }
 0x1a3   : > { %3336 = vmatpush.bf16.msrb.mxu2 %v7153_v26  ;;  %v7167_v26 = vld [vmem:[#allocation8 + $0x200] sm:$0xff] }
 0x1a5   : > { %v2478_v60 = vpop.f32.mrf.mxu0 }
 0x1a6   : > { %v9032_v29 = vpop.f32.mrf.mxu3  ;;  %v2538_v17 = vadd.f32 %v8959_v52, %v2478_v60 }
 0x1a7   : > { %3337 = vmatpush.bf16.msrb.mxu2 %v7152_v24 }
 0x1a8   : > { %2848 = vmatmul.bf16.gmra.mxu0 %v8490_v38  ;;  %v7160_v38 = vld [vmem:[#allocation8 + $0x1c8] sm:$0xff] }
 0x1a9   : > { %v2596_v27 = vpop.f32.mrf.mxu2  ;;  %3396 = vmatpush.bf16.msra.mxu3 %v7160_v38 }
 0x1aa   : > { %v2597_v53 = vadd.f32 %v2596_v27, %v2538_v17  ;;  %2917 = vmatmul.bf16.gmra.mxu1 %v8723_v9  ;;  %v7168_v17 = vld [vmem:[#allocation8 + $0x208] sm:$0xff] }
 0x1ab   : > { %3455 = vmatpush.bf16.msrb.mxu0 %v7168_v17 }
 0x1ad   : > { %v9038_v12 = vpop.f32.mrf.mxu0 }
 0x1ae   : > { %v2800_v45 = vpop.f32.mrf.mxu3 }
 0x1af   : > { %v9036_v36 = vadd.f32 %v2800_v45, %v2582_v57  ;;  %v2495_v57 = vadd.f32 %v8911_v37, %v8913_v23  ;;  %v7159_v45 = vld [vmem:[#allocation8 + $0x1c0] sm:$0xff]  ;;  %v2500_v37 = vadd.f32 %v8933_v8, %v8935_v1  ;;  %3456 = vmatpush.bf16.msrb.mxu0 %v7167_v26  ;;  %v7121_v8 = vld [vmem:[#allocation4 + $0x34] sm:$0xf] }
 0x1b0   : > { %3397 = vmatpush.bf16.msra.mxu3 %v7159_v45 }
 0x1b5   : > { %v2551_v54 = vpop.f32.mrf.mxu0 }
 0x1b6   : > { %v9041_v31 = vpop.f32.mrf.mxu3  ;;  %v2552_v52 = vadd.f32 %v2551_v54, %v8900_v0  ;;  %v7151_v54 = vld [vmem:[#allocation8 + $0x180] sm:$0xff] }
 0x1b7   : > { %3338 = vmatpush.bf16.msrb.mxu2 %v7151_v54  ;;  %v7124_v54 = vld [vmem:[#allocation4 + $0x4c] sm:$0xf] }
 0x1b8   : > { %2853 = vmatmul.bf16.gmra.mxu0 %v8600_v28  ;;  %v2771_v45 = vadd.f32 %v8977_v18, %v2552_v52 }
 0x1ba   : > { %2922 = vmatmul.bf16.gmra.mxu1 %v8798_v34 }
 0x1bd   : > { %v2553_v9 = vpop.f32.mrf.mxu0 }
 0x1be   : > { %v2805_v59 = vpop.f32.mrf.mxu3  ;;  %v2554_v43 = vadd.f32 %v2553_v9, %v2495_v57  ;;  %v7122_v9 = vld [vmem:[#allocation4 + $0x38] sm:$0xf0] }
 0x1bf   : > { %v9047_v60 = vadd.f32 %v2805_v59, %v2587_v47  ;;  %v6322_v59 = vld [vmem:[#allocation4 + $0x30] sm:$0xf] }
 0x1c0   : > { %v6323_v1 = vor.u32 %v7122_v9, %v6322_v59  ;;  %v6346_v59 = vld [vmem:[#allocation4 + $0x60] sm:$0xf]  ;;  %v7128_v9 = vld [vmem:[#allocation4 + $0x68] sm:$0xf0] }
 0x1c2   : > { %3339 = vmatmul.bf16.vlgmr.msrb.gmra.mxu2 %v6323_v1  ;;  %v6348_v1 = vld [vmem:[#allocation4 + $0x6c] sm:$0xf0] }
 0x1c5   : > { %v2556_v0 = vpop.f32.mrf.mxu0 }
 0x1c6   : > { %v9050_v27 = vpop.f32.mrf.mxu3  ;;  %v2557_v28 = vadd.f32 %v2556_v0, %v8928_v6 }
 0x1c8   : > { %2858 = vmatmul.bf16.gmra.mxu0 %v8729_v39  ;;  %v2776_v18 = vadd.f32 %v8988_v55, %v2557_v28  ;;  %v7123_v55 = vld [vmem:[#allocation4 + $0x40] sm:$0xf0] }
 0x1ca   : > { %2927 = vmatmul.bf16.gmra.mxu1 %v8842_v10  ;;  %v2505_v10 = vadd.f32 %v8961_v14, %v8963_v11  ;;  %v2773_v11 = vadd.f32 %v8983_v15, %v2554_v43 }
 0x1cd   : > { %v2558_v34 = vpop.f32.mrf.mxu0 }
 0x1ce   : > { %v2810_v23 = vpop.f32.mrf.mxu3  ;;  %v2559_v42 = vadd.f32 %v2558_v34, %v2500_v37  ;;  %v7125_v34 = vld [vmem:[#allocation4 + $0x50] sm:$0xf0] }
 0x1cf   : > { %v9056_v47 = vadd.f32 %v2810_v23, %v2592_v41  ;;  %v6324_v41 = vld [vmem:[#allocation4 + $0x3c] sm:$0xf0] }
 0x1d0   : > { %v6327_v17 = vor.u32 %v7121_v8, %v6324_v41  ;;  %v7127_v8 = vld [vmem:[#allocation4 + $0x64] sm:$0xf]  ;;  %v2778_v15 = vadd.f32 %v8995_v44, %v2559_v42 }
 0x1d1   : > { %v6351_v41 = vor.u32 %v7127_v8, %v6348_v1 }
 0x1d2   : > { %3398 = vmatmul.bf16.vlgmr.msra.gmra.mxu3 %v6327_v17 }
 0x1d5   : > { %v2561_v39 = vpop.f32.mrf.mxu0 }
 0x1d6   : > { %v2812_v6 = vpop.f32.mrf.mxu3  ;;  %v2562_v57 = vadd.f32 %v2561_v39, %v8955_v51 }
 0x1d7   : > { %v9059_v38 = vadd.f32 %v2812_v6, %v2594_v22  ;;  %v6336_v6 = vld [vmem:[#allocation4 + $0x54] sm:$0xf0] }
 0x1d8   : > { %2863 = vmatmul.bf16.gmra.mxu0 %v8776_v33  ;;  %v6334_v33 = vld [vmem:[#allocation4 + $0x48] sm:$0xf]  ;;  %v6339_v14 = vor.u32 %v7124_v54, %v6336_v6  ;;  %v2781_v28 = vadd.f32 %v8997_v16, %v2562_v57  ;;  %v7126_v16 = vld [vmem:[#allocation4 + $0x58] sm:$0xf0] }
 0x1d9   : > { %v6335_v26 = vor.u32 %v7125_v34, %v6334_v33  ;;  %v7130_v33 = vld [vmem:[#allocation4 + $0x7c] sm:$0xf]  ;;  %v6360_v54 = vld [vmem:[#allocation4 + $0x84] sm:$0xf0] }
 0x1da   : > { %2932 = vmatmul.bf16.gmra.mxu1 %v8886_v58 }
 0x1db   : > { %3344 = vmatmul.bf16.gmra.mxu2 %v6335_v26  ;;  %v6363_v26 = vor.u32 %v7130_v33, %v6360_v54 }
 0x1dd   : > { %v2563_v22 = vpop.f32.mrf.mxu0 }
 0x1de   : > { %v2815_v0 = vpop.f32.mrf.mxu3  ;;  %v2564_v51 = vadd.f32 %v2563_v22, %v2505_v10  ;;  %v6330_v10 = vld [vmem:[#allocation4 + $0x38] sm:$0xf] }
 0x1df   : > { %v9065_v24 = vadd.f32 %v2815_v0, %v2597_v53  ;;  %v6331_v0 = vor.u32 %v7123_v55, %v6330_v10  ;;  %v2515_v10 = vadd.f32 %v8986_v49, %v8990_v61  ;;  %v6366_v49 = vld [vmem:[#allocation4 + $0x80] sm:$0xf]  ;;  %v7132_v61 = vld [vmem:[#allocation4 + $0x88] sm:$0xf0] }
 0x1e0   : > { %v2783_v44 = vadd.f32 %v9003_v21, %v2564_v51 }
 0x1e2   : > { %3403 = vmatmul.bf16.gmra.mxu3 %v6339_v14  ;;  %v6342_v14 = vld [vmem:[#allocation4 + $0x50] sm:$0xf] }
 0x1e3   : > { %v6343_v57 = vor.u32 %v7126_v16, %v6342_v14  ;;  %v7140_v14 = vld [vmem:[#allocation4 + $0xc8] sm:$0xf0]  ;;  %v7139_v16 = vld [vmem:[#allocation4 + $0xc4] sm:$0xf] }
 0x1e5   : > { %v2829_v37 = vpop.f32.mrf.mxu0 }
 0x1e6   : > { %v9069_v23 = vadd.f32 %v2829_v37, %v2771_v45  ;;  %v6358_v37 = vld [vmem:[#allocation4 + $0x78] sm:$0xf] }
 0x1e8   : > { %2868 = vmatmul.bf16.gmra.mxu0 %v8283_v56  ;;  %v6347_v56 = vor.u32 %v7128_v9, %v6346_v59  ;;  %v7134_v59 = vld [vmem:[#allocation4 + $0x98] sm:$0xf0]  ;;  %v7133_v9 = vld [vmem:[#allocation4 + $0x94] sm:$0xf] }
 0x1eb   : > { %3349 = vmatmul.bf16.gmra.mxu2 %v6347_v56  ;;  %v6372_v56 = vld [vmem:[#allocation4 + $0x9c] sm:$0xf0] }
 0x1ec   : > { %v6375_v21 = vor.u32 %v7133_v9, %v6372_v56  ;;  %v6378_v9 = vld [vmem:[#allocation4 + $0x98] sm:$0xf] }
 0x1ed   : > { %v2831_v53 = vpop.f32.mrf.mxu0 }
 0x1ee   : > { %v9073_v58 = vadd.f32 %v2831_v53, %v2773_v11  ;;  %v2510_v53 = vadd.f32 %v8975_v2, %v8979_v62  ;;  %v6354_v2 = vld [vmem:[#allocation4 + $0x68] sm:$0xf]  ;;  %v7129_v62 = vld [vmem:[#allocation4 + $0x70] sm:$0xf0] }
 0x1f0   : > { %v2569_v51 = vadd.f32 %v8981_v25, %v2510_v53  ;;  %v7136_v25 = vld [vmem:[#allocation4 + $0xac] sm:$0xf] }
 0x1f2   : > { %3408 = vmatmul.bf16.gmra.mxu3 %v6351_v41  ;;  %v2788_v1 = vadd.f32 %v9013_v13, %v2569_v51 }
 0x1f5   : > { %v2834_v52 = vpop.f32.mrf.mxu0 }
 0x1f6   : > { %v9076_v39 = vadd.f32 %v2834_v52, %v2776_v18  ;;  %v6370_v52 = vld [vmem:[#allocation4 + $0x90] sm:$0xf] }
 0x1f7   : > { %v6371_v8 = vor.u32 %v7134_v59, %v6370_v52 }
 0x1f8   : > { %2873 = vmatmul.bf16.gmra.mxu0 %v8394_v40  ;;  %v7131_v40 = vld [vmem:[#allocation4 + $0x80] sm:$0xf0] }
 0x1f9   : > { %v6359_v34 = vor.u32 %v7131_v40, %v6358_v37  ;;  %v6384_v37 = vld [vmem:[#allocation4 + $0xb4] sm:$0xf0]  ;;  %v2574_v40 = vadd.f32 %v8993_v19, %v2515_v10  ;;  %v6396_v19 = vld [vmem:[#allocation4 + $0xcc] sm:$0xf0] }
 0x1fa   : > { %v6387_v13 = vor.u32 %v7136_v25, %v6384_v37  ;;  %v466_v25 = vld [vmem:[#allocation2 + $0x60] sm:$0xf] }
 0x1fb   : > { %3354 = vmatmul.bf16.gmra.mxu2 %v6359_v34  ;;  %v2793_v33 = vadd.f32 %v9024_v63, %v2574_v40  ;;  %v2579_v63 = vadd.f32 %v9001_v4, %v8999_v5  ;;  %v7142_v4 = vld [vmem:[#allocation4 + $0xdc] sm:$0xf]  ;;  %v925_v37 = vunpack.c.l.bf16 %v466_v25  ;;  %v9961_v40 = vrot.slane %v8454_v48, 1  ;;  %1683 = vst [vmem:[#allocation4 + $0x118] sm:$0xf] %v466_v25 }
 0x1fc   : > { %v7145_v48 = vld [vmem:[#allocation4 + $0xf4] sm:$0xf] }
 0x1fd   : > { %v2836_v43 = vpop.f32.mrf.mxu0  ;;  %v2798_v53 = vadd.f32 %v9032_v29, %v2579_v63 }
 0x1fe   : > { %v9080_v17 = vadd.f32 %v2836_v43, %v2778_v15 }
 0x202   : > { %3413 = vmatmul.bf16.gmra.mxu3 %v6363_v26 }
 0x205   : > { %v2839_v22 = vpop.f32.mrf.mxu0 }
 0x206   : > { %v9083_v45 = vadd.f32 %v2839_v22, %v2781_v28  ;;  %v6382_v28 = vld [vmem:[#allocation4 + $0xa8] sm:$0xf] }
 0x208   : > { %3457 = vmatmul.bf16.vlgmr.msrb.gmra.mxu0 %v6331_v0  ;;  %v7137_v0 = vld [vmem:[#allocation4 + $0xb0] sm:$0xf0] }
 0x209   : > { %v6383_v22 = vor.u32 %v7137_v0, %v6382_v28  ;;  %v7138_v0 = vld [vmem:[#allocation4 + $0xb8] sm:$0xf0] }
 0x20b   : > { %3359 = vmatmul.bf16.gmra.mxu2 %v6371_v8  ;;  %v2524_v8 = vpop.f32.mrf.mxu1 }
 0x20c   : > { %v2525_v51 = vadd.f32 %v2524_v8, %v9009_v50  ;;  %v6390_v50 = vld [vmem:[#allocation4 + $0xb0] sm:$0xf] }
 0x20d   : > { %v2841_v42 = vpop.f32.mrf.mxu0 }
 0x20e   : > { %v9086_v6 = vadd.f32 %v2841_v42, %v2783_v44  ;;  %v6394_v42 = vld [vmem:[#allocation4 + $0xc0] sm:$0xf] }
 0x212   : > { %3418 = vmatmul.bf16.gmra.mxu3 %v6375_v21 }
 0x215   : > { %v2844_v11 = vpop.f32.mrf.mxu0 }
 0x216   : > { %v9091_v18 = vadd.f32 %v2844_v11, %v9007_v7  ;;  %v6355_v7 = vor.u32 %v7129_v62, %v6354_v2  ;;  %v6399_v11 = vor.u32 %v7139_v16, %v6396_v19  ;;  %v7143_v2 = vld [vmem:[#allocation4 + $0xe0] sm:$0xf0]  ;;  %v6408_v62 = vld [vmem:[#allocation4 + $0xe4] sm:$0xf0] }
 0x217   : > { %v6411_v29 = vor.u32 %v7142_v4, %v6408_v62  ;;  %v9964_v62 = vld [vmem:[#allocation59_spill] sm:$0xff] }
 0x218   : > { %3462 = vmatmul.bf16.gmra.mxu0 %v6343_v57  ;;  %v6395_v57 = vor.u32 %v7140_v14, %v6394_v42  ;;  %v6418_v42 = vld [vmem:[#allocation4 + $0xf0] sm:$0xf]  ;;  %v7146_v14 = vld [vmem:[#allocation4 + $0xf8] sm:$0xf0] }
 0x219   : > { %v6419_v19 = vor.u32 %v7146_v14, %v6418_v42 }
 0x21b   : > { %3364 = vmatmul.bf16.gmra.mxu2 %v6383_v22 }
 0x21d   : > { %v2846_v41 = vpop.f32.mrf.mxu0 }
 0x21e   : > { %v9095_v15 = vadd.f32 %v2846_v41, %v2788_v1  ;;  %v6406_v41 = vld [vmem:[#allocation4 + $0xd8] sm:$0xf] }
 0x21f   : > { %v6407_v5 = vor.u32 %v7143_v2, %v6406_v41  ;;  %v9139_v41 = vpop.f32.mrf.mxu1 }
 0x222   : > { %3423 = vmatmul.bf16.gmra.mxu3 %v6387_v13  ;;  %v6391_v13 = vor.u32 %v7138_v0, %v6390_v50 }
 0x225   : > { %v2849_v43 = vpop.f32.mrf.mxu0 }
 0x226   : > { %v9100_v55 = vadd.f32 %v2849_v43, %v9017_v32  ;;  %v6367_v32 = vor.u32 %v7132_v61, %v6366_v49  ;;  %v1071_v49 = vmul.f32 %v8158_v30, %v925_v37  ;;  %v2530_v61 = vadd.f32 %v8919_v20, %v9019_v3  ;;  %v9963_v20 = vld [vmem:[#allocation22_spill] sm:$0xff] }
 0x227   : > { %v516_v3 = vadd.s32 184, %v9963_v20  ;;  %v6432_v20 = vld [vmem:[#allocation4 + $0x114] sm:$0xf0] }
 0x228   : > { %3467 = vmatmul.bf16.gmra.mxu0 %v6355_v7  ;;  %v2584_v7 = vadd.f32 %v9011_v35, %v2525_v51  ;;  %v1021_v35 = vsel %vm974_vm0, %v9961_v40, %v8158_v30 }
 0x229   : > { %v682_v2 = vand.u32 15, %v516_v3 }
 0x22a   : > { %v2803_v43 = vadd.f32 %v9041_v31, %v2584_v7 }
 0x22b   : > { %3369 = vmatmul.bf16.gmra.mxu2 %v6395_v57  ;;  %v1096_v57 = vpack.c.bf16 %v1071_v49, %v1071_v49  ;;  %vm1120_vm0 = vcmp.ne.s32.totalorder %v682_v2, 15  ;;  %v9967_v49 = vld [vmem:[#allocation34_spill] sm:$0xff] }
 0x22d   : > { %v2851_v34 = vpop.f32.mrf.mxu0 }
 0x22e   : > { %v9104_v54 = vadd.f32 %v2851_v34, %v2793_v33  ;;  %v9126_v33 = vpop.f32.mrf.mxu2 }
 0x232   : > { %3428 = vmatmul.bf16.gmra.mxu3 %v6399_v11  ;;  %v6420_v11 = vld [vmem:[#allocation4 + $0xfc] sm:$0xf0] }
 0x233   : > { %v6423_v63 = vor.u32 %v7145_v48, %v6420_v11  ;;  %v491_v48 = vld [vmem:[#allocation2 + $0x64] sm:$0x1] }
 0x235   : > { %v2854_v26 = vpop.f32.mrf.mxu0 }
 0x236   : > { %v9107_v44 = vadd.f32 %v2854_v26, %v9028_v46  ;;  %v7135_v46 = vld [vmem:[#allocation4 + $0xa0] sm:$0xf0] }
 0x237   : > { %v6379_v56 = vor.u32 %v7135_v46, %v6378_v9  ;;  %v9962_v9 = vld [vmem:[#allocation70_spill] sm:$0xff] }
 0x238   : > { %3472 = vmatmul.bf16.gmra.mxu0 %v6367_v32  ;;  %v9131_v32 = vpop.f32.mrf.mxu3  ;;  %v2589_v46 = vadd.f32 %v9962_v9, %v2530_v61 }
 0x23a   : > { %v2808_v51 = vadd.f32 %v9050_v27, %v2589_v46 }
 0x23b   : > { %3374 = vmatmul.bf16.gmra.mxu2 %v6407_v5 }
 0x23d   : > { %v2856_v52 = vpop.f32.mrf.mxu0 }
 0x23e   : > { %v9112_v59 = vadd.f32 %v2856_v52, %v2798_v53  ;;  %v1605_v52 = vshrl.u32 %v1096_v57, 16 }
 0x242   : > { %3433 = vmatmul.bf16.gmra.mxu3 %v6411_v29  ;;  %v1594_v29 = vrot.slane %v9964_v62, 4 }
 0x245   : > { %v2859_v21 = vpop.f32.mrf.mxu0  ;;  %v9141_v5 = vpop.f32.mrf.mxu2 }
 0x246   : > { %v9116_v1 = vadd.f32 %v2859_v21, %v9036_v36  ;;  %v465_v36 = vld [vmem:[#allocation2 + $0x5c] sm:$0xf]  ;;  %v1608_v21 = vshll.u32 %v1096_v57, 16 }
 0x247   : > { %v924_v22 = vunpack.c.l.bf16 %v465_v36  ;;  %1682 = vst [vmem:[#allocation4 + $0x10c] sm:$0xf] %v465_v36 }
 0x248   : > { %3477 = vmatmul.bf16.gmra.mxu0 %v6379_v56  ;;  %v1607_v56 = vrot.slane %v1605_v52, 7  ;;  %v9160_v52 = vpop.f32.mrf.mxu1 }
 0x249   : > { %v1070_v34 = vmul.f32 %v1021_v35, %v924_v22  ;;  %v9966_v22 = vmov 0.0   ;;  %v6402_v35 = vld [vmem:[#allocation4 + $0xc8] sm:$0xf] }
 0x24a   : > { %v5994_v37 = vsel %vm1120_vm0, 1.0, %v9966_v22 }
 0x24b   : > { %v1095_v16 = vpack.c.bf16 %v1070_v34, %v1070_v34  ;;  %3379 = vmatmul.bf16.gmra.mxu2 %v6419_v19  ;;  %v1312_v40 = vrot.slane %v5994_v37, 7  ;;  %v1217_v19 = vunpack.c.l.bf16 %v491_v48 }
 0x24d   : > { %v2861_v10 = vpop.f32.mrf.mxu0  ;;  %v1596_v53 = vshrl.u32 %v1095_v16, 16  ;;  %v1313_v61 = vsel %vm1266_vm12, %v9967_v49, %v1312_v40  ;;  %v9155_v57 = vpop.f32.mrf.mxu2  ;;  %v1363_v3 = vmul.f32 %v1312_v40, %v1217_v19  ;;  %v6414_v49 = vld [vmem:[#allocation4 + $0xe0] sm:$0xf]  ;;  %v2891_v40 = vadd.f32 %v9160_v52, %v9073_v58 }
 0x24e   : > { %v9120_v28 = vadd.f32 %v2861_v10, %v2803_v43  ;;  %v1610_v10 = vor.u32 %v1608_v21, %v1607_v56  ;;  %v7148_v46 = vld [vmem:[#allocation4 + $0x10c] sm:$0xf] }
 0x24f   : > { %v1598_v8 = vrot.slane %v1596_v53, 7  ;;  %v1388_v21 = vpack.c.bf16 %v1363_v3, %v1363_v3 }
 0x251   : > { %v1603_v43 = vrot.slane %v1598_v8, 4 }
 0x252   : > { %3438 = vmatmul.bf16.gmra.mxu3 %v6423_v63 }
 0x253   : > { %v1611_v27 = vsel %vm8242_vm8, %v1603_v43, %v1610_v10  ;;  %v9969_v43 = vld [vmem:[#allocation60_spill] sm:$0xff] }
 0x254   : > { %1659 = vst [vmem:[#allocation4 + $0x114] sm:$0xf] %v1611_v27 }
 0x255   : > { %v2864_v31 = vpop.f32.mrf.mxu0  ;;  %v9146_v0 = vpop.f32.mrf.mxu3 }
 0x256   : > { %v9134_v26 = vadd.f32 %v2864_v31, %v9047_v60  ;;  %v1599_v60 = vshll.u32 %v1095_v16, 16  ;;  %v7141_v31 = vld [vmem:[#allocation4 + $0xd0] sm:$0xf0] }
 0x257   : > { %v6403_v14 = vor.u32 %v7141_v31, %v6402_v35 }
 0x258   : > { %3482 = vmatmul.bf16.gmra.mxu0 %v6391_v13  ;;  %v1601_v7 = vor.u32 %v1599_v60, %v1598_v8  ;;  %v490_v13 = vld [vmem:[#allocation2 + $0x60] sm:$0xf]  ;;  %v6435_v60 = vor.u32 %v7148_v46, %v6432_v20 }
 0x259   : > { %v1216_v34 = vunpack.c.l.bf16 %v490_v13 }
 0x25a   : > { %v1602_v25 = vsel %vm8242_vm8, %v1594_v29, %v1601_v7  ;;  %v9968_v7 = vld [vmem:[#allocation61_spill] sm:$0xff] }
 0x25b   : > { %1658 = vst [vmem:[#allocation4 + $0x108] sm:$0xf] %v1602_v25  ;;  %v1362_v42 = vmul.f32 %v1313_v61, %v1216_v34  ;;  %v7149_v8 = vld [vmem:[#allocation4 + $0x110] sm:$0xf0]  ;;  %v9970_v10 = vor.u32 %v9968_v7, %v9969_v43  ;;  %v2893_v34 = vpop.f32.mrf.mxu1  ;;  %v7144_v61 = vld [vmem:[#allocation4 + $0xe8] sm:$0xf0] }
 0x25c   : > { %v9193_v7 = vld [vmem:[%s9785_s4] ss:$0 sm:$0xff] }
 0x25d   : > { %v2866_v4 = vpop.f32.mrf.mxu0  ;;  %v1387_v11 = vpack.c.bf16 %v1362_v42, %v1362_v42  ;;  %v3401_v53 = vpop.f32.mrf.mxu3  ;;  %v1915_v36 = vrot.slane %v9970_v10, 4 }
 0x25e   : > { %v9144_v50 = vadd.f32 %v2866_v4, %v2808_v51  ;;  %v3345_v37 = vpop.f32.mrf.mxu2 }
 0x25f   : > { %v1917_v51 = vshll.u32 %v1387_v11, 16  ;;  %v1921_v2 = vshrl.u32 %v1387_v11, 16 }
 0x261   : > { %v1919_v4 = vrot.slane %v1917_v51, 5  ;;  %v1923_v62 = vrot.slane %v1921_v2, 4  ;;  %v3400_v51 = vadd.f32 %v9146_v0, %v9141_v5  ;;  %v3402_v0 = vadd.f32 %v3401_v53, %v9155_v57 }
 0x262   : > { %v6430_v9 = vld [vmem:[#allocation4 + $0x108] sm:$0xf]  ;;  %3443 = vmatmul.bf16.gmra.mxu3 %v6435_v60  ;;  %v2894_v57 = vadd.f32 %v2893_v34, %v9076_v39 }
 0x263   : > { %v6431_v56 = vor.u32 %v7149_v8, %v6430_v9  ;;  %v1924_v25 = vor.u32 %v1923_v62, %v1919_v4  ;;  %v1920_v35 = vsel %vm8514_vm4, %v1915_v36, %v1919_v4  ;;  %v2895_v20 = vpop.f32.mrf.mxu1 }
 0x264   : > { %1977 = vst [vmem:[#allocation4 + $0x110] sm:$0xf] %v1920_v35  ;;  %v2896_v39 = vadd.f32 %v2895_v20, %v9080_v17 }
 0x265   : > { %v2869_v16 = vpop.f32.mrf.mxu0  ;;  %3384 = vmatmul.bf16.gmra.mxu2 %v6431_v56  ;;  %v3404_v13 = vpop.f32.mrf.mxu3  ;;  %v1925_v31 = vrot.slane %v1924_v25, 4  ;;  %v6426_v56 = vld [vmem:[#allocation4 + $0xf8] sm:$0xf] }
 0x266   : > { %v9158_v63 = vadd.f32 %v2869_v16, %v9056_v47  ;;  %v1927_v47 = vshll.u32 %v1388_v21, 16  ;;  %v9972_v16 = vld [vmem:[#allocation69_spill] sm:$0xff]  ;;  %v3347_v11 = vpop.f32.mrf.mxu2  ;;  %v7147_v21 = vld [vmem:[#allocation4 + $0x100] sm:$0xf0] }
 0x268   : > { %3487 = vmatmul.bf16.gmra.mxu0 %v6403_v14  ;;  %v1929_v27 = vrot.slane %v1927_v47, 5  ;;  %v6415_v14 = vor.u32 %v7144_v61, %v6414_v49  ;;  %v2889_v47 = vadd.f32 %v9139_v41, %v9069_v23  ;;  %v3405_v61 = vadd.f32 %v3404_v13, %v3345_v37 }
 0x26a   : > { %v1930_v42 = vsel %vm8514_vm4, %v1925_v31, %v1929_v27 }
 0x26b   : > { %1978 = vst [vmem:[#allocation4 + $0x11c] sm:$0xf] %v1930_v42  ;;  %v2898_v4 = vpop.f32.mrf.mxu1  ;;  %v6438_v31 = vld [vmem:[#allocation4 + $0x110] sm:$0xf] }
 0x26d   : > { %v2871_v29 = vpop.f32.mrf.mxu0  ;;  %v3406_v9 = vpop.f32.mrf.mxu3 }
 0x26e   : > { %v9166_v22 = vadd.f32 %v2871_v29, %v9059_v38  ;;  %v2540_v38 = vadd.f32 %v9972_v16, %v9038_v12  ;;  %v3350_v12 = vpop.f32.mrf.mxu2 }
 0x270   : > { %v2599_v46 = vadd.f32 %v9126_v33, %v2540_v38 }
 0x272   : > { %v2818_v3 = vadd.f32 %v9131_v32, %v2599_v46  ;;  %v9188_v32 = vld [vmem:[%s9784_s3] ss:$0 sm:$0xff]  ;;  %v7150_v49 = vld [vmem:[#allocation4 + $0x118] sm:$0xf0] }
 0x273   : > { %v2900_v27 = vpop.f32.mrf.mxu1 }
 0x275   : > { %v2874_v48 = vpop.f32.mrf.mxu0  ;;  %v3409_v2 = vpop.f32.mrf.mxu3 }
 0x276   : > { %v9175_v19 = vadd.f32 %v2874_v48, %v9065_v24  ;;  %v6427_v24 = vor.u32 %v7147_v21, %v6426_v56  ;;  %v3352_v23 = vpop.f32.mrf.mxu2  ;;  %v3407_v56 = vadd.f32 %v3406_v9, %v3347_v11 }
 0x278   : > { %3492 = vmatmul.bf16.gmra.mxu0 %v6415_v14  ;;  %v6439_v14 = vor.u32 %v7150_v49, %v6438_v31 }
 0x27d   : > { %v2876_v8 = vpop.f32.mrf.mxu0  ;;  %v3411_v10 = vpop.f32.mrf.mxu3 }
 0x27e   : > { %v9179_v60 = vadd.f32 %v2876_v8, %v2818_v3  ;;  %v3355_v38 = vpop.f32.mrf.mxu2  ;;  %v2903_v8 = vpop.f32.mrf.mxu1  ;;  %v3412_v20 = vadd.f32 %v3411_v10, %v3352_v23 }
 0x285   : > { %v3458_v62 = vpop.f32.mrf.mxu0  ;;  %v3414_v46 = vpop.f32.mrf.mxu3 }
 0x286   : > { %v3459_v33 = vadd.f32 %v3458_v62, %v3400_v51  ;;  %v3357_v62 = vpop.f32.mrf.mxu2 }
 0x288   : > { %v3508_v29 = vadd.f32 %v3459_v33, %v2889_v47  ;;  %3497 = vmatmul.bf16.gmra.mxu0 %v6427_v24  ;;  %v3410_v33 = vadd.f32 %v3409_v2, %v3350_v12 }
 0x28a   : > { %v3532_v5 = vmul.f32 %v9188_v32, %v3508_v29 }
 0x28c   : > { %v3556_v43 = vadd.f32 %v9193_v7, %v3532_v5  ;;  %v2905_v5 = vpop.f32.mrf.mxu1 }
 0x28d   : > { %v3460_v41 = vpop.f32.mrf.mxu0  ;;  %v3416_v47 = vpop.f32.mrf.mxu3 }
 0x28e   : > { %v3576_v36 = vmax.f32 %v3556_v43, 0.0  ;;  %v3461_v25 = vadd.f32 %v3460_v41, %v3402_v0  ;;  %v2899_v43 = vadd.f32 %v2898_v4, %v9083_v45  ;;  %v2901_v45 = vadd.f32 %v2900_v27, %v9086_v6 }
 0x290   : > { %v3596_v35 = vpack.c.bf16 %v3576_v36, %v3576_v36  ;;  %v3509_v42 = vadd.f32 %v3461_v25, %v2891_v40  ;;  %v3360_v40 = vpop.f32.mrf.mxu2 }
 0x292   : > { %3616 = vst [vmem:[#allocation3 + $0x4] sm:$0xf] %v3596_v35  ;;  %v3533_v53 = vmul.f32 %v9188_v32, %v3509_v42  ;;  %v3415_v42 = vadd.f32 %v3414_v46, %v3355_v38 }
 0x294   : > { %v3557_v58 = vadd.f32 %v9193_v7, %v3533_v53  ;;  %v2908_v31 = vpop.f32.mrf.mxu1 }
 0x295   : > { %v3463_v48 = vpop.f32.mrf.mxu0  ;;  %v3419_v17 = vpop.f32.mrf.mxu3 }
 0x296   : > { %v3464_v16 = vadd.f32 %v3463_v48, %v3405_v61  ;;  %v3577_v21 = vmax.f32 %v3557_v58, 0.0 }
 0x298   : > { %v3510_v3 = vadd.f32 %v3464_v16, %v2894_v57  ;;  %3502 = vmatmul.bf16.gmra.mxu0 %v6439_v14  ;;  %v3362_v48 = vpop.f32.mrf.mxu2  ;;  %v2904_v16 = vadd.f32 %v2903_v8, %v9091_v18  ;;  %v2906_v18 = vadd.f32 %v2905_v5, %v9095_v15 }
 0x29a   : > { %v3534_v52 = vmul.f32 %v9188_v32, %v3510_v3 }
 0x29c   : > { %v3558_v37 = vadd.f32 %v9193_v7, %v3534_v52  ;;  %v2910_v3 = vpop.f32.mrf.mxu1 }
 0x29d   : > { %v3465_v13 = vpop.f32.mrf.mxu0  ;;  %v3421_v53 = vpop.f32.mrf.mxu3 }
 0x29e   : > { %v3578_v51 = vmax.f32 %v3558_v37, 0.0  ;;  %v3466_v24 = vadd.f32 %v3465_v13, %v3407_v56  ;;  %v3417_v37 = vadd.f32 %v3416_v47, %v3357_v62  ;;  %v3422_v15 = vadd.f32 %v3421_v53, %v3362_v48 }
 0x2a0   : > { %v7345_v34 = vpack.c.bf16 %v3578_v51, %v3577_v21  ;;  %v3511_v29 = vadd.f32 %v3466_v24, %v2896_v39  ;;  %v3365_v21 = vpop.f32.mrf.mxu2  ;;  %v3420_v39 = vadd.f32 %v3419_v17, %v3360_v40 }
 0x2a2   : > { %7507 = vst [vmem:[#allocation3 + $0x8] sm:$0xff] %v7345_v34   ;;  %v3535_v11 = vmul.f32 %v9188_v32, %v3511_v29  ;;  %v2909_v29 = vadd.f32 %v2908_v31, %v9100_v55  ;;  %v2911_v55 = vadd.f32 %v2910_v3, %v9104_v54 }
 0x2a4   : > { %v3559_v36 = vadd.f32 %v9193_v7, %v3535_v11  ;;  %v2913_v24 = vpop.f32.mrf.mxu1 }
 0x2a5   : > { %v3468_v0 = vpop.f32.mrf.mxu0  ;;  %v3424_v51 = vpop.f32.mrf.mxu3 }
 0x2a6   : > { %v3469_v9 = vadd.f32 %v3468_v0, %v3410_v33  ;;  %v3579_v2 = vmax.f32 %v3559_v36, 0.0  ;;  %v3425_v31 = vadd.f32 %v3424_v51, %v3365_v21 }
 0x2a8   : > { %v3512_v41 = vadd.f32 %v3469_v9, %v2899_v43  ;;  %v3367_v43 = vpop.f32.mrf.mxu2 }
 0x2aa   : > { %v3536_v25 = vmul.f32 %v9188_v32, %v3512_v41 }
 0x2ac   : > { %v3560_v35 = vadd.f32 %v9193_v7, %v3536_v25  ;;  %v2915_v36 = vpop.f32.mrf.mxu1 }
 0x2ad   : > { %v3470_v12 = vpop.f32.mrf.mxu0  ;;  %v3426_v11 = vpop.f32.mrf.mxu3 }
 0x2ae   : > { %v3580_v49 = vmax.f32 %v3560_v35, 0.0  ;;  %v3471_v61 = vadd.f32 %v3470_v12, %v3412_v20 }
 0x2b0   : > { %v7350_v4 = vpack.c.bf16 %v3580_v49, %v3579_v2  ;;  %v3513_v14 = vadd.f32 %v3471_v61, %v2901_v45  ;;  %v3370_v2 = vpop.f32.mrf.mxu2 }
 0x2b2   : > { %7508 = vst [vmem:[#allocation3 + $0x10] sm:$0xff] %v7350_v4   ;;  %v3537_v23 = vmul.f32 %v9188_v32, %v3513_v14  ;;  %v2914_v4 = vadd.f32 %v2913_v24, %v9107_v44  ;;  %v2916_v44 = vadd.f32 %v2915_v36, %v9112_v59 }
 0x2b4   : > { %v3561_v52 = vadd.f32 %v9193_v7, %v3537_v23  ;;  %v2918_v61 = vpop.f32.mrf.mxu1 }
 0x2b5   : > { %v3473_v57 = vpop.f32.mrf.mxu0  ;;  %v3429_v49 = vpop.f32.mrf.mxu3 }
 0x2b6   : > { %v3474_v10 = vadd.f32 %v3473_v57, %v3415_v42  ;;  %v3581_v38 = vmax.f32 %v3561_v52, 0.0 }
 0x2b8   : > { %v3514_v58 = vadd.f32 %v3474_v10, %v2904_v16  ;;  %v3427_v16 = vadd.f32 %v3426_v11, %v3367_v43  ;;  %v3372_v23 = vpop.f32.mrf.mxu2 }
 0x2ba   : > { %v3538_v56 = vmul.f32 %v9188_v32, %v3514_v58 }
 0x2bc   : > { %v3562_v6 = vadd.f32 %v9193_v7, %v3538_v56 }
 0x2bd   : > { %v3475_v27 = vpop.f32.mrf.mxu0  ;;  %v3431_v3 = vpop.f32.mrf.mxu3 }
 0x2be   : > { %v3582_v46 = vmax.f32 %v3562_v6, 0.0  ;;  %v3476_v13 = vadd.f32 %v3475_v27, %v3417_v37  ;;  %v2920_v37 = vpop.f32.mrf.mxu1  ;;  %v3430_v27 = vadd.f32 %v3429_v49, %v3370_v2 }
 0x2c0   : > { %v7355_v8 = vpack.c.bf16 %v3582_v46, %v3581_v38  ;;  %v3515_v34 = vadd.f32 %v3476_v13, %v2906_v18  ;;  %v2919_v13 = vadd.f32 %v2918_v61, %v9116_v1  ;;  %v3375_v18 = vpop.f32.mrf.mxu2  ;;  %v2921_v1 = vadd.f32 %v2920_v37, %v9120_v28 }
 0x2c2   : > { %7509 = vst [vmem:[#allocation3 + $0x18] sm:$0xff] %v7355_v8   ;;  %v3539_v62 = vmul.f32 %v9188_v32, %v3515_v34 }
 0x2c4   : > { %v3563_v9 = vadd.f32 %v9193_v7, %v3539_v62 }
 0x2c5   : > { %v3478_v33 = vpop.f32.mrf.mxu0  ;;  %v3434_v8 = vpop.f32.mrf.mxu3 }
 0x2c6   : > { %v3479_v47 = vadd.f32 %v3478_v33, %v3420_v39  ;;  %v3583_v40 = vmax.f32 %v3563_v9, 0.0  ;;  %v2923_v39 = vpop.f32.mrf.mxu1  ;;  %v3435_v36 = vadd.f32 %v3434_v8, %v3375_v18 }
 0x2c8   : > { %v3516_v0 = vadd.f32 %v3479_v47, %v2909_v29  ;;  %v3432_v29 = vadd.f32 %v3431_v3, %v3372_v23  ;;  %v3377_v9 = vpop.f32.mrf.mxu2 }
 0x2ca   : > { %v3540_v41 = vmul.f32 %v9188_v32, %v3516_v0 }
 0x2cc   : > { %v3564_v5 = vadd.f32 %v9193_v7, %v3540_v41 }
 0x2cd   : > { %v3480_v25 = vpop.f32.mrf.mxu0  ;;  %v3436_v41 = vpop.f32.mrf.mxu3 }
 0x2ce   : > { %v3584_v17 = vmax.f32 %v3564_v5, 0.0  ;;  %v3481_v20 = vadd.f32 %v3480_v25, %v3422_v15  ;;  %v2925_v5 = vpop.f32.mrf.mxu1  ;;  %v3437_v2 = vadd.f32 %v3436_v41, %v3377_v9 }
 0x2d0   : > { %v7360_v35 = vpack.c.bf16 %v3584_v17, %v3583_v40  ;;  %v3517_v12 = vadd.f32 %v3481_v20, %v2911_v55  ;;  %v2924_v40 = vadd.f32 %v2923_v39, %v9134_v26  ;;  %v2926_v26 = vadd.f32 %v2925_v5, %v9144_v50 }
 0x2d2   : > { %7510 = vst [vmem:[#allocation3 + $0x20] sm:$0xff] %v7360_v35   ;;  %v3541_v42 = vmul.f32 %v9188_v32, %v3517_v12  ;;  %v3380_v12 = vpop.f32.mrf.mxu2 }
 0x2d4   : > { %v3565_v57 = vadd.f32 %v9193_v7, %v3541_v42 }
 0x2d5   : > { %v3483_v45 = vpop.f32.mrf.mxu0  ;;  %v3439_v28 = vpop.f32.mrf.mxu3 }
 0x2d6   : > { %v3484_v14 = vadd.f32 %v3483_v45, %v3425_v31  ;;  %v3585_v58 = vmax.f32 %v3565_v57, 0.0  ;;  %v2928_v61 = vpop.f32.mrf.mxu1  ;;  %v3440_v57 = vadd.f32 %v3439_v28, %v3380_v12 }
 0x2d8   : > { %v3518_v48 = vadd.f32 %v3484_v14, %v2914_v4 }
 0x2da   : > { %v3542_v53 = vmul.f32 %v9188_v32, %v3518_v48 }
 0x2dc   : > { %v3566_v54 = vadd.f32 %v9193_v7, %v3542_v53 }
 0x2dd   : > { %v3485_v10 = vpop.f32.mrf.mxu0 }
 0x2de   : > { %v3586_v52 = vmax.f32 %v3566_v54, 0.0  ;;  %v3486_v56 = vadd.f32 %v3485_v10, %v3427_v16  ;;  %v3382_v16 = vpop.f32.mrf.mxu2  ;;  %v3441_v54 = vpop.f32.mrf.mxu3  ;;  %v2929_v10 = vadd.f32 %v2928_v61, %v9158_v63 }
 0x2e0   : > { %v7365_v6 = vpack.c.bf16 %v3586_v52, %v3585_v58  ;;  %v3519_v38 = vadd.f32 %v3486_v56, %v2916_v44  ;;  %v2930_v52 = vpop.f32.mrf.mxu1 }
 0x2e1   : > { %v2931_v63 = vadd.f32 %v2930_v52, %v9166_v22 }
 0x2e2   : > { %7511 = vst [vmem:[#allocation3 + $0x28] sm:$0xff] %v7365_v6   ;;  %v3543_v21 = vmul.f32 %v9188_v32, %v3519_v38  ;;  %v3442_v6 = vadd.f32 %v3441_v54, %v3382_v16 }
 0x2e4   : > { %v3567_v34 = vadd.f32 %v9193_v7, %v3543_v21 }
 0x2e5   : > { %v3488_v46 = vpop.f32.mrf.mxu0 }
 0x2e6   : > { %v3489_v51 = vadd.f32 %v3488_v46, %v3430_v27  ;;  %v3587_v47 = vmax.f32 %v3567_v34, 0.0 }
 0x2e8   : > { %v3520_v24 = vadd.f32 %v3489_v51, %v2919_v13  ;;  %v3385_v21 = vpop.f32.mrf.mxu2  ;;  %v3444_v51 = vpop.f32.mrf.mxu3 }
 0x2e9   : > { %v2933_v8 = vpop.f32.mrf.mxu1 }
 0x2ea   : > { %v3544_v33 = vmul.f32 %v9188_v32, %v3520_v24  ;;  %v3445_v24 = vadd.f32 %v3444_v51, %v3385_v21 }
 0x2ec   : > { %v3568_v59 = vadd.f32 %v9193_v7, %v3544_v33  ;;  %v2934_v33 = vadd.f32 %v2933_v8, %v9175_v19 }
 0x2ed   : > { %v3490_v62 = vpop.f32.mrf.mxu0 }
 0x2ee   : > { %v3588_v0 = vmax.f32 %v3568_v59, 0.0  ;;  %v3491_v43 = vadd.f32 %v3490_v62, %v3432_v29 }
 0x2f0   : > { %v7370_v11 = vpack.c.bf16 %v3588_v0, %v3587_v47  ;;  %v3521_v15 = vadd.f32 %v3491_v43, %v2921_v1  ;;  %v3387_v47 = vpop.f32.mrf.mxu2  ;;  %v3446_v0 = vpop.f32.mrf.mxu3 }
 0x2f1   : > { %v3447_v22 = vadd.f32 %v3446_v0, %v3387_v47 }
 0x2f2   : > { %7512 = vst [vmem:[#allocation3 + $0x30] sm:$0xff] %v7370_v11   ;;  %v3545_v17 = vmul.f32 %v9188_v32, %v3521_v15  ;;  %v2935_v11 = vpop.f32.mrf.mxu1 }
 0x2f4   : > { %v3569_v35 = vadd.f32 %v9193_v7, %v3545_v17 }
 0x2f5   : > { %v3493_v25 = vpop.f32.mrf.mxu0 }
 0x2f6   : > { %v3494_v20 = vadd.f32 %v3493_v25, %v3435_v36  ;;  %v3589_v4 = vmax.f32 %v3569_v35, 0.0  ;;  %v2936_v36 = vadd.f32 %v2935_v11, %v9179_v60 }
 0x2f8   : > { %v3522_v55 = vadd.f32 %v3494_v20, %v2924_v40 }
 0x2fa   : > { %v3546_v31 = vmul.f32 %v9188_v32, %v3522_v55 }
 0x2fc   : > { %v3570_v49 = vadd.f32 %v9193_v7, %v3546_v31 }
 0x2fd   : > { %v3495_v45 = vpop.f32.mrf.mxu0 }
 0x2fe   : > { %v3590_v42 = vmax.f32 %v3570_v49, 0.0  ;;  %v3496_v14 = vadd.f32 %v3495_v45, %v3437_v2 }
 0x300   : > { %v7375_v48 = vpack.c.bf16 %v3590_v42, %v3589_v4  ;;  %v3523_v53 = vadd.f32 %v3496_v14, %v2926_v26 }
 0x302   : > { %7513 = vst [vmem:[#allocation3 + $0x38] sm:$0xff] %v7375_v48   ;;  %v3547_v3 = vmul.f32 %v9188_v32, %v3523_v53 }
 0x304   : > { %v3571_v37 = vadd.f32 %v9193_v7, %v3547_v3 }
 0x305   : > { %v3498_v23 = vpop.f32.mrf.mxu0 }
 0x306   : > { %v3499_v58 = vadd.f32 %v3498_v23, %v3440_v57  ;;  %v3591_v38 = vmax.f32 %v3571_v37, 0.0 }
 0x308   : > { %v3524_v56 = vadd.f32 %v3499_v58, %v2929_v10 }
 0x30a   : > { %v3548_v44 = vmul.f32 %v9188_v32, %v3524_v56 }
 0x30c   : > { %v3572_v50 = vadd.f32 %v9193_v7, %v3548_v44 }
 0x30d   : > { %v3500_v27 = vpop.f32.mrf.mxu0 }
 0x30e   : > { %v3592_v46 = vmax.f32 %v3572_v50, 0.0  ;;  %v3501_v13 = vadd.f32 %v3500_v27, %v3442_v6 }
 0x310   : > { %v7380_v18 = vpack.c.bf16 %v3592_v46, %v3591_v38  ;;  %v3525_v39 = vadd.f32 %v3501_v13, %v2931_v63 }
 0x312   : > { %7514 = vst [vmem:[#allocation3 + $0x40] sm:$0xff] %v7380_v18   ;;  %v3549_v29 = vmul.f32 %v9188_v32, %v3525_v39 }
 0x314   : > { %v3573_v43 = vadd.f32 %v9193_v7, %v3549_v29 }
 0x315   : > { %v3503_v34 = vpop.f32.mrf.mxu0 }
 0x316   : > { %v3504_v59 = vadd.f32 %v3503_v34, %v3445_v24  ;;  %v3593_v15 = vmax.f32 %v3573_v43, 0.0 }
 0x318   : > { %v3526_v62 = vadd.f32 %v3504_v59, %v2934_v33 }
 0x31a   : > { %v3550_v1 = vmul.f32 %v9188_v32, %v3526_v62 }
 0x31c   : > { %v3574_v9 = vadd.f32 %v9193_v7, %v3550_v1 }
 0x31d   : > { %v3505_v41 = vpop.f32.mrf.mxu0 }
 0x31e   : > { %v3594_v5 = vmax.f32 %v3574_v9, 0.0  ;;  %v3506_v19 = vadd.f32 %v3505_v41, %v3447_v22 }
 0x320   : > { %v7385_v25 = vpack.c.bf16 %v3594_v5, %v3593_v15  ;;  %v3527_v40 = vadd.f32 %v3506_v19, %v2936_v36 }
 0x322   : > { %7515 = vst [vmem:[#allocation3 + $0x48] sm:$0xff] %v7385_v25   ;;  %v3551_v17 = vmul.f32 %v9188_v32, %v3527_v40 }
 0x324   : > { %v3575_v20 = vadd.f32 %v9193_v7, %v3551_v17 }
 0x326   : > { %v3595_v55 = vmax.f32 %v3575_v20, 0.0  ;;  %3638 = sbr.rel (%p5965_p1) target bundleno = 814 (0x32e), region = 80 }
 0x328   : > { %v3615_v35 = vpack.c.bf16 %v3595_v55, %v3595_v55 }
 0x32a   : > { %3635 = vst [vmem:[#allocation3 + $0x50] sm:$0xf] %v3615_v35 }
 0x32b   : > { %v7922_v31 = vmov 0  }
 0x32c   : > { %3639 = vst [vmem:[#allocation3 + $0x4] sm:$0xf] %v7922_v31 }
 0x32d   : > { %3640 = vst [vmem:[#allocation3 + $0x8] sm:$0xf] %v7922_v31 }
 0x32e PF: > { %3643 = sbr.rel (%p5970_p0) target bundleno = 822 (0x336), region = 84 }
 0x333   : > { %v7923_v60 = vmov 0  }
 0x334   : > { %3644 = vst [vmem:[#allocation3 + $0x4c] sm:$0xf] %v7923_v60 }
 0x335   : > { %3645 = vst [vmem:[#allocation3 + $0x50] sm:$0xf] %v7923_v60 }
 0x336 PF: > { %v7233_v32 = vld [vmem:[#allocation10 + $0xf8] sm:$0xff]  ;;  %v7232_v28 = vld [vmem:[#allocation10 + $0xf0] sm:$0xff]  ;;  %v7231_v61 = vld [vmem:[#allocation10 + $0xe8] sm:$0xff]  ;;  %s10016_s20 = sld [smem:[#allocation73_spill]]  ;;  %s7032_s1 = sshll.u32 %s7895_s30, 4 }
 0x337   : > { %v7241_v12 = vld [vmem:[#allocation10 + $0x138] sm:$0xff]  ;;  %4709 = vmatpush.bf16.msra.mxu1 %v7233_v32  ;;  %v7240_v2 = vld [vmem:[#allocation10 + $0x130] sm:$0xff]  ;;  %v7239_v45 = vld [vmem:[#allocation10 + $0x128] sm:$0xff]  ;;  %s10017_s23 = sld [smem:[#allocation74_spill]]  ;;  %s5830_s6 = sshll.u32 %s8123_s15, 4  ;;  %s5831_s6 = int_to_ptr.vmem [resolvable:$true] %s5830_s6 }
 0x338   : > { %v7249_v7 = vld [vmem:[#allocation10 + $0x178] sm:$0xff]  ;;  %4758 = vmatpush.bf16.msra.mxu2 %v7241_v12  ;;  %v7248_v49 = vld [vmem:[#allocation10 + $0x170] sm:$0xff]  ;;  %v7247_v4 = vld [vmem:[#allocation10 + $0x168] sm:$0xff]  ;;  %s10018_s22 = sld [smem:[#allocation16_spill]]  ;;  %s5816_s18 = scalar_lea.sflag [#allocation7], %s343_s5 }
 0x339   : > { %4807 = vmatpush.bf16.msrb.mxu3 %v7249_v7  ;;  %v3648_v42 = vld [vmem:[#allocation3 + $0x8] sm:$0xf]  ;;  %v3649_v14 = vld [vmem:[#allocation3 + $0xc] sm:$0xf]  ;;  %v3650_v26 = vld [vmem:[#allocation3 + $0x10] sm:$0xf] }
 0x33a   : > { %v3690_v48 = vunpack.c.l.bf16 %v3648_v42  ;;  %v3691_v57 = vunpack.c.l.bf16 %v3649_v14  ;;  %v3692_v53 = vunpack.c.l.bf16 %v3650_v26  ;;  %4041 = vst [vmem:[#allocation4 + $0x10] sm:$0xf] %v3648_v42  ;;  %v7516_v16 = vld [vmem:[#allocation3 + $0x8] sm:$0xff]   ;;  %v7517_v54 = vld [vmem:[#allocation3 + $0x10] sm:$0xff]   ;;  %v7230_v23 = vld [vmem:[#allocation10 + $0xe0] sm:$0xff]  ;;  %s10019_s7 = sld [smem:[#allocation75_spill]] }
 0x33b   : > { %4710 = vmatpush.bf16.msra.mxu1 %v7232_v28  ;;  %v7238_v10 = vld [vmem:[#allocation10 + $0x120] sm:$0xff]  ;;  %4042 = vst [vmem:[#allocation4 + $0x1c] sm:$0xf] %v3649_v14  ;;  %v7390_v3 = vunpack.c.h.bf16 %v7516_v16  ;;  %v7393_v58 = vunpack.c.l.bf16 %v7517_v54  ;;  %v7394_v52 = vunpack.c.h.bf16 %v7517_v54  ;;  %v3651_v56 = vld [vmem:[#allocation3 + $0x14] sm:$0xf]  ;;  %v9973_v44 = vld [vmem:[#allocation23_spill] sm:$0xff] }
 0x33c   : > { %4759 = vmatpush.bf16.msra.mxu2 %v7240_v2  ;;  %v7246_v37 = vld [vmem:[#allocation10 + $0x160] sm:$0xff]  ;;  %v3712_v6 = vmul.f32 %v3690_v48, %v9973_v44  ;;  %v9974_v50 = vld [vmem:[#allocation24_spill] sm:$0xff]  ;;  %v9975_v38 = vld [vmem:[#allocation25_spill] sm:$0xff]  ;;  %4043 = vst [vmem:[#allocation4 + $0x28] sm:$0xf] %v3650_v26  ;;  %v3693_v21 = vunpack.c.l.bf16 %v3651_v56 }
 0x33d   : > { %4808 = vmatpush.bf16.msrb.mxu3 %v7248_v49  ;;  %v3713_v27 = vmul.f32 %v3691_v57, %v9974_v50  ;;  %v3714_v46 = vmul.f32 %v3692_v53, %v9975_v38  ;;  %v3652_v13 = vld [vmem:[#allocation3 + $0x18] sm:$0xf]  ;;  %v7229_v51 = vld [vmem:[#allocation10 + $0xd8] sm:$0xff]  ;;  %v9977_v24 = vld [vmem:[#allocation63_spill] sm:$0xff]  ;;  %4044 = vst [vmem:[#allocation4 + $0x34] sm:$0xf] %v3651_v56 }
 0x33e   : > { %v7237_v63 = vld [vmem:[#allocation10 + $0x118] sm:$0xff]  ;;  %v9976_v18 = vld [vmem:[#allocation62_spill] sm:$0xff]  ;;  %v3777_v39 = vmul.f32 %v7393_v58, %v9977_v24  ;;  %v9978_v34 = vld [vmem:[#allocation64_spill] sm:$0xff]  ;;  %v9266_v29 = vpack.c.bf16 %v3712_v6, %v3712_v6  ;;  %4045 = vst [vmem:[#allocation4 + $0x40] sm:$0xf] %v3652_v13  ;;  %v3694_v9 = vunpack.c.l.bf16 %v3652_v13  ;;  %s7033_s19 = sshll.u32 %s10018_s22, 5 }
 0x33f   : > { %4711 = vmatpush.bf16.msra.mxu1 %v7231_v61  ;;  %v3776_v8 = vmul.f32 %v7390_v3, %v9976_v18  ;;  %v3778_v33 = vmul.f32 %v7394_v52, %v9978_v34  ;;  %v3734_v59 = vpack.c.bf16 %v3713_v27, %v3713_v27  ;;  %v3735_v62 = vpack.c.bf16 %v3714_v46, %v3714_v46  ;;  %v9979_v47 = vld [vmem:[#allocation29_spill] sm:$0xff]  ;;  %v9271_v41 = vld [vmem:[#allocation3 + $0x1c] sm:$0xf]  ;;  %v9273_v36 = vld [vmem:[#allocation3 + $0x20] sm:$0xf]  ;;  %s5827_s2 = sadd.s32 %s7033_s19, %s7032_s1 }
 0x340   : > { %4760 = vmatpush.bf16.msra.mxu2 %v7239_v45  ;;  %v3715_v0 = vmul.f32 %v3693_v21, %v9979_v47  ;;  %v7245_v43 = vld [vmem:[#allocation10 + $0x158] sm:$0xff]  ;;  %v3798_v11 = vpack.c.bf16 %v3777_v39, %v3777_v39  ;;  %v3831_v15 = vshrl.u32 %v9266_v29, 16  ;;  %v9276_v40 = vld [vmem:[#allocation3 + $0x18] sm:$0xff]   ;;  %4046 = vst [vmem:[#allocation4 + $0x4c] sm:$0xf] %v9271_v41  ;;  %v7228_v17 = vld [vmem:[#allocation10 + $0xd0] sm:$0xff] }
 0x341   : > { %4809 = vmatpush.bf16.msrb.mxu3 %v7247_v4  ;;  %v3797_v1 = vpack.c.bf16 %v3776_v8, %v3776_v8  ;;  %v9269_v22 = vpack.c.bf16 %v3778_v33, %v3778_v33  ;;  %v3840_v5 = vshrl.u32 %v3734_v59, 16  ;;  %v3843_v19 = vshll.u32 %v3734_v59, 16  ;;  %v7236_v20 = vld [vmem:[#allocation10 + $0x110] sm:$0xff]  ;;  %4047 = vst [vmem:[#allocation4 + $0x58] sm:$0xf] %v9273_v36  ;;  %v7227_v3 = vld [vmem:[#allocation10 + $0xc8] sm:$0xff] }
 0x342   : > { %v3849_v25 = vshrl.u32 %v3735_v62, 16  ;;  %v3852_v55 = vshll.u32 %v3735_v62, 16  ;;  %v4090_v60 = vshll.u32 %v3798_v11, 16  ;;  %v9280_v32 = vrot.slane %v3831_v15, 7  ;;  %v7178_v28 = vld [vmem:[#allocation4 + $0x1c] sm:$0xf] }
 0x343   : > { %4712 = vmatpush.bf16.msra.mxu1 %v7230_v23  ;;  %v4080_v35 = vshll.u32 %v3797_v1, 16  ;;  %v4084_v31 = vshrl.u32 %v3797_v1, 16  ;;  %v3842_v12 = vrot.slane %v3840_v5, 7  ;;  %v4094_v2 = vshrl.u32 %v3798_v11, 16  ;;  %v6543_v49 = vld [vmem:[#allocation4 + $0x24] sm:$0xf0] }
 0x344   : > { %4761 = vmatpush.bf16.msra.mxu2 %v7238_v10  ;;  %v9282_v7 = vrot.slane %v3849_v25, 7  ;;  %v4092_v4 = vrot.slane %v4090_v60, 5  ;;  %v4100_v42 = vshll.u32 %v9269_v22, 16  ;;  %v7244_v14 = vld [vmem:[#allocation10 + $0x150] sm:$0xff]  ;;  %v3838_v26 = vrot.slane %v9280_v32, 4  ;;  %v7235_v50 = vld [vmem:[#allocation10 + $0x108] sm:$0xff] }
 0x345   : > { %4810 = vmatpush.bf16.msrb.mxu3 %v7246_v37  ;;  %v9284_v61 = vrot.slane %v4080_v35, 5  ;;  %v4086_v45 = vrot.slane %v4084_v31, 4  ;;  %v3845_v48 = vor.u32 %v3843_v19, %v3842_v12  ;;  %v3847_v57 = vrot.slane %v3842_v12, 4  ;;  %v9981_v37 = vld [vmem:[#allocation30_spill] sm:$0xff]  ;;  %v7243_v21 = vld [vmem:[#allocation10 + $0x148] sm:$0xff]  ;;  %v9983_v62 = vld [vmem:[#allocation65_spill] sm:$0xff] }
 0x346   : > { %v3854_v53 = vor.u32 %v3852_v55, %v9282_v7  ;;  %v9289_v16 = vor.u32 %v7178_v28, %v6543_v49  ;;  %v4096_v23 = vrot.slane %v4094_v2, 4  ;;  %v7397_v10 = vunpack.c.l.bf16 %v9276_v40  ;;  %v7226_v24 = vld [vmem:[#allocation10 + $0xc0] sm:$0xff]  ;;  %v7214_v1 = vld [vmem:[#allocation10 + $0x78] sm:$0xff]  ;;  %v7519_v31 = vld [vmem:[#allocation3 + $0x20] sm:$0xff]   ;;  %s7034_s30 = sshll.u32 %s5827_s2, 2 }
 0x347   : > { %4713 = vmatpush.bf16.msra.mxu1 %v7229_v51  ;;  %v4087_v54 = vor.u32 %v4086_v45, %v9284_v61  ;;  %v3846_v52 = vsel %vm8242_vm8, %v3838_v26, %v3845_v48  ;;  %v3716_v44 = vmul.f32 %v3694_v9, %v9981_v37  ;;  %v3736_v6 = vpack.c.bf16 %v3715_v0, %v3715_v0  ;;  %v7234_v39 = vld [vmem:[#allocation10 + $0x100] sm:$0xff]  ;;  %v9312_v2 = vld [vmem:[#allocation3 + $0x24] sm:$0xf]  ;;  %s5829_s17 = scalar_lea.hbm %s10019_s7, %s7034_s30 }
 0x348   : > { %4762 = vmatpush.bf16.msra.mxu2 %v7237_v63  ;;  %v3855_v56 = vsel %vm8242_vm8, %v3847_v57, %v3854_v53  ;;  %4022 = vst [vmem:[#allocation4 + $0x18] sm:$0xf] %v3846_v52  ;;  %v4097_v38 = vor.u32 %v4096_v23, %v4092_v4  ;;  %v4102_v46 = vrot.slane %v4100_v42, 5  ;;  %v3856_v13 = vrot.slane %v9282_v7, 4  ;;  %v9984_v5 = vld [vmem:[#allocation66_spill] sm:$0xff]  ;;  %v9985_v53 = vld [vmem:[#allocation32_spill] sm:$0xff] }
 0x349   : > { %4811 = vmatpush.bf16.msrb.mxu3 %v7245_v43  ;;  %v4088_v27 = vrot.slane %v4087_v54, 4  ;;  %4023 = vst [vmem:[#allocation4 + $0x24] sm:$0xf] %v3855_v56  ;;  %v3737_v51 = vpack.c.bf16 %v3716_v44, %v3716_v44  ;;  %v3858_v63 = vshrl.u32 %v3736_v6, 16  ;;  %v3861_v18 = vshll.u32 %v3736_v6, 16  ;;  %v7242_v43 = vld [vmem:[#allocation10 + $0x140] sm:$0xff] }
 0x34a   : > { %v7398_v8 = vunpack.c.h.bf16 %v9276_v40  ;;  %v4098_v59 = vrot.slane %v4097_v38, 4  ;;  %v3779_v47 = vmul.f32 %v7397_v10, %v9983_v62  ;;  %v4104_v0 = vshrl.u32 %v9269_v22, 16  ;;  %v7206_v40 = vld [vmem:[#allocation10 + $0x38] sm:$0xff]  ;;  %4048 = vst [vmem:[#allocation4 + $0x64] sm:$0xf] %v9312_v2  ;;  %s5832_s8 = sshll.u32 %s5829_s17, 4  ;;  %s5833_s8 = int_to_ptr.hbm [resolvable:$true] %s5832_s8 }
 0x34b   : > { %4714 = vmatpush.bf16.msra.mxu1 %v7228_v17  ;;  %v4093_v33 = vsel %vm8514_vm4, %v4088_v27, %v4092_v4  ;;  %v3860_v11 = vrot.slane %v3858_v63, 7  ;;  %v3867_v9 = vshrl.u32 %v3737_v51, 16  ;;  %v3870_v15 = vshll.u32 %v3737_v51, 16  ;;  %v7181_v17 = vld [vmem:[#allocation4 + $0x34] sm:$0xf]  ;;  %s7799_s14 = sshra.s32 %s5833_s8, 4  ;;  %s7800_s14 = int_to_ptr.hbm [resolvable:$true] %s7799_s14 }
 0x34c   : > { %4763 = vmatpush.bf16.msra.mxu2 %v7236_v20  ;;  %4286 = vst [vmem:[#allocation4 + $0x20] sm:$0xf] %v4093_v33  ;;  %v3780_v19 = vmul.f32 %v7398_v8, %v9984_v5  ;;  %v4103_v25 = vsel %vm8514_vm4, %v4098_v59, %v4102_v46  ;;  %v6555_v20 = vld [vmem:[#allocation4 + $0x3c] sm:$0xf0]  ;;  %v3800_v55 = vpack.c.bf16 %v3779_v47, %v3779_v47  ;;  %v4106_v35 = vrot.slane %v4104_v0, 4  ;;  %v9988_v5 = vld [vmem:[#allocation36_spill] sm:$0xff]  ;;  %p7806_p7 = scmp.lt.s32.totalorder %s7800_s14, %s10019_s7 }
 0x34d   : > { %4812 = vmatpush.bf16.msrb.mxu3 %v7244_v14  ;;  %v3695_v22 = vunpack.c.l.bf16 %v9271_v41  ;;  %4287 = vst [vmem:[#allocation4 + $0x2c] sm:$0xf] %v4103_v25  ;;  %v3863_v60 = vor.u32 %v3861_v18, %v3860_v11  ;;  %v3865_v12 = vrot.slane %v3860_v11, 4  ;;  %v9308_v7 = vrot.slane %v3867_v9, 7  ;;  %v9315_v14 = vld [vmem:[#allocation3 + $0x28] sm:$0xf] }
 0x34e   : > { %v9310_v28 = vpack.c.bf16 %v3780_v19, %v3780_v19  ;;  %v4107_v49 = vor.u32 %v4106_v35, %v4102_v46  ;;  %v4110_v45 = vshll.u32 %v3800_v55, 16  ;;  %v4114_v4 = vshrl.u32 %v3800_v55, 16  ;;  %4049 = vst [vmem:[#allocation4 + $0x70] sm:$0xf] %v9315_v14 }
 0x34f   : > { %4715 = vmatpush.bf16.msra.mxu1 %v7227_v3  ;;  %v3696_v42 = vunpack.c.l.bf16 %v9273_v36  ;;  %v6541_v41 = vld [vmem:[#allocation4 + $0x18] sm:$0xf]  ;;  %v3864_v26 = vsel %vm8242_vm8, %v3856_v13, %v3863_v60  ;;  %v3872_v48 = vor.u32 %v3870_v15, %v9308_v7  ;;  %v3717_v54 = vmul.f32 %v3695_v22, %v9985_v53  ;;  %v7212_v15 = vld [vmem:[#allocation10 + $0x68] sm:$0xff]  ;;  %v7520_v53 = vld [vmem:[#allocation3 + $0x28] sm:$0xff]  }
 0x350   : > { %4764 = vmatpush.bf16.msra.mxu2 %v7235_v50  ;;  %v4120_v57 = vshll.u32 %v9310_v28, 16  ;;  %v7179_v23 = vld [vmem:[#allocation4 + $0x20] sm:$0xf0]  ;;  %4024 = vst [vmem:[#allocation4 + $0x30] sm:$0xf] %v3864_v26  ;;  %v4108_v36 = vrot.slane %v4107_v49, 4  ;;  %v7401_v56 = vunpack.c.l.bf16 %v7519_v31  ;;  %v9329_v6 = vor.u32 %v7181_v17, %v6555_v20 }
 0x351   : > { %4813 = vmatpush.bf16.msrb.mxu3 %v7243_v21  ;;  %v4112_v10 = vrot.slane %v4110_v45, 5  ;;  %v9986_v3 = vld [vmem:[#allocation33_spill] sm:$0xff]  ;;  %v9325_v37 = vor.u32 %v7179_v23, %v6541_v41  ;;  %v3873_v44 = vsel %vm8242_vm8, %v3865_v12, %v3872_v48  ;;  %v7213_v50 = vld [vmem:[#allocation10 + $0x70] sm:$0xff]  ;;  %v4116_v27 = vrot.slane %v4114_v4, 4  ;;  %v9989_v12 = vld [vmem:[#allocation35_spill] sm:$0xff] }
 0x352   : > { %v3718_v52 = vmul.f32 %v3696_v42, %v9986_v3  ;;  %4025 = vst [vmem:[#allocation4 + $0x3c] sm:$0xf] %v3873_v44  ;;  %v4122_v13 = vrot.slane %v4120_v57, 5  ;;  %v7205_v21 = vld [vmem:[#allocation10 + $0x30] sm:$0xff]  ;;  %v3738_v51 = vpack.c.bf16 %v3717_v54, %v3717_v54  ;;  %v7402_v8 = vunpack.c.h.bf16 %v7519_v31  ;;  %v7204_v31 = vld [vmem:[#allocation10 + $0x28] sm:$0xff] }
 0x353   : > { %4716 = vmatpush.bf16.msra.mxu1 %v7226_v24  ;;  %v6549_v38 = vld [vmem:[#allocation4 + $0x20] sm:$0xf]  ;;  %v4113_v46 = vsel %vm8514_vm4, %v4108_v36, %v4112_v10  ;;  %v4117_v18 = vor.u32 %v4116_v27, %v4112_v10  ;;  %v9987_v24 = vld [vmem:[#allocation67_spill] sm:$0xff]  ;;  %v3697_v33 = vunpack.c.l.bf16 %v9312_v2  ;;  %v3874_v9 = vrot.slane %v9308_v7, 4 }
 0x354   : > { %4765 = vmatpush.bf16.msra.mxu2 %v7234_v39  ;;  %v3739_v63 = vpack.c.bf16 %v3718_v52, %v3718_v52  ;;  %4288 = vst [vmem:[#allocation4 + $0x38] sm:$0xf] %v4113_v46  ;;  %v3781_v39 = vmul.f32 %v7401_v56, %v9987_v24  ;;  %v7180_v59 = vld [vmem:[#allocation4 + $0x28] sm:$0xf0]  ;;  %v3876_v62 = vshrl.u32 %v3738_v51, 16  ;;  %v3879_v47 = vshll.u32 %v3738_v51, 16 }
 0x355   : > { %4814 = vmatpush.bf16.msrb.mxu3 %v7242_v43  ;;  %v4118_v11 = vrot.slane %v4117_v18, 4  ;;  %v3782_v19 = vmul.f32 %v7402_v8, %v9988_v5  ;;  %v4124_v20 = vshrl.u32 %v9310_v28, 16  ;;  %v3698_v60 = vunpack.c.l.bf16 %v9315_v14  ;;  %v9990_v48 = vld [vmem:[#allocation39_spill] sm:$0xff]  ;;  %v3657_v18 = vld [vmem:[#allocation3 + $0x2c] sm:$0xf] }
 0x356   : > { %4717 = vmatmul.bf16.vlgmr.msra.gmra.mxu1 %v9325_v37  ;;  %v3885_v0 = vshrl.u32 %v3739_v63, 16  ;;  %v3888_v43 = vshll.u32 %v3739_v63, 16  ;;  %v3878_v25 = vrot.slane %v3876_v62, 7  ;;  %v3802_v17 = vpack.c.bf16 %v3781_v39, %v3781_v39  ;;  %v3658_v62 = vld [vmem:[#allocation3 + $0x30] sm:$0xf] }
 0x357   : > { %5016 = vmatpush.bf16.msrb.mxu1 %v7206_v40  ;;  %4766 = vmatmul.bf16.vlgmr.msra.gmra.mxu2 %v9289_v16  ;;  %v6553_v55 = vld [vmem:[#allocation4 + $0x30] sm:$0xf]  ;;  %v4123_v35 = vsel %vm8514_vm4, %v4118_v11, %v4122_v13  ;;  %v9347_v22 = vpack.c.bf16 %v3782_v19, %v3782_v19  ;;  %v3719_v7 = vmul.f32 %v3697_v33, %v9989_v12  ;;  %v4126_v4 = vrot.slane %v4124_v20, 4  ;;  %v9991_v33 = vld [vmem:[#allocation37_spill] sm:$0xff]  ;;  %v9993_v12 = vld [vmem:[#allocation43_spill] sm:$0xff] }
 0x358   : > { %5065 = vmatpush.bf16.msrb.mxu2 %v7214_v1  ;;  %v9337_v1 = vor.u32 %v7180_v59, %v6549_v38  ;;  %v9341_v40 = vrot.slane %v3885_v0, 7  ;;  %4289 = vst [vmem:[#allocation4 + $0x44] sm:$0xf] %v4123_v35  ;;  %v3881_v2 = vor.u32 %v3879_v47, %v3878_v25  ;;  %v3883_v49 = vrot.slane %v3878_v25, 4 }
 0x359   : > { %v7182_v28 = vld [vmem:[#allocation4 + $0x38] sm:$0xf0]  ;;  %v4130_v42 = vshll.u32 %v3802_v17, 16  ;;  %v4134_v41 = vshrl.u32 %v3802_v17, 16  ;;  %v4140_v26 = vshll.u32 %v9347_v22, 16  ;;  %v3720_v57 = vmul.f32 %v3698_v60, %v9990_v48 }
 0x35a   : > { %4815 = vmatmul.bf16.vlgmr.msrb.gmra.mxu3 %v9337_v1  ;;  %v3890_v45 = vor.u32 %v3888_v43, %v9341_v40  ;;  %v9354_v54 = vor.u32 %v7182_v28, %v6553_v55  ;;  %v3882_v14 = vsel %vm8242_vm8, %v3874_v9, %v3881_v2  ;;  %v4127_v36 = vor.u32 %v4126_v4, %v4122_v13  ;;  %v9992_v43 = vld [vmem:[#allocation38_spill] sm:$0xff] }
 0x35b   : > { %5017 = vmatpush.bf16.msrb.mxu1 %v7205_v21  ;;  %4026 = vst [vmem:[#allocation4 + $0x48] sm:$0xf] %v3882_v14  ;;  %v4132_v10 = vrot.slane %v4130_v42, 5  ;;  %v4136_v3 = vrot.slane %v4134_v41, 4  ;;  %v4142_v52 = vrot.slane %v4140_v26, 5  ;;  %v3740_v56 = vpack.c.bf16 %v3719_v7, %v3719_v7 }
 0x35c   : > { %5066 = vmatpush.bf16.msrb.mxu2 %v7213_v50  ;;  %v3891_v23 = vsel %vm8242_vm8, %v3883_v49, %v3890_v45  ;;  %v4128_v44 = vrot.slane %v4127_v36, 4  ;;  %v3741_v50 = vpack.c.bf16 %v3720_v57, %v3720_v57  ;;  %v3892_v27 = vrot.slane %v9341_v40, 4  ;;  %v6561_v8 = vld [vmem:[#allocation4 + $0x38] sm:$0xf]  ;;  %4050 = vst [vmem:[#allocation4 + $0x7c] sm:$0xf] %v3657_v18 }
 0x35d   : > { %4027 = vst [vmem:[#allocation4 + $0x54] sm:$0xf] %v3891_v23  ;;  %v7405_v38 = vunpack.c.l.bf16 %v7520_v53  ;;  %v4137_v46 = vor.u32 %v4136_v3, %v4132_v10  ;;  %v3894_v21 = vshrl.u32 %v3740_v56, 16  ;;  %v3897_v51 = vshll.u32 %v3740_v56, 16  ;;  %v7211_v45 = vld [vmem:[#allocation10 + $0x60] sm:$0xff]  ;;  %v9996_v56 = vld [vmem:[#allocation45_spill] sm:$0xff] }
 0x35e   : > { %v7406_v63 = vunpack.c.h.bf16 %v7520_v53  ;;  %v4133_v13 = vsel %vm8514_vm4, %v4128_v44, %v4132_v10  ;;  %v3903_v24 = vshrl.u32 %v3741_v50, 16  ;;  %v3906_v39 = vshll.u32 %v3741_v50, 16  ;;  %4051 = vst [vmem:[#allocation4 + $0x88] sm:$0xf] %v3658_v62  ;;  %v9994_v53 = vld [vmem:[#allocation46_spill] sm:$0xff]  ;;  %v9995_v10 = vld [vmem:[#allocation44_spill] sm:$0xff] }
 0x35f   : > { %5018 = vmatpush.bf16.msrb.mxu1 %v7204_v31  ;;  %v3783_v59 = vmul.f32 %v7405_v38, %v9991_v33  ;;  %v4138_v47 = vrot.slane %v4137_v46, 4  ;;  %4290 = vst [vmem:[#allocation4 + $0x50] sm:$0xf] %v4133_v13  ;;  %v3896_v0 = vrot.slane %v3894_v21, 7  ;;  %v3699_v9 = vunpack.c.l.bf16 %v3657_v18  ;;  %v7183_v5 = vld [vmem:[#allocation4 + $0x40] sm:$0xf0] }
 0x360   : > { %5067 = vmatpush.bf16.msrb.mxu2 %v7212_v15  ;;  %v3784_v11 = vmul.f32 %v7406_v63, %v9992_v43  ;;  %v7521_v15 = vld [vmem:[#allocation3 + $0x30] sm:$0xff]   ;;  %v9365_v19 = vrot.slane %v3903_v24, 7  ;;  %v4144_v40 = vshrl.u32 %v9347_v22, 16  ;;  %v3700_v60 = vunpack.c.l.bf16 %v3658_v62  ;;  %v7203_v38 = vld [vmem:[#allocation10 + $0x20] sm:$0xff]  ;;  %v7184_v21 = vld [vmem:[#allocation4 + $0x4c] sm:$0xf] }
 0x361   : > { %v3804_v25 = vpack.c.bf16 %v3783_v59, %v3783_v59  ;;  %v4143_v17 = vsel %vm8514_vm4, %v4138_v47, %v4142_v52  ;;  %v3899_v20 = vor.u32 %v3897_v51, %v3896_v0  ;;  %v3901_v55 = vrot.slane %v3896_v0, 4  ;;  %v6567_v13 = vld [vmem:[#allocation4 + $0x54] sm:$0xf0] }
 0x362   : > { %v3805_v35 = vpack.c.bf16 %v3784_v11, %v3784_v11  ;;  %4291 = vst [vmem:[#allocation4 + $0x5c] sm:$0xf] %v4143_v17  ;;  %v3908_v31 = vor.u32 %v3906_v39, %v9365_v19  ;;  %v3721_v7 = vmul.f32 %v3699_v9, %v9993_v12  ;;  %v7409_v2 = vunpack.c.l.bf16 %v7521_v15 }
 0x363   : > { %v9374_v49 = vor.u32 %v7183_v5, %v6561_v8  ;;  %v3900_v22 = vsel %vm8242_vm8, %v3892_v27, %v3899_v20  ;;  %v4146_v4 = vrot.slane %v4144_v40, 4  ;;  %v7410_v28 = vunpack.c.h.bf16 %v7521_v15  ;;  %v6565_v8 = vld [vmem:[#allocation4 + $0x48] sm:$0xf]  ;;  %5019 = vmatpush.bf16.msrb.mxu1 %v7203_v38 }
 0x364   : > { %v3909_v42 = vsel %vm8242_vm8, %v3901_v55, %v3908_v31  ;;  %4028 = vst [vmem:[#allocation4 + $0x60] sm:$0xf] %v3900_v22  ;;  %v4150_v41 = vshll.u32 %v3804_v25, 16  ;;  %5068 = vmatpush.bf16.msrb.mxu2 %v7211_v45  ;;  %v4154_v48 = vshrl.u32 %v3804_v25, 16  ;;  %v4160_v57 = vshll.u32 %v3805_v35, 16 }
 0x365   : > { %4029 = vst [vmem:[#allocation4 + $0x6c] sm:$0xf] %v3909_v42  ;;  %v4147_v26 = vor.u32 %v4146_v4, %v4142_v52  ;;  %v3722_v14 = vmul.f32 %v3700_v60, %v9994_v53  ;;  %v3742_v36 = vpack.c.bf16 %v3721_v7, %v3721_v7  ;;  %v3785_v3 = vmul.f32 %v7409_v2, %v9995_v10  ;;  %v7185_v11 = vld [vmem:[#allocation4 + $0x50] sm:$0xf0]  ;;  %v3660_v7 = vld [vmem:[#allocation3 + $0x38] sm:$0xf] }
 0x366   : > { %4722 = vmatmul.bf16.gmra.mxu1 %v9354_v54  ;;  %v4152_v23 = vrot.slane %v4150_v41, 5  ;;  %v3786_v44 = vmul.f32 %v7410_v28, %v9996_v56  ;;  %v4156_v27 = vrot.slane %v4154_v48, 4  ;;  %v4162_v51 = vrot.slane %v4160_v57, 5  ;;  %v7522_v2 = vld [vmem:[#allocation3 + $0x38] sm:$0xff]   ;;  %v6573_v42 = vld [vmem:[#allocation4 + $0x50] sm:$0xf] }
 0x367   : > { %4771 = vmatmul.bf16.gmra.mxu2 %v9329_v6  ;;  %v4148_v50 = vrot.slane %v4147_v26, 4  ;;  %v3743_v46 = vpack.c.bf16 %v3722_v14, %v3722_v14  ;;  %v3912_v63 = vshrl.u32 %v3742_v36, 16  ;;  %v3915_v52 = vshll.u32 %v3742_v36, 16  ;;  %v9997_v10 = vld [vmem:[#allocation49_spill] sm:$0xff]  ;;  %v9998_v56 = vld [vmem:[#allocation50_spill] sm:$0xff] }
 0x368   : > { %v3806_v18 = vpack.c.bf16 %v3785_v3, %v3785_v3  ;;  %v4157_v39 = vor.u32 %v4156_v27, %v4152_v23  ;;  %v3910_v62 = vrot.slane %v9365_v19, 4  ;;  %v9387_v0 = vpack.c.bf16 %v3786_v44, %v3786_v44  ;;  %4053 = vst [vmem:[#allocation4 + $0xa0] sm:$0xf] %v3660_v7 }
 0x369   : > { %v4153_v24 = vsel %vm8514_vm4, %v4148_v50, %v4152_v23  ;;  %v3921_v33 = vshrl.u32 %v3743_v46, 16  ;;  %v3924_v59 = vshll.u32 %v3743_v46, 16  ;;  %v3914_v47 = vrot.slane %v3912_v63, 7  ;;  %v7186_v53 = vld [vmem:[#allocation4 + $0x58] sm:$0xf0]  ;;  %v9999_v50 = vld [vmem:[#allocation47_spill] sm:$0xff] }
 0x36a   : > { %4820 = vmatmul.bf16.gmra.mxu3 %v9374_v49  ;;  %4292 = vst [vmem:[#allocation4 + $0x68] sm:$0xf] %v4153_v24  ;;  %v4164_v43 = vshrl.u32 %v3805_v35, 16  ;;  %v4158_v9 = vrot.slane %v4157_v39, 4  ;;  %v4170_v5 = vshll.u32 %v3806_v18, 16  ;;  %v4174_v25 = vshrl.u32 %v3806_v18, 16 }
 0x36b   : > { %v9389_v15 = vrot.slane %v3921_v33, 7  ;;  %v3917_v40 = vor.u32 %v3915_v52, %v3914_v47  ;;  %v3919_v17 = vrot.slane %v3914_v47, 4  ;;  %v4180_v55 = vshll.u32 %v9387_v0, 16  ;;  %v3659_v35 = vld [vmem:[#allocation3 + $0x34] sm:$0xf] }
 0x36c   : > { %v4166_v20 = vrot.slane %v4164_v43, 4  ;;  %v9392_v31 = vor.u32 %v7184_v21, %v6567_v13  ;;  %v4163_v19 = vsel %vm8514_vm4, %v4158_v9, %v4162_v51  ;;  %v4172_v12 = vrot.slane %v4170_v5, 5  ;;  %4052 = vst [vmem:[#allocation4 + $0x94] sm:$0xf] %v3659_v35  ;;  %v7210_v63 = vld [vmem:[#allocation10 + $0x58] sm:$0xff]  ;;  %v10000_v13 = vld [vmem:[#allocation48_spill] sm:$0xff] }
 0x36d   : > { %v3926_v60 = vor.u32 %v3924_v59, %v9389_v15  ;;  %v9397_v22 = vor.u32 %v7185_v11, %v6565_v8  ;;  %4293 = vst [vmem:[#allocation4 + $0x74] sm:$0xf] %v4163_v19  ;;  %v3918_v45 = vsel %vm8242_vm8, %v3910_v62, %v3917_v40  ;;  %v4176_v28 = vrot.slane %v4174_v25, 4  ;;  %5069 = vmatpush.bf16.msrb.mxu2 %v7210_v63  ;;  %v7202_v9 = vld [vmem:[#allocation10 + $0x18] sm:$0xff]  ;;  %v10001_v63 = vld [vmem:[#allocation51_spill] sm:$0xff] }
 0x36e   : > { %v4167_v4 = vor.u32 %v4166_v20, %v4162_v51  ;;  %4030 = vst [vmem:[#allocation4 + $0x78] sm:$0xf] %v3918_v45  ;;  %v3701_v26 = vunpack.c.l.bf16 %v3659_v35  ;;  %v3702_v48 = vunpack.c.l.bf16 %v3660_v7  ;;  %v7413_v57 = vunpack.c.l.bf16 %v7522_v2  ;;  %5020 = vmatpush.bf16.msrb.mxu1 %v7202_v9  ;;  %v6577_v45 = vld [vmem:[#allocation4 + $0x60] sm:$0xf] }
 0x36f   : > { %v3927_v41 = vsel %vm8242_vm8, %v3919_v17, %v3926_v60  ;;  %v4177_v23 = vor.u32 %v4176_v28, %v4172_v12  ;;  %v4182_v36 = vrot.slane %v4180_v55, 5  ;;  %v7414_v21 = vunpack.c.h.bf16 %v7522_v2  ;;  %v6579_v28 = vld [vmem:[#allocation4 + $0x6c] sm:$0xf0] }
 0x370   : > { %4031 = vst [vmem:[#allocation4 + $0x84] sm:$0xf] %v3927_v41  ;;  %v4168_v14 = vrot.slane %v4167_v4, 4  ;;  %v3723_v3 = vmul.f32 %v3701_v26, %v9997_v10  ;;  %v3724_v44 = vmul.f32 %v3702_v48, %v9998_v56  ;;  %v3787_v27 = vmul.f32 %v7413_v57, %v9999_v50  ;;  %v7187_v4 = vld [vmem:[#allocation4 + $0x64] sm:$0xf]  ;;  %v7523_v56 = vld [vmem:[#allocation3 + $0x40] sm:$0xff]  }
 0x371   : > { %v4178_v46 = vrot.slane %v4177_v23, 4  ;;  %v9410_v51 = vor.u32 %v7186_v53, %v6573_v42  ;;  %v3788_v24 = vmul.f32 %v7414_v21, %v10000_v13  ;;  %v4184_v33 = vshrl.u32 %v9387_v0, 16  ;;  %v7188_v41 = vld [vmem:[#allocation4 + $0x68] sm:$0xf0]  ;;  %v3661_v53 = vld [vmem:[#allocation3 + $0x3c] sm:$0xf] }
 0x372   : > { %v4173_v38 = vsel %vm8514_vm4, %v4168_v14, %v4172_v12  ;;  %v3744_v52 = vpack.c.bf16 %v3723_v3, %v3723_v3  ;;  %v3745_v18 = vpack.c.bf16 %v3724_v44, %v3724_v44  ;;  %v3808_v39 = vpack.c.bf16 %v3787_v27, %v3787_v27  ;;  %v3662_v14 = vld [vmem:[#allocation3 + $0x40] sm:$0xf]  ;;  %4054 = vst [vmem:[#allocation4 + $0xac] sm:$0xf] %v3661_v53  ;;  %v10003_v13 = vld [vmem:[#allocation53_spill] sm:$0xff] }
 0x373   : > { %4294 = vst [vmem:[#allocation4 + $0x80] sm:$0xf] %v4173_v38  ;;  %v4183_v8 = vsel %vm8514_vm4, %v4178_v46, %v4182_v36  ;;  %v9416_v11 = vpack.c.bf16 %v3788_v24, %v3788_v24  ;;  %v3928_v5 = vrot.slane %v9389_v15, 4  ;;  %v4186_v17 = vrot.slane %v4184_v33, 4  ;;  %v6585_v38 = vld [vmem:[#allocation4 + $0x68] sm:$0xf] }
 0x374   : > { %4295 = vst [vmem:[#allocation4 + $0x8c] sm:$0xf] %v4183_v8  ;;  %v3930_v59 = vshrl.u32 %v3744_v52, 16  ;;  %v3939_v62 = vshrl.u32 %v3745_v18, 16  ;;  %v3933_v47 = vshll.u32 %v3744_v52, 16  ;;  %v3942_v43 = vshll.u32 %v3745_v18, 16 }
 0x375   : > { %v4190_v20 = vshll.u32 %v3808_v39, 16  ;;  %v4194_v55 = vshrl.u32 %v3808_v39, 16  ;;  %v4200_v12 = vshll.u32 %v9416_v11, 16  ;;  %v4187_v35 = vor.u32 %v4186_v17, %v4182_v36  ;;  %v7189_v46 = vld [vmem:[#allocation4 + $0x70] sm:$0xf0] }
 0x376   : > { %4727 = vmatmul.bf16.gmra.mxu1 %v9397_v22  ;;  %v3932_v25 = vrot.slane %v3930_v59, 7  ;;  %v9420_v40 = vrot.slane %v3939_v62, 7  ;;  %v3703_v10 = vunpack.c.l.bf16 %v3661_v53  ;;  %v3704_v3 = vunpack.c.l.bf16 %v3662_v14  ;;  %v10002_v18 = vld [vmem:[#allocation52_spill] sm:$0xff]  ;;  %4055 = vst [vmem:[#allocation4 + $0xb8] sm:$0xf] %v3662_v14 }
 0x377   : > { %4776 = vmatmul.bf16.gmra.mxu2 %v9392_v31  ;;  %v4192_v7 = vrot.slane %v4190_v20, 5  ;;  %v4196_v2 = vrot.slane %v4194_v55, 4  ;;  %v4188_v26 = vrot.slane %v4187_v35, 4  ;;  %v4202_v57 = vrot.slane %v4200_v12, 5  ;;  %v7190_v53 = vld [vmem:[#allocation4 + $0x7c] sm:$0xf] }
 0x378   : > { %v3935_v0 = vor.u32 %v3933_v47, %v3932_v25  ;;  %v3937_v19 = vrot.slane %v3932_v25, 4  ;;  %v3944_v60 = vor.u32 %v3942_v43, %v9420_v40  ;;  %v9430_v44 = vor.u32 %v7188_v41, %v6577_v45  ;;  %v7209_v47 = vld [vmem:[#allocation10 + $0x50] sm:$0xff]  ;;  %v10004_v25 = vld [vmem:[#allocation54_spill] sm:$0xff]  ;;  %v6591_v14 = vld [vmem:[#allocation4 + $0x84] sm:$0xf0] }
 0x379   : > { %v4197_v48 = vor.u32 %v4196_v2, %v4192_v7  ;;  %v4193_v23 = vsel %vm8514_vm4, %v4188_v26, %v4192_v7  ;;  %v9432_v50 = vor.u32 %v7187_v4, %v6579_v28  ;;  %v7417_v27 = vunpack.c.l.bf16 %v7523_v56  ;;  %5070 = vmatpush.bf16.msrb.mxu2 %v7209_v47  ;;  %v7201_v7 = vld [vmem:[#allocation10 + $0x10] sm:$0xff]  ;;  %v10005_v47 = vld [vmem:[#allocation26_spill] sm:$0xff] }
 0x37a   : > { %4825 = vmatmul.bf16.gmra.mxu3 %v9410_v51  ;;  %v3936_v15 = vsel %vm8242_vm8, %v3928_v5, %v3935_v0  ;;  %v3945_v42 = vsel %vm8242_vm8, %v3937_v19, %v3944_v60  ;;  %4296 = vst [vmem:[#allocation4 + $0x98] sm:$0xf] %v4193_v23  ;;  %v3725_v52 = vmul.f32 %v3703_v10, %v10001_v63  ;;  %v7418_v59 = vunpack.c.h.bf16 %v7523_v56  ;;  %v6589_v10 = vld [vmem:[#allocation4 + $0x78] sm:$0xf]  ;;  %v7524_v63 = vld [vmem:[#allocation3 + $0x48] sm:$0xff]  }
 0x37b   : > { %4032 = vst [vmem:[#allocation4 + $0x90] sm:$0xf] %v3936_v15  ;;  %v4198_v36 = vrot.slane %v4197_v48, 4  ;;  %v3726_v8 = vmul.f32 %v3704_v3, %v10002_v18  ;;  %v3789_v24 = vmul.f32 %v7417_v27, %v10003_v13  ;;  %v9441_v62 = vor.u32 %v7189_v46, %v6585_v38  ;;  %5021 = vmatpush.bf16.msrb.mxu1 %v7201_v7  ;;  %v7191_v27 = vld [vmem:[#allocation4 + $0x80] sm:$0xf0] }
 0x37c   : > { %4033 = vst [vmem:[#allocation4 + $0x9c] sm:$0xf] %v3945_v42  ;;  %v3746_v39 = vpack.c.bf16 %v3725_v52, %v3725_v52  ;;  %v3790_v17 = vmul.f32 %v7418_v59, %v10004_v25  ;;  %v4204_v20 = vshrl.u32 %v9416_v11, 16  ;;  %v3946_v2 = vrot.slane %v9420_v40, 4  ;;  %v3663_v46 = vld [vmem:[#allocation3 + $0x44] sm:$0xf] }
 0x37d   : > { %v4203_v21 = vsel %vm8514_vm4, %v4198_v36, %v4202_v57  ;;  %v3747_v33 = vpack.c.bf16 %v3726_v8, %v3726_v8  ;;  %v3810_v43 = vpack.c.bf16 %v3789_v24, %v3789_v24  ;;  %v3705_v18 = vunpack.c.l.bf16 %v3663_v46  ;;  %v7192_v59 = vld [vmem:[#allocation4 + $0x88] sm:$0xf0]  ;;  %4056 = vst [vmem:[#allocation4 + $0xc4] sm:$0xf] %v3663_v46 }
 0x37e   : > { %4297 = vst [vmem:[#allocation4 + $0xa4] sm:$0xf] %v4203_v21  ;;  %v3948_v9 = vshrl.u32 %v3746_v39, 16  ;;  %v3951_v60 = vshll.u32 %v3746_v39, 16  ;;  %v9449_v45 = vpack.c.bf16 %v3790_v17, %v3790_v17  ;;  %v4206_v4 = vrot.slane %v4204_v20, 4  ;;  %v10007_v25 = vld [vmem:[#allocation55_spill] sm:$0xff] }
 0x37f   : > { %v3957_v5 = vshrl.u32 %v3747_v33, 16  ;;  %v4210_v55 = vshll.u32 %v3810_v43, 16  ;;  %v4214_v0 = vshrl.u32 %v3810_v43, 16  ;;  %v3960_v35 = vshll.u32 %v3747_v33, 16  ;;  %v3664_v21 = vld [vmem:[#allocation3 + $0x48] sm:$0xf] }
 0x380   : > { %v3950_v19 = vrot.slane %v3948_v9, 7  ;;  %v4207_v26 = vor.u32 %v4206_v4, %v4202_v57  ;;  %v4220_v48 = vshll.u32 %v9449_v45, 16  ;;  %v3706_v8 = vunpack.c.l.bf16 %v3664_v21  ;;  %v6597_v33 = vld [vmem:[#allocation4 + $0x80] sm:$0xf]  ;;  %v10006_v9 = vld [vmem:[#allocation28_spill] sm:$0xff] }
 0x381   : > { %v9445_v12 = vrot.slane %v3957_v5, 7  ;;  %v4212_v28 = vrot.slane %v4210_v55, 5  ;;  %v4216_v41 = vrot.slane %v4214_v0, 4  ;;  %v7421_v13 = vunpack.c.l.bf16 %v7524_v63  ;;  %4057 = vst [vmem:[#allocation4 + $0xd0] sm:$0xf] %v3664_v21  ;;  %v10008_v4 = vld [vmem:[#allocation56_spill] sm:$0xff] }
 0x382   : > { %v3953_v15 = vor.u32 %v3951_v60, %v3950_v19  ;;  %v3955_v42 = vrot.slane %v3950_v19, 4  ;;  %v4208_v3 = vrot.slane %v4207_v26, 4  ;;  %v9457_v56 = vrot.slane %v4220_v48, 5 }
 0x383   : > { %v3962_v11 = vor.u32 %v3960_v35, %v9445_v12  ;;  %v4217_v36 = vor.u32 %v4216_v41, %v4212_v28  ;;  %v9464_v24 = vor.u32 %v7191_v27, %v6589_v10  ;;  %v9466_v39 = vor.u32 %v7190_v53, %v6591_v14  ;;  %v7208_v35 = vld [vmem:[#allocation10 + $0x48] sm:$0xff]  ;;  %v7222_v41 = vld [vmem:[#allocation10 + $0xb8] sm:$0xff] }
 0x384   : > { %v3954_v23 = vsel %vm8242_vm8, %v3946_v2, %v3953_v15  ;;  %v4213_v57 = vsel %vm8514_vm4, %v4208_v3, %v4212_v28  ;;  %v3727_v43 = vmul.f32 %v3705_v18, %v10005_v47  ;;  %v3728_v5 = vmul.f32 %v3706_v8, %v10006_v9  ;;  %5071 = vmatpush.bf16.msrb.mxu2 %v7208_v35  ;;  %v7221_v3 = vld [vmem:[#allocation10 + $0xb0] sm:$0xff]  ;;  %v6603_v18 = vld [vmem:[#allocation4 + $0x9c] sm:$0xf0]  ;;  %v7220_v9 = vld [vmem:[#allocation10 + $0xa8] sm:$0xff] }
 0x385   : > { %v3963_v40 = vsel %vm8242_vm8, %v3955_v42, %v3962_v11  ;;  %4034 = vst [vmem:[#allocation4 + $0xa8] sm:$0xf] %v3954_v23  ;;  %v4218_v38 = vrot.slane %v4217_v36, 4  ;;  %v3791_v17 = vmul.f32 %v7421_v13, %v10007_v25  ;;  %v7422_v0 = vunpack.c.h.bf16 %v7524_v63  ;;  %v7200_v23 = vld [vmem:[#allocation10 + $0x8] sm:$0xff]  ;;  %5114 = vmatpush.bf16.msra.mxu3 %v7222_v41  ;;  %v6601_v13 = vld [vmem:[#allocation4 + $0x90] sm:$0xf] }
 0x386   : > { %4732 = vmatmul.bf16.gmra.mxu1 %v9430_v44  ;;  %4035 = vst [vmem:[#allocation4 + $0xb4] sm:$0xf] %v3963_v40  ;;  %v3748_v20 = vpack.c.bf16 %v3727_v43, %v3727_v43  ;;  %v3749_v55 = vpack.c.bf16 %v3728_v5, %v3728_v5  ;;  %v9473_v60 = vor.u32 %v7192_v59, %v6597_v33  ;;  %v4224_v15 = vshrl.u32 %v9449_v45, 16  ;;  %v7194_v43 = vld [vmem:[#allocation4 + $0x98] sm:$0xf0]  ;;  %v10009_v41 = vld [vmem:[#allocation42_spill] sm:$0xff] }
 0x387   : > { %4781 = vmatmul.bf16.gmra.mxu2 %v9432_v50  ;;  %v4223_v52 = vsel %vm8514_vm4, %v4218_v38, %v9457_v56  ;;  %4298 = vst [vmem:[#allocation4 + $0xb0] sm:$0xf] %v4213_v57  ;;  %v3812_v19 = vpack.c.bf16 %v3791_v17, %v3791_v17  ;;  %v3792_v28 = vmul.f32 %v7422_v0, %v10008_v4  ;;  %v3964_v40 = vrot.slane %v9445_v12, 4  ;;  %v3647_v25 = vld [vmem:[#allocation3 + $0x4] sm:$0xf]  ;;  %v7694_v0 = vld [vmem:[#allocation3 + $0x8] sm:$0xff]  }
 0x388   : > { %4299 = vst [vmem:[#allocation4 + $0xbc] sm:$0xf] %v4223_v52  ;;  %v3966_v7 = vshrl.u32 %v3748_v20, 16  ;;  %v3975_v2 = vshrl.u32 %v3749_v55, 16  ;;  %v3969_v48 = vshll.u32 %v3748_v20, 16  ;;  %v3978_v36 = vshll.u32 %v3749_v55, 16  ;;  %5022 = vmatpush.bf16.msrb.mxu1 %v7200_v23 }
 0x389   : > { %v4230_v42 = vshll.u32 %v3812_v19, 16  ;;  %v4234_v11 = vshrl.u32 %v3812_v19, 16  ;;  %v9479_v14 = vpack.c.bf16 %v3792_v28, %v3792_v28  ;;  %v4226_v10 = vrot.slane %v4224_v15, 4  ;;  %v7193_v52 = vld [vmem:[#allocation4 + $0x94] sm:$0xf]  ;;  %5115 = vmatpush.bf16.msra.mxu3 %v7221_v3 }
 0x38a   : > { %4830 = vmatmul.bf16.gmra.mxu3 %v9441_v62  ;;  %v3968_v26 = vrot.slane %v3966_v7, 7  ;;  %v9477_v53 = vrot.slane %v3975_v2, 7  ;;  %v3667_v17 = vld [vmem:[#allocation3 + $0x4] sm:$0xf]  ;;  %v3689_v55 = vunpack.c.l.bf16 %v3647_v25  ;;  %v7389_v19 = vunpack.c.l.bf16 %v7694_v0  ;;  %v6609_v4 = vld [vmem:[#allocation4 + $0x98] sm:$0xf] }
 0x38b   : > { %v4232_v38 = vrot.slane %v4230_v42, 5  ;;  %v4236_v57 = vrot.slane %v4234_v11, 4  ;;  %v4227_v21 = vor.u32 %v4226_v10, %v9457_v56  ;;  %v4240_v63 = vshll.u32 %v9479_v14, 16  ;;  %v3646_v28 = vld [vmem:[#allocation3] sm:$0x8]  ;;  %v7219_v42 = vld [vmem:[#allocation10 + $0xa0] sm:$0xff] }
 0x38c   : > { %v3971_v27 = vor.u32 %v3969_v48, %v3968_v26  ;;  %v3973_v45 = vrot.slane %v3968_v26, 4  ;;  %v3980_v46 = vor.u32 %v3978_v36, %v9477_v53  ;;  %v3752_v35 = vunpack.c.l.bf16 %v3667_v17  ;;  %v7195_v15 = vld [vmem:[#allocation4 + $0xa0] sm:$0xf0]  ;;  %4040 = vst [vmem:[#allocation4 + $0x4] sm:$0xf] %v3647_v25  ;;  %v10012_v10 = vld [vmem:[#allocation40_spill] sm:$0xff] }
 0x38d   : > { %v4237_v8 = vor.u32 %v4236_v57, %v4232_v38  ;;  %v4228_v59 = vrot.slane %v4227_v21, 4  ;;  %v9490_v47 = vrot.slane %v4240_v63, 5  ;;  %v9497_v7 = vor.u32 %v7194_v43, %v6601_v13  ;;  %5116 = vmatpush.bf16.msra.mxu3 %v7220_v9  ;;  %v10010_v48 = vld [vmem:[#allocation34_spill] sm:$0xff] }
 0x38e   : > { %v3972_v12 = vsel %vm8242_vm8, %v3964_v40, %v3971_v27  ;;  %v3981_v33 = vsel %vm8242_vm8, %v3973_v45, %v3980_v46  ;;  %v9499_v2 = vor.u32 %v7193_v52, %v6603_v18  ;;  %v3688_v11 = vunpack.c.l.bf16 %v3646_v28  ;;  %v10011_v40 = vld [vmem:[#allocation68_spill] sm:$0xff]  ;;  %v7207_v46 = vld [vmem:[#allocation10 + $0x40] sm:$0xff] }
 0x38f   : > { %4036 = vst [vmem:[#allocation4 + $0xc0] sm:$0xf] %v3972_v12  ;;  %v4238_v56 = vrot.slane %v4237_v8, 4  ;;  %v4233_v5 = vsel %vm8514_vm4, %v4228_v59, %v4232_v38  ;;  %v3711_v26 = vmul.f32 %v3689_v55, %v10009_v41  ;;  %v3774_v23 = vmul.f32 %v3752_v35, %v10010_v48  ;;  %5072 = vmatpush.bf16.msrb.mxu2 %v7207_v46  ;;  %v7218_v59 = vld [vmem:[#allocation10 + $0x98] sm:$0xff] }
 0x390   : > { %4037 = vst [vmem:[#allocation4 + $0xcc] sm:$0xf] %v3981_v33  ;;  %v3775_v36 = vmul.f32 %v7389_v19, %v10011_v40  ;;  %v3710_v3 = vmul.f32 %v3688_v11, %v10012_v10  ;;  %v9507_v57 = vor.u32 %v7195_v15, %v6609_v4  ;;  %v4244_v21 = vshrl.u32 %v9479_v14, 16  ;;  %v7199_v14 = vld [vmem:[#allocation10] sm:$0xff]  ;;  %v6615_v48 = vld [vmem:[#allocation4 + $0xb4] sm:$0xf0] }
 0x391   : > { %v4243_v20 = vsel %vm8514_vm4, %v4238_v56, %v9490_v47  ;;  %4300 = vst [vmem:[#allocation4 + $0xc8] sm:$0xf] %v4233_v5  ;;  %v3732_v27 = vpack.c.bf16 %v3711_v26, %v3711_v26  ;;  %v3795_v45 = vpack.c.bf16 %v3774_v23, %v3774_v23  ;;  %5117 = vmatpush.bf16.msra.mxu3 %v7219_v42  ;;  %v3834_v25 = vshll.u32 %v9266_v29, 16  ;;  %v6613_v42 = vld [vmem:[#allocation4 + $0xa8] sm:$0xf] }
 0x392   : > { %4301 = vst [vmem:[#allocation4 + $0xd4] sm:$0xf] %v4243_v20  ;;  %v3796_v38 = vpack.c.bf16 %v3775_v36, %v3775_v36  ;;  %v3731_v63 = vpack.c.bf16 %v3710_v3, %v3710_v3  ;;  %v9510_v12 = vrot.slane %v4244_v21, 4  ;;  %v7217_v20 = vld [vmem:[#allocation10 + $0x90] sm:$0xff]  ;;  %5023 = vmatpush.bf16.msrb.mxu1 %v7199_v14  ;;  %v7196_v26 = vld [vmem:[#allocation4 + $0xac] sm:$0xf] }
 0x393   : > { %v3822_v52 = vshrl.u32 %v3732_v27, 16  ;;  %v4061_v18 = vshrl.u32 %v3795_v45, 16  ;;  %v4064_v8 = vshll.u32 %v3795_v45, 16  ;;  %v3825_v56 = vshll.u32 %v3732_v27, 16  ;;  %v7197_v40 = vld [vmem:[#allocation4 + $0xb0] sm:$0xf0] }
 0x394   : > { %v4070_v13 = vshll.u32 %v3796_v38, 16  ;;  %v4074_v33 = vshrl.u32 %v3796_v38, 16  ;;  %v3817_v43 = vshrl.u32 %v3731_v63, 16  ;;  %v4247_v5 = vor.u32 %v9510_v12, %v9490_v47  ;;  %v7216_v36 = vld [vmem:[#allocation10 + $0x88] sm:$0xff]  ;;  %v6621_v38 = vld [vmem:[#allocation4 + $0xb0] sm:$0xf] }
 0x395   : > { %v3824_v9 = vrot.slane %v3822_v52, 7  ;;  %v4063_v17 = vrot.slane %v4061_v18, 4  ;;  %5118 = vmatpush.bf16.msra.mxu3 %v7218_v59  ;;  %v4066_v35 = vrot.slane %v4064_v8, 5  ;;  %v3836_v4 = vor.u32 %v3834_v25, %v9280_v32  ;;  %v7198_v21 = vld [vmem:[#allocation4 + $0xb8] sm:$0xf0]  ;;  %v7215_v63 = vld [vmem:[#allocation10 + $0x80] sm:$0xff] }
 0x396   : > { %4737 = vmatmul.bf16.gmra.mxu1 %v9464_v24  ;;  %v6538_v55 = vrot.slane %v3817_v43, 11  ;;  %v4072_v28 = vrot.slane %v4070_v13, 5  ;;  %v4076_v15 = vrot.slane %v4074_v33, 4  ;;  %v9523_v27 = vor.u32 %v7197_v40, %v6613_v42  ;;  %v7297_v18 = vld [vmem:[#allocation10 + $0x238] sm:$0xff]  ;;  %v6625_v13 = vld [vmem:[#allocation4 + $0xc0] sm:$0xf] }
 0x397   : > { %4786 = vmatmul.bf16.gmra.mxu2 %v9466_v39  ;;  %v3827_v0 = vor.u32 %v3825_v56, %v3824_v9  ;;  %v3829_v19 = vrot.slane %v3824_v9, 4  ;;  %v4067_v41 = vor.u32 %v4066_v35, %v4063_v17  ;;  %v9525_v45 = vor.u32 %v7196_v26, %v6615_v48  ;;  %v7289_v8 = vld [vmem:[#allocation10 + $0x1f8] sm:$0xff]  ;;  %v7223_v33 = vld [vmem:[#allocation4 + $0xc4] sm:$0xf]  ;;  %v6627_v59 = vld [vmem:[#allocation4 + $0xcc] sm:$0xf0] }
 0x398   : > { %v4077_v23 = vor.u32 %v4076_v15, %v4072_v28  ;;  %v9532_v52 = vor.u32 %v7198_v21, %v6621_v38  ;;  %5614 = vmatpush.bf16.msra.mxu2 %v7297_v18  ;;  %5565 = vmatpush.bf16.msra.mxu1 %v7289_v8  ;;  %v6630_v9 = vor.u32 %v7223_v33, %v6627_v59  ;;  %v6633_v56 = vld [vmem:[#allocation4 + $0xc8] sm:$0xf]  ;;  %v7296_v17 = vld [vmem:[#allocation10 + $0x230] sm:$0xff]  ;;  %v7267_v58 = vld [vmem:[#allocation4 + $0xb8] sm:$0xf0] }
 0x399   : > { %v3828_v11 = vsel %vm8242_vm8, %v6538_v55, %v3827_v0  ;;  %v3837_v29 = vsel %vm8242_vm8, %v3829_v19, %v3836_v4  ;;  %5119 = vmatpush.bf16.msra.mxu3 %v7217_v20  ;;  %v4068_v10 = vrot.slane %v4067_v41, 4  ;;  %v7225_v14 = vld [vmem:[#allocation4 + $0xd0] sm:$0xf0]  ;;  %v7175_v19 = vld [vmem:[#allocation4 + $0x4] sm:$0xf]  ;;  %v7295_v26 = vld [vmem:[#allocation10 + $0x228] sm:$0xff] }
 0x39a   : > { %4835 = vmatmul.bf16.gmra.mxu3 %v9473_v60  ;;  %4020 = vst [vmem:[#allocation4] sm:$0xf] %v3828_v11  ;;  %v4078_v32 = vrot.slane %v4077_v23, 4  ;;  %v6634_v25 = vor.u32 %v7225_v14, %v6633_v56  ;;  %v7288_v20 = vld [vmem:[#allocation10 + $0x1f0] sm:$0xff]  ;;  %v7287_v23 = vld [vmem:[#allocation10 + $0x1e8] sm:$0xff] }
 0x39b   : > { %4021 = vst [vmem:[#allocation4 + $0xc] sm:$0xf] %v3837_v29  ;;  %v4073_v3 = vsel %vm8514_vm4, %v4068_v10, %v4072_v28  ;;  %v6735_v35 = vld [vmem:[#allocation4 + $0xc] sm:$0xf0] }
 0x39c   : > { %v4083_v46 = vsel %vm8514_vm4, %v4078_v32, %v9284_v61  ;;  %4284 = vst [vmem:[#allocation4 + $0x8] sm:$0xf] %v4073_v3  ;;  %v7224_v61 = vld [vmem:[#allocation4 + $0xc8] sm:$0xf0]  ;;  %5615 = vmatpush.bf16.msra.mxu2 %v7296_v17  ;;  %5566 = vmatpush.bf16.msra.mxu1 %v7288_v20  ;;  %v6738_v28 = vor.u32 %v7175_v19, %v6735_v35  ;;  %v7285_v17 = vld [vmem:[#allocation10 + $0x1d8] sm:$0xff] }
 0x39d   : > { %5120 = vmatpush.bf16.msra.mxu3 %v7216_v36  ;;  %4285 = vst [vmem:[#allocation4 + $0x14] sm:$0xf] %v4083_v46  ;;  %v6626_v43 = vor.u32 %v7224_v61, %v6625_v13  ;;  %v7286_v13 = vld [vmem:[#allocation10 + $0x1e0] sm:$0xff] }
 0x3a0   : > { %5616 = vmatpush.bf16.msra.mxu2 %v7295_v26  ;;  %5567 = vmatpush.bf16.msra.mxu1 %v7287_v23 }
 0x3a1   : > { %5121 = vmatpush.bf16.msra.mxu3 %v7215_v63  ;;  %v6733_v55 = vld [vmem:[#allocation4] sm:$0xf] }
 0x3a2   : > { %v7176_v0 = vld [vmem:[#allocation4 + $0x8] sm:$0xf0]  ;;  %v7294_v63 = vld [vmem:[#allocation10 + $0x220] sm:$0xff] }
 0x3a3   : > { %v6734_v4 = vor.u32 %v7176_v0, %v6733_v55  ;;  %v6741_v42 = vld [vmem:[#allocation4 + $0x8] sm:$0xf] }
 0x3a4   : > { %v7177_v11 = vld [vmem:[#allocation4 + $0x10] sm:$0xf0]  ;;  %5617 = vmatpush.bf16.msra.mxu2 %v7294_v63  ;;  %5568 = vmatpush.bf16.msra.mxu1 %v7286_v13  ;;  %v7279_v63 = vld [vmem:[#allocation10 + $0x1a8] sm:$0xff]  ;;  %v7278_v13 = vld [vmem:[#allocation10 + $0x1a0] sm:$0xff] }
 0x3a5   : > { %v6742_v41 = vor.u32 %v7177_v11, %v6741_v42  ;;  %v7284_v42 = vld [vmem:[#allocation10 + $0x1d0] sm:$0xff] }
 0x3a6   : > { %4742 = vmatmul.bf16.gmra.mxu1 %v9497_v7 }
 0x3a7   : > { %4791 = vmatmul.bf16.gmra.mxu2 %v9499_v2 }
 0x3a8   : > { %5569 = vmatpush.bf16.msra.mxu1 %v7285_v17  ;;  %v7275_v17 = vld [vmem:[#allocation10 + $0x188] sm:$0xff] }
 0x3aa   : > { %4840 = vmatmul.bf16.gmra.mxu3 %v9507_v57 }
 0x3ac   : > { %5570 = vmatpush.bf16.msra.mxu1 %v7284_v42 }
 0x3b6   : > { %4747 = vmatmul.bf16.gmra.mxu1 %v9523_v27 }
 0x3b7   : > { %4796 = vmatmul.bf16.gmra.mxu2 %v9525_v45 }
 0x3ba   : > { %4845 = vmatmul.bf16.gmra.mxu3 %v9532_v52 }
 0x3c6   : > { %4752 = vmatmul.bf16.gmra.mxu1 %v6626_v43 }
 0x3c7   : > { %4801 = vmatmul.bf16.gmra.mxu2 %v6630_v9 }
 0x3ca   : > { %4850 = vmatmul.bf16.gmra.mxu3 %v6634_v25 }
 0x3d3   : > { %v4718_v15 = vpop.f32.mrf.mxu1 }
 0x3d6   : > { %5024 = vmatmul.bf16.vlgmr.msrb.gmra.mxu1 %v6734_v4 }
 0x3d7   : > { %5073 = vmatmul.bf16.vlgmr.msrb.gmra.mxu2 %v6738_v28 }
 0x3da   : > { %v4767_v48 = vpop.f32.mrf.mxu2  ;;  %5122 = vmatmul.bf16.vlgmr.msra.gmra.mxu3 %v6742_v41 }
 0x3db   : > { %v4768_v29 = vadd.f32 %v4767_v48, %v4718_v15  ;;  %v4720_v40 = vpop.f32.mrf.mxu1 }
 0x3dd   : > { %v4816_v36 = vpop.f32.mrf.mxu3 }
 0x3de   : > { %v9535_v10 = vadd.f32 %v4816_v36, %v4768_v29 }
 0x3e2   : > { %v4769_v32 = vpop.f32.mrf.mxu2 }
 0x3e3   : > { %v4770_v3 = vadd.f32 %v4769_v32, %v4720_v40  ;;  %v4723_v38 = vpop.f32.mrf.mxu1  ;;  %v7281_v40 = vld [vmem:[#allocation10 + $0x1b8] sm:$0xff] }
 0x3e4   : > { %5516 = vmatpush.bf16.msra.mxu0 %v7281_v40  ;;  %v7254_v40 = vld [vmem:[#allocation4 + $0x50] sm:$0xf0] }
 0x3e5   : > { %v4818_v46 = vpop.f32.mrf.mxu3 }
 0x3e6   : > { %v9537_v21 = vadd.f32 %v4818_v46, %v4770_v3  ;;  %5029 = vmatmul.bf16.gmra.mxu1 %v9325_v37 }
 0x3e7   : > { %5078 = vmatmul.bf16.gmra.mxu2 %v9289_v16  ;;  %v7293_v16 = vld [vmem:[#allocation10 + $0x218] sm:$0xff] }
 0x3e8   : > { %5618 = vmatpush.bf16.msra.mxu2 %v7293_v16 }
 0x3ea   : > { %v4772_v18 = vpop.f32.mrf.mxu2  ;;  %5127 = vmatmul.bf16.gmra.mxu3 %v9337_v1 }
 0x3eb   : > { %v4773_v8 = vadd.f32 %v4772_v18, %v4723_v38  ;;  %v4725_v61 = vpop.f32.mrf.mxu1  ;;  %v7283_v38 = vld [vmem:[#allocation10 + $0x1c8] sm:$0xff] }
 0x3ec   : > { %5571 = vmatpush.bf16.msra.mxu1 %v7283_v38 }
 0x3ed   : > { %v4821_v33 = vpop.f32.mrf.mxu3 }
 0x3ee   : > { %v9542_v59 = vadd.f32 %v4821_v33, %v4773_v8  ;;  %v7277_v33 = vld [vmem:[#allocation10 + $0x198] sm:$0xff] }
 0x3f2   : > { %v4774_v43 = vpop.f32.mrf.mxu2 }
 0x3f3   : > { %v4775_v9 = vadd.f32 %v4774_v43, %v4725_v61  ;;  %v4728_v56 = vpop.f32.mrf.mxu1 }
 0x3f5   : > { %v4823_v14 = vpop.f32.mrf.mxu3 }
 0x3f6   : > { %v9544_v25 = vadd.f32 %v4823_v14, %v4775_v9  ;;  %5034 = vmatmul.bf16.gmra.mxu1 %v9354_v54 }
 0x3f7   : > { %5083 = vmatmul.bf16.gmra.mxu2 %v9329_v6  ;;  %v7292_v6 = vld [vmem:[#allocation10 + $0x210] sm:$0xff] }
 0x3f8   : > { %5619 = vmatpush.bf16.msra.mxu2 %v7292_v6 }
 0x3fa   : > { %v4777_v37 = vpop.f32.mrf.mxu2  ;;  %5132 = vmatmul.bf16.gmra.mxu3 %v9374_v49 }
 0x3fb   : > { %v4778_v1 = vadd.f32 %v4777_v37, %v4728_v56  ;;  %v4730_v20 = vpop.f32.mrf.mxu1  ;;  %v7276_v56 = vld [vmem:[#allocation10 + $0x190] sm:$0xff]  ;;  %v7282_v37 = vld [vmem:[#allocation10 + $0x1c0] sm:$0xff] }
 0x3fc   : > { %5572 = vmatpush.bf16.msra.mxu1 %v7282_v37 }
 0x3fd   : > { %v4826_v55 = vpop.f32.mrf.mxu3 }
 0x3fe   : > { %v9549_v0 = vadd.f32 %v4826_v55, %v4778_v1 }
 0x402   : > { %v4779_v19 = vpop.f32.mrf.mxu2 }
 0x403   : > { %v4780_v35 = vadd.f32 %v4779_v19, %v4730_v20  ;;  %v4733_v4 = vpop.f32.mrf.mxu1  ;;  %v7274_v19 = vld [vmem:[#allocation10 + $0x180] sm:$0xff] }
 0x405   : > { %v4828_v28 = vpop.f32.mrf.mxu3 }
 0x406   : > { %v9551_v15 = vadd.f32 %v4828_v28, %v4780_v35  ;;  %5039 = vmatmul.bf16.gmra.mxu1 %v9397_v22  ;;  %v7251_v35 = vld [vmem:[#allocation4 + $0x38] sm:$0xf0] }
 0x407   : > { %5088 = vmatmul.bf16.gmra.mxu2 %v9392_v31  ;;  %v7291_v31 = vld [vmem:[#allocation10 + $0x208] sm:$0xff] }
 0x408   : > { %5620 = vmatpush.bf16.msra.mxu2 %v7291_v31 }
 0x40a   : > { %v4782_v54 = vpop.f32.mrf.mxu2  ;;  %5137 = vmatmul.bf16.gmra.mxu3 %v9410_v51  ;;  %v7280_v51 = vld [vmem:[#allocation10 + $0x1b0] sm:$0xff] }
 0x40b   : > { %v4783_v49 = vadd.f32 %v4782_v54, %v4733_v4  ;;  %v4735_v11 = vpop.f32.mrf.mxu1  ;;  %5517 = vmatpush.bf16.msra.mxu0 %v7280_v51 }
 0x40d   : > { %v4831_v41 = vpop.f32.mrf.mxu3 }
 0x40e   : > { %v9556_v26 = vadd.f32 %v4831_v41, %v4783_v49 }
 0x40f   : > { %5518 = vmatpush.bf16.msra.mxu0 %v7279_v63  ;;  %v7250_v63 = vld [vmem:[#allocation4 + $0x34] sm:$0xf] }
 0x412   : > { %v4784_v48 = vpop.f32.mrf.mxu2 }
 0x413   : > { %v4785_v29 = vadd.f32 %v4784_v48, %v4735_v11  ;;  %v4738_v23 = vpop.f32.mrf.mxu1  ;;  %5519 = vmatpush.bf16.msra.mxu0 %v7278_v13  ;;  %v6849_v13 = vld [vmem:[#allocation4 + $0x38] sm:$0xf] }
 0x415   : > { %v4833_v36 = vpop.f32.mrf.mxu3 }
 0x416   : > { %v9558_v22 = vadd.f32 %v4833_v36, %v4785_v29  ;;  %5044 = vmatmul.bf16.gmra.mxu1 %v9430_v44 }
 0x417   : > { %5093 = vmatmul.bf16.gmra.mxu2 %v9432_v50  ;;  %5520 = vmatpush.bf16.msra.mxu0 %v7277_v33  ;;  %v7257_v33 = vld [vmem:[#allocation4 + $0x68] sm:$0xf0] }
 0x41a   : > { %v4787_v32 = vpop.f32.mrf.mxu2  ;;  %5142 = vmatmul.bf16.gmra.mxu3 %v9441_v62  ;;  %v7290_v62 = vld [vmem:[#allocation10 + $0x200] sm:$0xff] }
 0x41b   : > { %v4788_v3 = vadd.f32 %v4787_v32, %v4738_v23  ;;  %v4740_v46 = vpop.f32.mrf.mxu1  ;;  %5621 = vmatpush.bf16.msra.mxu2 %v7290_v62  ;;  %5521 = vmatpush.bf16.msra.mxu0 %v7276_v56  ;;  %v6853_v23 = vld [vmem:[#allocation4 + $0x48] sm:$0xf] }
 0x41c   : > { %v6854_v31 = vor.u32 %v7254_v40, %v6853_v23 }
 0x41d   : > { %v4836_v18 = vpop.f32.mrf.mxu3 }
 0x41e   : > { %v9563_v8 = vadd.f32 %v4836_v18, %v4788_v3  ;;  %v6843_v18 = vld [vmem:[#allocation4 + $0x3c] sm:$0xf0] }
 0x41f   : > { %5522 = vmatpush.bf16.msra.mxu0 %v7275_v17  ;;  %v6846_v62 = vor.u32 %v7250_v63, %v6843_v18 }
 0x422   : > { %v4789_v44 = vpop.f32.mrf.mxu2 }
 0x423   : > { %v4790_v50 = vadd.f32 %v4789_v44, %v4740_v46  ;;  %v4743_v61 = vpop.f32.mrf.mxu1  ;;  %5523 = vmatpush.bf16.msra.mxu0 %v7274_v19  ;;  %v7252_v44 = vld [vmem:[#allocation4 + $0x40] sm:$0xf0]  ;;  %v7253_v19 = vld [vmem:[#allocation4 + $0x4c] sm:$0xf] }
 0x425   : > { %v4838_v43 = vpop.f32.mrf.mxu3 }
 0x426   : > { %v9565_v9 = vadd.f32 %v4838_v43, %v4790_v50  ;;  %5049 = vmatmul.bf16.gmra.mxu1 %v9464_v24 }
 0x427   : > { %5098 = vmatmul.bf16.gmra.mxu2 %v9466_v39  ;;  %v6841_v39 = vld [vmem:[#allocation4 + $0x30] sm:$0xf] }
 0x428   : > { %v6842_v28 = vor.u32 %v7251_v35, %v6841_v39  ;;  %v6861_v39 = vld [vmem:[#allocation4 + $0x50] sm:$0xf]  ;;  %v7255_v35 = vld [vmem:[#allocation4 + $0x58] sm:$0xf0] }
 0x42a   : > { %v4792_v14 = vpop.f32.mrf.mxu2  ;;  %5147 = vmatmul.bf16.gmra.mxu3 %v9473_v60  ;;  %5524 = vmatmul.bf16.vlgmr.msra.gmra.mxu0 %v6842_v28  ;;  %v6877_v28 = vld [vmem:[#allocation4 + $0x78] sm:$0xf] }
 0x42b   : > { %v4793_v16 = vadd.f32 %v4792_v14, %v4743_v61  ;;  %v4745_v1 = vpop.f32.mrf.mxu1  ;;  %v6865_v61 = vld [vmem:[#allocation4 + $0x60] sm:$0xf] }
 0x42c   : > { %v6866_v56 = vor.u32 %v7257_v33, %v6865_v61 }
 0x42d   : > { %v4841_v20 = vpop.f32.mrf.mxu3 }
 0x42e   : > { %v9570_v55 = vadd.f32 %v4841_v20, %v4793_v16 }
 0x432   : > { %v4794_v24 = vpop.f32.mrf.mxu2 }
 0x433   : > { %v4795_v4 = vadd.f32 %v4794_v24, %v4745_v1  ;;  %v4748_v6 = vpop.f32.mrf.mxu1  ;;  %v6855_v24 = vld [vmem:[#allocation4 + $0x54] sm:$0xf0] }
 0x435   : > { %v4843_v54 = vpop.f32.mrf.mxu3 }
 0x436   : > { %v9572_v60 = vadd.f32 %v4843_v54, %v4795_v4  ;;  %5054 = vmatmul.bf16.gmra.mxu1 %v9497_v7  ;;  %v6858_v54 = vor.u32 %v7253_v19, %v6855_v24 }
 0x437   : > { %5103 = vmatmul.bf16.gmra.mxu2 %v9499_v2 }
 0x43a   : > { %v4797_v49 = vpop.f32.mrf.mxu2  ;;  %5152 = vmatmul.bf16.gmra.mxu3 %v9507_v57  ;;  %5529 = vmatmul.bf16.gmra.mxu0 %v6854_v31  ;;  %v6867_v31 = vld [vmem:[#allocation4 + $0x6c] sm:$0xf0] }
 0x43b   : > { %v4798_v42 = vadd.f32 %v4797_v49, %v4748_v6  ;;  %v4750_v11 = vpop.f32.mrf.mxu1  ;;  %v7260_v6 = vld [vmem:[#allocation4 + $0x80] sm:$0xf0]  ;;  %v6862_v49 = vor.u32 %v7255_v35, %v6861_v39 }
 0x43d   : > { %v4846_v41 = vpop.f32.mrf.mxu3 }
 0x43e   : > { %v9577_v48 = vadd.f32 %v4846_v41, %v4798_v42  ;;  %v6878_v42 = vor.u32 %v7260_v6, %v6877_v28  ;;  %v3665_v28 = vld [vmem:[#allocation3 + $0x4c] sm:$0xf]  ;;  %v3666_v6 = vld [vmem:[#allocation3 + $0x50] sm:$0xf] }
 0x43f   : > { %4058 = vst [vmem:[#allocation4 + $0xdc] sm:$0xf] %v3665_v28 }
 0x440   : > { %4059 = vst [vmem:[#allocation4 + $0xe8] sm:$0xf] %v3666_v6 }
 0x442   : > { %v4799_v29 = vpop.f32.mrf.mxu2 }
 0x443   : > { %v4800_v36 = vadd.f32 %v4799_v29, %v4750_v11  ;;  %v4753_v51 = vpop.f32.mrf.mxu1 }
 0x445   : > { %v4848_v32 = vpop.f32.mrf.mxu3 }
 0x446   : > { %v9579_v3 = vadd.f32 %v4848_v32, %v4800_v36  ;;  %5059 = vmatmul.bf16.gmra.mxu1 %v9523_v27  ;;  %v6850_v27 = vor.u32 %v7252_v44, %v6849_v13  ;;  %v7256_v36 = vld [vmem:[#allocation4 + $0x64] sm:$0xf]  ;;  %v7258_v32 = vld [vmem:[#allocation4 + $0x70] sm:$0xf0] }
 0x447   : > { %5108 = vmatmul.bf16.gmra.mxu2 %v9525_v45  ;;  %v6870_v63 = vor.u32 %v7256_v36, %v6867_v31 }
 0x44a   : > { %v4802_v7 = vpop.f32.mrf.mxu2  ;;  %5157 = vmatmul.bf16.gmra.mxu3 %v9532_v52  ;;  %5534 = vmatmul.bf16.gmra.mxu0 %v6866_v56  ;;  %v7261_v56 = vld [vmem:[#allocation4 + $0x88] sm:$0xf0] }
 0x44b   : > { %v4803_v2 = vadd.f32 %v4802_v7, %v4753_v51  ;;  %v4755_v57 = vpop.f32.mrf.mxu1  ;;  %v6873_v51 = vld [vmem:[#allocation4 + $0x68] sm:$0xf] }
 0x44d   : > { %v4851_v38 = vpop.f32.mrf.mxu3 }
 0x44e   : > { %v9584_v46 = vadd.f32 %v4851_v38, %v4803_v2  ;;  %v6889_v2 = vld [vmem:[#allocation4 + $0x90] sm:$0xf] }
 0x452   : > { %v4804_v50 = vpop.f32.mrf.mxu2 }
 0x453   : > { %v4805_v43 = vadd.f32 %v4804_v50, %v4755_v57  ;;  %v5025_v45 = vpop.f32.mrf.mxu1  ;;  %v7263_v57 = vld [vmem:[#allocation4 + $0x98] sm:$0xf0] }
 0x454   : > { %v5026_v14 = vadd.f32 %v5025_v45, %v9535_v10  ;;  %v6890_v18 = vor.u32 %v7263_v57, %v6889_v2  ;;  %v10014_v57 = vld [vmem:[#allocation58_spill] sm:$0xff] }
 0x455   : > { %v4853_v52 = vpop.f32.mrf.mxu3 }
 0x456   : > { %v9587_v16 = vadd.f32 %v4853_v52, %v4805_v43  ;;  %5573 = vmatmul.bf16.vlgmr.msra.gmra.mxu1 %v6846_v62  ;;  %v7259_v43 = vld [vmem:[#allocation4 + $0x7c] sm:$0xf]  ;;  %v6879_v62 = vld [vmem:[#allocation4 + $0x84] sm:$0xf0]  ;;  %v7266_v52 = vld [vmem:[#allocation4 + $0xb0] sm:$0xf0] }
 0x457   : > { %5622 = vmatmul.bf16.vlgmr.msra.gmra.mxu2 %v6850_v27  ;;  %v6885_v27 = vld [vmem:[#allocation4 + $0x80] sm:$0xf] }
 0x45a   : > { %v5074_v37 = vpop.f32.mrf.mxu2  ;;  %5539 = vmatmul.bf16.gmra.mxu0 %v6878_v42  ;;  %v7262_v42 = vld [vmem:[#allocation4 + $0x94] sm:$0xf] }
 0x45b   : > { %v9589_v1 = vadd.f32 %v5074_v37, %v5026_v14  ;;  %v5027_v17 = vpop.f32.mrf.mxu1  ;;  %v6901_v14 = vld [vmem:[#allocation4 + $0xa8] sm:$0xf] }
 0x45c   : > { %v5028_v20 = vadd.f32 %v5027_v17, %v9537_v21  ;;  %v6882_v17 = vor.u32 %v7259_v43, %v6879_v62 }
 0x462   : > { %v5076_v4 = vpop.f32.mrf.mxu2 }
 0x463   : > { %v9592_v10 = vadd.f32 %v5076_v4, %v5028_v20  ;;  %v5030_v11 = vpop.f32.mrf.mxu1  ;;  %v6902_v20 = vor.u32 %v7266_v52, %v6901_v14 }
 0x464   : > { %v5031_v41 = vadd.f32 %v5030_v11, %v9542_v59  ;;  %v6874_v59 = vor.u32 %v7258_v32, %v6873_v51  ;;  %v3686_v11 = vld [vmem:[#allocation3 + $0x50] sm:$0xf]  ;;  %v6913_v32 = vld [vmem:[#allocation4 + $0xc0] sm:$0xf] }
 0x465   : > { %v3771_v31 = vunpack.c.l.bf16 %v3686_v11 }
 0x466   : > { %5578 = vmatmul.bf16.gmra.mxu1 %v6858_v54  ;;  %v3707_v54 = vunpack.c.l.bf16 %v3665_v28 }
 0x467   : > { %5627 = vmatmul.bf16.gmra.mxu2 %v6862_v49  ;;  %v3708_v49 = vunpack.c.l.bf16 %v3666_v6 }
 0x469   : > { %v3730_v36 = vmul.f32 %v3708_v49, %v8158_v30 }
 0x46a   : > { %v5079_v29 = vpop.f32.mrf.mxu2  ;;  %5544 = vmatmul.bf16.gmra.mxu0 %v6890_v18 }
 0x46b   : > { %v9595_v21 = vadd.f32 %v5079_v29, %v5031_v41  ;;  %v5032_v23 = vpop.f32.mrf.mxu1  ;;  %v6891_v41 = vld [vmem:[#allocation4 + $0x9c] sm:$0xf0]  ;;  %v6897_v29 = vld [vmem:[#allocation4 + $0x98] sm:$0xf]  ;;  %v3751_v2 = vpack.c.bf16 %v3730_v36, %v3730_v36 }
 0x46c   : > { %v5033_v40 = vadd.f32 %v5032_v23, %v9544_v25  ;;  %v10013_v23 = vld [vmem:[#allocation31_spill] sm:$0xff]  ;;  %v6894_v18 = vor.u32 %v7262_v42, %v6891_v41  ;;  %v4248_v41 = vrot.slane %v4247_v5, 4 }
 0x46d   : > { %v3993_v43 = vshrl.u32 %v3751_v2, 16 }
 0x472   : > { %v5081_v7 = vpop.f32.mrf.mxu2 }
 0x473   : > { %v9598_v38 = vadd.f32 %v5081_v7, %v5033_v40  ;;  %v5035_v13 = vpop.f32.mrf.mxu1  ;;  %v3729_v40 = vmul.f32 %v3707_v54, %v10013_v23  ;;  %v7269_v7 = vld [vmem:[#allocation4 + $0xc8] sm:$0xf0] }
 0x474   : > { %v5036_v44 = vadd.f32 %v5035_v13, %v9549_v0  ;;  %v6886_v0 = vor.u32 %v7261_v56, %v6885_v27  ;;  %v10015_v56 = vld [vmem:[#allocation57_spill] sm:$0xff] }
 0x476   : > { %5583 = vmatmul.bf16.gmra.mxu1 %v6870_v63  ;;  %v3793_v63 = vmul.f32 %v3771_v31, %v10014_v57  ;;  %v7265_v31 = vld [vmem:[#allocation4 + $0xac] sm:$0xf] }
 0x477   : > { %5632 = vmatmul.bf16.gmra.mxu2 %v6874_v59 }
 0x478   : > { %v3814_v27 = vpack.c.bf16 %v3793_v63, %v3793_v63 }
 0x47a   : > { %v5084_v50 = vpop.f32.mrf.mxu2  ;;  %5549 = vmatmul.bf16.gmra.mxu0 %v6902_v20  ;;  %v3996_v20 = vshll.u32 %v3751_v2, 16  ;;  %v4254_v6 = vshrl.u32 %v3814_v27, 16 }
 0x47b   : > { %v9601_v25 = vadd.f32 %v5084_v50, %v5036_v44  ;;  %v5037_v61 = vpop.f32.mrf.mxu1  ;;  %v6914_v44 = vor.u32 %v7269_v7, %v6913_v32  ;;  %v3687_v50 = vld [vmem:[#allocation3 + $0x54] sm:$0x1]  ;;  %v6909_v32 = vld [vmem:[#allocation4 + $0xb0] sm:$0xf] }
 0x47c   : > { %v5038_v33 = vadd.f32 %v5037_v61, %v9551_v15  ;;  %v3772_v62 = vunpack.c.l.bf16 %v3687_v50 }
 0x482   : > { %v5086_v45 = vpop.f32.mrf.mxu2 }
 0x483   : > { %v9604_v37 = vadd.f32 %v5086_v45, %v5038_v33  ;;  %v5040_v19 = vpop.f32.mrf.mxu1  ;;  %v3794_v45 = vmul.f32 %v3772_v62, %v10015_v56  ;;  %v6921_v62 = vld [vmem:[#allocation4 + $0xc8] sm:$0xf] }
 0x484   : > { %v5041_v24 = vadd.f32 %v5040_v19, %v9556_v26  ;;  %v7264_v26 = vld [vmem:[#allocation4 + $0xa0] sm:$0xf0] }
 0x485   : > { %v6898_v13 = vor.u32 %v7264_v26, %v6897_v29  ;;  %v4256_v29 = vrot.slane %v4254_v6, 4 }
 0x486   : > { %5588 = vmatmul.bf16.gmra.mxu1 %v6882_v17  ;;  %v3982_v17 = vrot.slane %v9477_v53, 4 }
 0x487   : > { %5637 = vmatmul.bf16.gmra.mxu2 %v6886_v0  ;;  %v3995_v0 = vrot.slane %v3993_v43, 7  ;;  %v6915_v43 = vld [vmem:[#allocation4 + $0xcc] sm:$0xf0] }
 0x489   : > { %v3998_v28 = vor.u32 %v3996_v20, %v3995_v0 }
 0x48a   : > { %v5089_v39 = vpop.f32.mrf.mxu2  ;;  %5554 = vmatmul.bf16.gmra.mxu0 %v6914_v44 }
 0x48b   : > { %v9607_v15 = vadd.f32 %v5089_v39, %v5041_v24  ;;  %v5042_v35 = vpop.f32.mrf.mxu1  ;;  %v3815_v39 = vpack.c.bf16 %v3794_v45, %v3794_v45 }
 0x48c   : > { %v5043_v4 = vadd.f32 %v5042_v35, %v9558_v22  ;;  %v3750_v22 = vpack.c.bf16 %v3729_v40, %v3729_v40  ;;  %v4250_v35 = vshll.u32 %v3814_v27, 16 }
 0x48d   : > { %v4260_v42 = vshll.u32 %v3815_v39, 16  ;;  %v7271_v39 = vld [vmem:[#allocation4 + $0xdc] sm:$0xf] }
 0x48e   : > { %v3984_v33 = vshrl.u32 %v3750_v22, 16  ;;  %v3987_v52 = vshll.u32 %v3750_v22, 16  ;;  %v4252_v49 = vrot.slane %v4250_v35, 5  ;;  %v6927_v35 = vld [vmem:[#allocation4 + $0xe4] sm:$0xf0] }
 0x48f   : > { %v4262_v36 = vrot.slane %v4260_v42, 5  ;;  %v6930_v42 = vor.u32 %v7271_v39, %v6927_v35 }
 0x490   : > { %v3986_v14 = vrot.slane %v3984_v33, 7  ;;  %v4253_v23 = vsel %vm8514_vm4, %v4248_v41, %v4252_v49  ;;  %v4257_v40 = vor.u32 %v4256_v29, %v4252_v49  ;;  %v7268_v33 = vld [vmem:[#allocation4 + $0xc4] sm:$0xf] }
 0x491   : > { %4302 = vst [vmem:[#allocation4 + $0xe0] sm:$0xf] %v4253_v23  ;;  %v6918_v45 = vor.u32 %v7268_v33, %v6915_v43 }
 0x492   : > { %v5091_v51 = vpop.f32.mrf.mxu2  ;;  %v3989_v19 = vor.u32 %v3987_v52, %v3986_v14  ;;  %v3991_v24 = vrot.slane %v3986_v14, 4  ;;  %v4258_v7 = vrot.slane %v4257_v40, 4 }
 0x493   : > { %v9613_v59 = vadd.f32 %v5091_v51, %v5043_v4  ;;  %v5045_v61 = vpop.f32.mrf.mxu1  ;;  %v6903_v51 = vld [vmem:[#allocation4 + $0xb4] sm:$0xf0] }
 0x494   : > { %v5046_v30 = vadd.f32 %v5045_v61, %v9563_v8  ;;  %v3990_v54 = vsel %vm8242_vm8, %v3982_v17, %v3989_v19  ;;  %v3999_v53 = vsel %vm8242_vm8, %v3991_v24, %v3998_v28  ;;  %v4263_v47 = vsel %vm8514_vm4, %v4258_v7, %v4262_v36  ;;  %v5123_v17 = vpop.f32.mrf.mxu3 }
 0x495   : > { %4038 = vst [vmem:[#allocation4 + $0xd8] sm:$0xf] %v3990_v54  ;;  %v6906_v5 = vor.u32 %v7265_v31, %v6903_v51 }
 0x496   : > { %5593 = vmatmul.bf16.gmra.mxu1 %v6894_v18  ;;  %4039 = vst [vmem:[#allocation4 + $0xe4] sm:$0xf] %v3999_v53 }
 0x497   : > { %5642 = vmatmul.bf16.gmra.mxu2 %v6898_v13  ;;  %4303 = vst [vmem:[#allocation4 + $0xec] sm:$0xf] %v4263_v47 }
 0x49a   : > { %v5094_v4 = vpop.f32.mrf.mxu2 }
 0x49b   : > { %v9618_v8 = vadd.f32 %v5094_v4, %v5046_v30  ;;  %v5047_v11 = vpop.f32.mrf.mxu1  ;;  %v7270_v30 = vld [vmem:[#allocation4 + $0xd0] sm:$0xf0]  ;;  %v6933_v4 = vld [vmem:[#allocation4 + $0xe0] sm:$0xf] }
 0x49c   : > { %v5048_v26 = vadd.f32 %v5047_v11, %v9565_v9  ;;  %v6910_v9 = vor.u32 %v7267_v58, %v6909_v32  ;;  %v6925_v2 = vld [vmem:[#allocation4 + $0xd8] sm:$0xf]  ;;  %v6922_v14 = vor.u32 %v7270_v30, %v6921_v62  ;;  %v5125_v54 = vpop.f32.mrf.mxu3 }
 0x49d   : > { %v7272_v63 = vld [vmem:[#allocation4 + $0xe0] sm:$0xf0] }
 0x49e   : > { %v6926_v13 = vor.u32 %v7272_v63, %v6925_v2  ;;  %v7273_v28 = vld [vmem:[#allocation4 + $0xe8] sm:$0xf0] }
 0x4a0   : > { %5559 = vmatmul.bf16.gmra.mxu0 %v6926_v13 }
 0x4a2   : > { %v5096_v22 = vpop.f32.mrf.mxu2 }
 0x4a3   : > { %v9632_v12 = vadd.f32 %v5096_v22, %v5048_v26  ;;  %v5050_v57 = vpop.f32.mrf.mxu1 }
 0x4a4   : > { %v5051_v18 = vadd.f32 %v5050_v57, %v9570_v55  ;;  %v5128_v23 = vpop.f32.mrf.mxu3  ;;  %v9656_v57 = vld [vmem:[%s10016_s20] ss:$0 sm:$0xff]  ;;  %s7801_s20 = scalar_lea.hbm %s7800_s14, 64 }
 0x4a5   : > { %p7802_p2 = scmp.ne.s32.totalorder %s7800_s14, %s7801_s20 }
 0x4a6   : > { %5598 = vmatmul.bf16.gmra.mxu1 %v6906_v5 }
 0x4a7   : > { %5647 = vmatmul.bf16.gmra.mxu2 %v6910_v9  ;;  %v5525_v20 = vpop.f32.mrf.mxu0  ;;  %p7803_p3 = pnand %p7802_p2, %p8036_p6 }
 0x4a9   : > { %p7804_p5 = pneg %p7803_p3 }
 0x4aa   : > { %v5099_v44 = vpop.f32.mrf.mxu2 }
 0x4ab   : > { %v9635_v50 = vadd.f32 %v5099_v44, %v5051_v18  ;;  %v5052_v61 = vpop.f32.mrf.mxu1  ;;  %v9662_v18 = vld [vmem:[%s10017_s23] ss:$0 sm:$0xff]  ;;  %s7805_s23 = scalar_lea.hbm %s10019_s7, 256 }
 0x4ac   : > { %v5053_v34 = vadd.f32 %v5052_v61, %v9572_v60  ;;  %v5130_v58 = vpop.f32.mrf.mxu3  ;;  %v7424_v44 = vld [vmem:[%s8133_s13] sm:$0xff]   ;;  %p7807_p8 = scmp.lt.s32.totalorder %s7805_s23, %s7801_s20 }
 0x4ad   : > { %v7425_v30 = vunpack.c.l.bf16 %v7424_v44 }
 0x4ae   : > { %p7808_p9 = por %p7807_p8, %p7806_p7 }
 0x4af   : > { %v5527_v53 = vpop.f32.mrf.mxu0 }
 0x4b0   : > { %p7809_p12 = pnand %p7808_p9, %p7804_p5 }
 0x4b2   : > { %v5101_v27 = vpop.f32.mrf.mxu2 }
 0x4b3   : > { %v9638_v56 = vadd.f32 %v5101_v27, %v5053_v34  ;;  %v5055_v55 = vpop.f32.mrf.mxu1  ;;  %v5126_v34 = vadd.f32 %v5125_v54, %v9592_v10 }
 0x4b4   : > { %v5056_v52 = vadd.f32 %v5055_v55, %v9577_v48  ;;  %v6934_v48 = vor.u32 %v7273_v28, %v6933_v4 }
 0x4b6   : > { %5603 = vmatmul.bf16.gmra.mxu1 %v6918_v45 }
 0x4b7   : > { %5652 = vmatmul.bf16.gmra.mxu2 %v6922_v14  ;;  %v5530_v36 = vpop.f32.mrf.mxu0  ;;  %v7426_v14 = vunpack.c.h.bf16 %v7424_v44 }
 0x4ba   : > { %v5104_v0 = vpop.f32.mrf.mxu2 }
 0x4bb   : > { %v9641_v19 = vadd.f32 %v5104_v0, %v5056_v52  ;;  %v5057_v60 = vpop.f32.mrf.mxu1 }
 0x4bc   : > { %v5058_v24 = vadd.f32 %v5057_v60, %v9579_v3 }
 0x4bf   : > { %v5532_v22 = vpop.f32.mrf.mxu0 }
 0x4c2   : > { %v5106_v6 = vpop.f32.mrf.mxu2 }
 0x4c3   : > { %v9644_v49 = vadd.f32 %v5106_v6, %v5058_v24  ;;  %v5060_v11 = vpop.f32.mrf.mxu1 }
 0x4c4   : > { %v5061_v41 = vadd.f32 %v5060_v11, %v9584_v46  ;;  %v5124_v46 = vadd.f32 %v5123_v17, %v9589_v1  ;;  %v7525_v11 = vld [vmem:[%s8133_s13 + $0x8] sm:$0xff]  }
 0x4c6   : > { %5608 = vmatmul.bf16.gmra.mxu1 %v6930_v42 }
 0x4c7   : > { %5657 = vmatmul.bf16.gmra.mxu2 %v6934_v48  ;;  %v5535_v1 = vpop.f32.mrf.mxu0 }
 0x4ca   : > { %v5109_v29 = vpop.f32.mrf.mxu2 }
 0x4cb   : > { %v9647_v26 = vadd.f32 %v5109_v29, %v5061_v41  ;;  %v5062_v3 = vpop.f32.mrf.mxu1  ;;  %v5131_v41 = vadd.f32 %v5130_v58, %v9598_v38 }
 0x4cc   : > { %v5063_v40 = vadd.f32 %v5062_v3, %v9587_v16  ;;  %v5133_v16 = vpop.f32.mrf.mxu3 }
 0x4cd   : > { %v5134_v38 = vadd.f32 %v5133_v16, %v9601_v25 }
 0x4cf   : > { %v5537_v35 = vpop.f32.mrf.mxu0 }
 0x4d2   : > { %v5111_v31 = vpop.f32.mrf.mxu2 }
 0x4d3   : > { %v9650_v51 = vadd.f32 %v5111_v31, %v5063_v40  ;;  %v5574_v32 = vpop.f32.mrf.mxu1  ;;  %v7429_v40 = vunpack.c.l.bf16 %v7525_v11 }
 0x4d4   : > { %v5575_v7 = vadd.f32 %v5574_v32, %v5525_v20  ;;  %v5129_v20 = vadd.f32 %v5128_v23, %v9595_v21  ;;  %v5135_v60 = vpop.f32.mrf.mxu3 }
 0x4d7   : > { %v5540_v31 = vpop.f32.mrf.mxu0 }
 0x4da   : > { %v5623_v47 = vpop.f32.mrf.mxu2 }
 0x4db   : > { %v5624_v5 = vadd.f32 %v5623_v47, %v5575_v7  ;;  %v5576_v9 = vpop.f32.mrf.mxu1  ;;  %v7430_v7 = vunpack.c.h.bf16 %v7525_v11 }
 0x4dc   : > { %v5577_v13 = vadd.f32 %v5576_v9, %v5527_v53  ;;  %v5138_v21 = vpop.f32.mrf.mxu3 }
 0x4dd   : > { %v5663_v2 = vadd.f32 %v5624_v5, %v5124_v46 }
 0x4df   : > { %v5683_v63 = vmul.f32 %v9656_v57, %v5663_v2 }
 0x4e1   : > { %v5703_v62 = vadd.f32 %v9662_v18, %v5683_v63 }
 0x4e2   : > { %v5625_v61 = vpop.f32.mrf.mxu2 }
 0x4e3   : > { %v5626_v33 = vadd.f32 %v5625_v61, %v5577_v13  ;;  %v5579_v43 = vpop.f32.mrf.mxu1  ;;  %v5751_v52 = vadd.f32 %v7425_v30, %v5703_v62  ;;  %v7526_v62 = vld [vmem:[%s8133_s13 + $0x10] sm:$0xff]  }
 0x4e4   : > { %v5580_v55 = vadd.f32 %v5579_v43, %v5530_v36  ;;  %v5140_v61 = vpop.f32.mrf.mxu3  ;;  %v7433_v16 = vunpack.c.l.bf16 %v7526_v62 }
 0x4e5   : > { %v5664_v27 = vadd.f32 %v5626_v33, %v5126_v34  ;;  %v5767_v4 = vmax.f32 %v5751_v52, 0.0  ;;  %v5542_v33 = vpop.f32.mrf.mxu0 }
 0x4e7   : > { %v5684_v45 = vmul.f32 %v9656_v57, %v5664_v27  ;;  %v5136_v27 = vadd.f32 %v5135_v60, %v9604_v37  ;;  %v5139_v37 = vadd.f32 %v5138_v21, %v9607_v15 }
 0x4e9   : > { %v5704_v17 = vadd.f32 %v9662_v18, %v5684_v45 }
 0x4ea   : > { %v5628_v0 = vpop.f32.mrf.mxu2 }
 0x4eb   : > { %v5752_v10 = vadd.f32 %v7426_v14, %v5704_v17  ;;  %v5629_v24 = vadd.f32 %v5628_v0, %v5580_v55  ;;  %v5581_v39 = vpop.f32.mrf.mxu1  ;;  %v7434_v17 = vunpack.c.h.bf16 %v7526_v62  ;;  %v7528_v62 = vld [vmem:[%s8133_s13 + $0x20] sm:$0xff]  }
 0x4ec   : > { %v5582_v48 = vadd.f32 %v5581_v39, %v5532_v22 }
 0x4ed   : > { %v5768_v28 = vmax.f32 %v5752_v10, 0.0  ;;  %v5665_v6 = vadd.f32 %v5629_v24, %v5129_v20  ;;  %v5143_v20 = vpop.f32.mrf.mxu3 }
 0x4ef   : > { %v7458_v54 = vpack.c.bf16 %v5768_v28, %v5767_v4  ;;  %v5685_v42 = vmul.f32 %v9656_v57, %v5665_v6 }
 0x4f1   : > { %7459 = vst [vmem:[%s8123_s15] sm:$0xff] %v7458_v54   ;;  %v5705_v23 = vadd.f32 %v9662_v18, %v5685_v42 }
 0x4f2   : > { %v5630_v53 = vpop.f32.mrf.mxu2 }
 0x4f3   : > { %v5631_v29 = vadd.f32 %v5630_v53, %v5582_v48  ;;  %v5584_v3 = vpop.f32.mrf.mxu1  ;;  %v5753_v46 = vadd.f32 %v7429_v40, %v5705_v23 }
 0x4f4   : > { %v5585_v47 = vadd.f32 %v5584_v3, %v5535_v1  ;;  %v5141_v3 = vadd.f32 %v5140_v61, %v9613_v59  ;;  %v5144_v59 = vadd.f32 %v5143_v20, %v9618_v8 }
 0x4f5   : > { %v5666_v36 = vadd.f32 %v5631_v29, %v5131_v41  ;;  %v5769_v63 = vmax.f32 %v5753_v46, 0.0  ;;  %v7527_v41 = vld [vmem:[%s8133_s13 + $0x18] sm:$0xff]   ;;  %v5145_v23 = vpop.f32.mrf.mxu3 }
 0x4f6   : > { %v7437_v21 = vunpack.c.l.bf16 %v7527_v41 }
 0x4f7   : > { %v5686_v32 = vmul.f32 %v9656_v57, %v5666_v36 }
 0x4f9   : > { %v5706_v22 = vadd.f32 %v9662_v18, %v5686_v32 }
 0x4fa   : > { %v5633_v5 = vpop.f32.mrf.mxu2 }
 0x4fb   : > { %v5754_v58 = vadd.f32 %v7430_v7, %v5706_v22  ;;  %v5634_v9 = vadd.f32 %v5633_v5, %v5585_v47  ;;  %v5586_v2 = vpop.f32.mrf.mxu1  ;;  %v7438_v47 = vunpack.c.h.bf16 %v7527_v41 }
 0x4fc   : > { %v5587_v1 = vadd.f32 %v5586_v2, %v5537_v35  ;;  %v5545_v35 = vpop.f32.mrf.mxu0 }
 0x4fd   : > { %v5770_v13 = vmax.f32 %v5754_v58, 0.0  ;;  %v5667_v44 = vadd.f32 %v5634_v9, %v5134_v38 }
 0x4ff   : > { %v7463_v34 = vpack.c.bf16 %v5770_v13, %v5769_v63  ;;  %v5687_v43 = vmul.f32 %v9656_v57, %v5667_v44  ;;  %v5148_v63 = vpop.f32.mrf.mxu3 }
 0x501   : > { %7532 = vst [vmem:[%s8123_s15 + $0x8] sm:$0xff] %v7463_v34   ;;  %v5707_v25 = vadd.f32 %v9662_v18, %v5687_v43 }
 0x502   : > { %v5635_v30 = vpop.f32.mrf.mxu2 }
 0x503   : > { %v5636_v45 = vadd.f32 %v5635_v30, %v5587_v1  ;;  %v5589_v14 = vpop.f32.mrf.mxu1  ;;  %v5755_v10 = vadd.f32 %v7433_v16, %v5707_v25  ;;  %v7441_v25 = vunpack.c.l.bf16 %v7528_v62 }
 0x504   : > { %v5590_v0 = vadd.f32 %v5589_v14, %v5540_v31  ;;  %v5547_v31 = vpop.f32.mrf.mxu0 }
 0x505   : > { %v5668_v55 = vadd.f32 %v5636_v45, %v5136_v27  ;;  %v5771_v6 = vmax.f32 %v5755_v10, 0.0  ;;  %v5146_v27 = vadd.f32 %v5145_v23, %v9632_v12  ;;  %v5149_v12 = vadd.f32 %v5148_v63, %v9635_v50 }
 0x507   : > { %v5688_v52 = vmul.f32 %v9656_v57, %v5668_v55  ;;  %v5150_v55 = vpop.f32.mrf.mxu3 }
 0x509   : > { %v5708_v24 = vadd.f32 %v9662_v18, %v5688_v52 }
 0x50a   : > { %v5638_v39 = vpop.f32.mrf.mxu2 }
 0x50b   : > { %v5756_v60 = vadd.f32 %v7434_v17, %v5708_v24  ;;  %v5639_v4 = vadd.f32 %v5638_v39, %v5590_v0  ;;  %v5591_v28 = vpop.f32.mrf.mxu1  ;;  %v7442_v17 = vunpack.c.h.bf16 %v7528_v62 }
 0x50c   : > { %v5592_v53 = vadd.f32 %v5591_v28, %v5542_v33  ;;  %v5550_v34 = vpop.f32.mrf.mxu0 }
 0x50d   : > { %v5772_v54 = vmax.f32 %v5756_v60, 0.0  ;;  %v5669_v42 = vadd.f32 %v5639_v4, %v5139_v37 }
 0x50f   : > { %v7468_v48 = vpack.c.bf16 %v5772_v54, %v5771_v6  ;;  %v5689_v11 = vmul.f32 %v9656_v57, %v5669_v42  ;;  %v5153_v42 = vpop.f32.mrf.mxu3 }
 0x511   : > { %7533 = vst [vmem:[%s8123_s15 + $0x10] sm:$0xff] %v7468_v48   ;;  %v5709_v15 = vadd.f32 %v9662_v18, %v5689_v11 }
 0x512   : > { %v5640_v29 = vpop.f32.mrf.mxu2 }
 0x513   : > { %v5641_v40 = vadd.f32 %v5640_v29, %v5592_v53  ;;  %v5594_v36 = vpop.f32.mrf.mxu1  ;;  %v5757_v22 = vadd.f32 %v7437_v21, %v5709_v15  ;;  %v7529_v53 = vld [vmem:[%s8133_s13 + $0x28] sm:$0xff]  }
 0x514   : > { %v5595_v46 = vadd.f32 %v5594_v36, %v5545_v35  ;;  %v5552_v20 = vpop.f32.mrf.mxu0  ;;  %v7445_v36 = vunpack.c.l.bf16 %v7529_v53  ;;  %v7446_v21 = vunpack.c.h.bf16 %v7529_v53 }
 0x515   : > { %v5670_v32 = vadd.f32 %v5641_v40, %v5141_v3  ;;  %v5773_v13 = vmax.f32 %v5757_v22, 0.0  ;;  %v5151_v3 = vadd.f32 %v5150_v55, %v9638_v56  ;;  %v5154_v22 = vadd.f32 %v5153_v42, %v9641_v19 }
 0x517   : > { %v5690_v7 = vmul.f32 %v9656_v57, %v5670_v32 }
 0x519   : > { %v5710_v5 = vadd.f32 %v9662_v18, %v5690_v7 }
 0x51a   : > { %v5643_v38 = vpop.f32.mrf.mxu2 }
 0x51b   : > { %v5758_v58 = vadd.f32 %v7438_v47, %v5710_v5  ;;  %v5644_v9 = vadd.f32 %v5643_v38, %v5595_v46  ;;  %v5596_v2 = vpop.f32.mrf.mxu1  ;;  %v5155_v5 = vpop.f32.mrf.mxu3 }
 0x51c   : > { %v5597_v1 = vadd.f32 %v5596_v2, %v5547_v31  ;;  %v5555_v41 = vpop.f32.mrf.mxu0 }
 0x51d   : > { %v5774_v44 = vmax.f32 %v5758_v58, 0.0  ;;  %v5671_v61 = vadd.f32 %v5644_v9, %v5144_v59 }
 0x51f   : > { %v7473_v33 = vpack.c.bf16 %v5774_v44, %v5773_v13  ;;  %v5691_v43 = vmul.f32 %v9656_v57, %v5671_v61 }
 0x521   : > { %7534 = vst [vmem:[%s8123_s15 + $0x18] sm:$0xff] %v7473_v33   ;;  %v5711_v8 = vadd.f32 %v9662_v18, %v5691_v43  ;;  %v5156_v43 = vadd.f32 %v5155_v5, %v9644_v49 }
 0x522   : > { %v5645_v30 = vpop.f32.mrf.mxu2 }
 0x523   : > { %v5646_v45 = vadd.f32 %v5645_v30, %v5597_v1  ;;  %v5599_v14 = vpop.f32.mrf.mxu1  ;;  %v5759_v10 = vadd.f32 %v7441_v25, %v5711_v8 }
 0x524   : > { %v5600_v0 = vadd.f32 %v5599_v14, %v5550_v34  ;;  %v5557_v59 = vpop.f32.mrf.mxu0  ;;  %v7530_v34 = vld [vmem:[%s8133_s13 + $0x30] sm:$0xff]  }
 0x525   : > { %v5672_v16 = vadd.f32 %v5646_v45, %v5146_v27  ;;  %v5775_v4 = vmax.f32 %v5759_v10, 0.0  ;;  %v7449_v30 = vunpack.c.l.bf16 %v7530_v34  ;;  %v5158_v45 = vpop.f32.mrf.mxu3  ;;  %v7450_v25 = vunpack.c.h.bf16 %v7530_v34 }
 0x526   : > { %v5159_v49 = vadd.f32 %v5158_v45, %v9647_v26 }
 0x527   : > { %v5692_v52 = vmul.f32 %v9656_v57, %v5672_v16 }
 0x529   : > { %v5712_v24 = vadd.f32 %v9662_v18, %v5692_v52 }
 0x52a   : > { %v5648_v39 = vpop.f32.mrf.mxu2 }
 0x52b   : > { %v5760_v35 = vadd.f32 %v7442_v17, %v5712_v24  ;;  %v5649_v37 = vadd.f32 %v5648_v39, %v5600_v0  ;;  %v5601_v60 = vpop.f32.mrf.mxu1 }
 0x52c   : > { %v5602_v11 = vadd.f32 %v5601_v60, %v5552_v20  ;;  %v5560_v14 = vpop.f32.mrf.mxu0 }
 0x52d   : > { %v5776_v28 = vmax.f32 %v5760_v35, 0.0  ;;  %v5673_v6 = vadd.f32 %v5649_v37, %v5149_v12  ;;  %v5160_v37 = vpop.f32.mrf.mxu3 }
 0x52e   : > { %v5161_v26 = vadd.f32 %v5160_v37, %v9650_v51 }
 0x52f   : > { %v7478_v54 = vpack.c.bf16 %v5776_v28, %v5775_v4  ;;  %v5693_v48 = vmul.f32 %v9656_v57, %v5673_v6  ;;  %v7531_v6 = vld [vmem:[%s8133_s13 + $0x38] sm:$0xff]  }
 0x531   : > { %7535 = vst [vmem:[%s8123_s15 + $0x20] sm:$0xff] %v7478_v54   ;;  %v5713_v50 = vadd.f32 %v9662_v18, %v5693_v48 }
 0x532   : > { %v5650_v29 = vpop.f32.mrf.mxu2 }
 0x533   : > { %v5651_v23 = vadd.f32 %v5650_v29, %v5602_v11  ;;  %v5604_v40 = vpop.f32.mrf.mxu1  ;;  %v5761_v7 = vadd.f32 %v7445_v36, %v5713_v50  ;;  %v7453_v11 = vunpack.c.l.bf16 %v7531_v6  ;;  %v7454_v29 = vunpack.c.h.bf16 %v7531_v6 }
 0x534   : > { %v5605_v32 = vadd.f32 %v5604_v40, %v5555_v41  ;;  %v5562_v60 = vpop.f32.mrf.mxu0 }
 0x535   : > { %v5674_v31 = vadd.f32 %v5651_v23, %v5151_v3  ;;  %v5777_v9 = vmax.f32 %v5761_v7, 0.0 }
 0x537   : > { %v5694_v15 = vmul.f32 %v9656_v57, %v5674_v31 }
 0x539   : > { %v5714_v47 = vadd.f32 %v9662_v18, %v5694_v15 }
 0x53a   : > { %v5653_v46 = vpop.f32.mrf.mxu2 }
 0x53b   : > { %v5762_v56 = vadd.f32 %v7446_v21, %v5714_v47  ;;  %v5654_v38 = vadd.f32 %v5653_v46, %v5605_v32  ;;  %v5606_v58 = vpop.f32.mrf.mxu1 }
 0x53c   : > { %v5607_v61 = vadd.f32 %v5606_v58, %v5557_v59 }
 0x53d   : > { %v5778_v2 = vmax.f32 %v5762_v56, 0.0  ;;  %v5675_v63 = vadd.f32 %v5654_v38, %v5154_v22 }
 0x53f   : > { %v7483_v13 = vpack.c.bf16 %v5778_v2, %v5777_v9  ;;  %v5695_v44 = vmul.f32 %v9656_v57, %v5675_v63 }
 0x541   : > { %7536 = vst [vmem:[%s8123_s15 + $0x28] sm:$0xff] %v7483_v13   ;;  %v5715_v19 = vadd.f32 %v9662_v18, %v5695_v44 }
 0x542   : > { %v5655_v33 = vpop.f32.mrf.mxu2 }
 0x543   : > { %v5656_v1 = vadd.f32 %v5655_v33, %v5607_v61  ;;  %v5609_v62 = vpop.f32.mrf.mxu1  ;;  %v5763_v55 = vadd.f32 %v7449_v30, %v5715_v19 }
 0x544   : > { %v5610_v16 = vadd.f32 %v5609_v62, %v5560_v14 }
 0x545   : > { %v5676_v27 = vadd.f32 %v5656_v1, %v5156_v43  ;;  %v5779_v10 = vmax.f32 %v5763_v55, 0.0 }
 0x547   : > { %v5696_v8 = vmul.f32 %v9656_v57, %v5676_v27 }
 0x549   : > { %v5716_v52 = vadd.f32 %v9662_v18, %v5696_v8 }
 0x54a   : > { %v5658_v17 = vpop.f32.mrf.mxu2 }
 0x54b   : > { %v5764_v0 = vadd.f32 %v7450_v25, %v5716_v52  ;;  %v5659_v20 = vadd.f32 %v5658_v17, %v5610_v16  ;;  %v5611_v12 = vpop.f32.mrf.mxu1 }
 0x54c   : > { %v5612_v28 = vadd.f32 %v5611_v12, %v5562_v60 }
 0x54d   : > { %v5780_v24 = vmax.f32 %v5764_v0, 0.0  ;;  %v5677_v39 = vadd.f32 %v5659_v20, %v5159_v49 }
 0x54f   : > { %v7488_v35 = vpack.c.bf16 %v5780_v24, %v5779_v10  ;;  %v5697_v4 = vmul.f32 %v9656_v57, %v5677_v39 }
 0x551   : > { %7537 = vst [vmem:[%s8123_s15 + $0x30] sm:$0xff] %v7488_v35   ;;  %v5717_v48 = vadd.f32 %v9662_v18, %v5697_v4 }
 0x552   : > { %v5660_v54 = vpop.f32.mrf.mxu2 }
 0x553   : > { %v5661_v42 = vadd.f32 %v5660_v54, %v5612_v28  ;;  %v5765_v3 = vadd.f32 %v7453_v11, %v5717_v48 }
 0x555   : > { %v5678_v53 = vadd.f32 %v5661_v42, %v5161_v26  ;;  %v5781_v40 = vmax.f32 %v5765_v3, 0.0 }
 0x557   : > { %v5698_v41 = vmul.f32 %v9656_v57, %v5678_v53 }
 0x559   : > { %v5718_v23 = vadd.f32 %v9662_v18, %v5698_v41 }
 0x55b   : > { %v5766_v51 = vadd.f32 %v7454_v29, %v5718_v23 }
 0x55d   : > { %v5782_v50 = vmax.f32 %v5766_v51, 0.0 }
 0x55f   : > { %v7493_v36 = vpack.c.bf16 %v5782_v50, %v5781_v40 }
 0x561   : > { %7538 = vst [vmem:[%s8123_s15 + $0x38] sm:$0xff] %v7493_v36  }
 0x562   : > { %7812 = shalt.err (!%p7809_p12)
}
 0x563   : > { %s7924_s5 = smov 64   ;;  %s7925_s15 = smov 4  }
 0x564   : > { %7565 = dma.vmem_to_hbm [thread:$0]  (%p8036_p6), %s5831_s6, 1024, %s5833_s8, %s5816_s18, %s7924_s5, %s7924_s5, %s7925_s15  }
 0x565 PF: > { %s10021_s19 = sld [smem:[#allocation15_spill]]  ;;  %p7587_p13 = scmp.ge.s32.totalorder %s7911_s11, 2 }
 0x567   : > { %p7579_p4 = pnand %p7587_p13, %p8042_p10 }
 0x569   : > { %p7580_p1 = pneg %p7579_p4 }
 0x56b   : > { %s5847_s30 = sand.u32 1, %s10021_s19  }
 0x56c   : > { %s5848_s9 = scalar_lea.sflag [#allocation7], %s5847_s30 }
 0x56d   : > { %7866 = dma.done.wait (%p7580_p1), %s5848_s9, 1024  }
 0x56e   : > { %7868 = vsyncadd (%p7580_p1), %s5848_s9, 4294966272  ;;  %s24_s11 = sadd.s32 1, %s7911_s11   ;;  %s10023_s16 = smov %s8090_s24 }
 0x56f   : > { %p21_p11 = scmp.ge.s32.totalorder %s24_s11, 6   ;;  %s10024_s30 = sld [smem:[#allocation17_spill]] }
 0x570   : > { %s10025_s9 = sld [smem:[#allocation20_spill]]  ;;  %s10027_s24 = smov %s7875_s25 }
 0x571   : > { %s10026_s17 = sld [smem:[#allocation21_spill]]  ;;  %s10028_s25 = smov %s7879_s26 }
 0x572   : > { %s10029_s26 = smov %s8093_s27  ;;  %s10030_s27 = smov %s7887_s28 }
 0x573   : > { %s10031_s28 = smov %s7891_s29  ;;  %s10032_s29 = smov %s10023_s16 }
 0x574   : > { %s10033_s8 = smov %s7907_s10  ;;  %23 = sbr.rel (!%p21_p11) target bundleno = 16 (0x10), region = 132 }
 0x577   : > { %s10034_s10 = smov %s10026_s17 }
 0x579   :  { %5854 = vsyncpa [#allocation6], 1 }
 0x57a   :  { %5856 = vsyncpa [#allocation6 + $0x1], 1 }
 0x57b   :  { %5857 = vsyncpa [#allocation9], 1 }
 0x57c   :  { %5858 = vsyncpa [#allocation7], 1 }
 0x57d   :  { %5860 = vsyncpa [#allocation7 + $0x1], 1 }

</bundles_post_ra>
